<compile_context>
chip_gen: v6e
topology: v6e:2x2x1
jax: 0.10.0
libtpu: 0.0.40
codegen_flags: <defaults>
</compile_context>

<pallas_src>
import jax
import jax.numpy as jnp
import numpy as np
from jax import lax
from jax.experimental import pallas as pl
from jax.experimental.pallas import tpu as pltpu


def _dot(a, b):
    # Latency-bound chain of tiny matmuls: the extra MXU passes of HIGHEST
    # precision pipeline and are essentially free, and keep the H-step
    # recursion numerically exact (review correctness concern).
    return jnp.dot(a, b, precision=jax.lax.Precision.HIGHEST,
                   preferred_element_type=jnp.float32)


def _analytic_svg_kernel(gmat_ref, pair_ref, s0_ref, val_ref, grad_ref):
    # gmat_ref: (3*H, Qa, Qa)     [G~ ; G~^T ; W~]        (Qa = n_state + 1)
    # pair_ref: (2*H, Qa+nc, Qa)  [ [G~^T ; Fu^T|0] ; [Ccl~ ; Acl0|bcl0] ]
    # s0_ref  : (Qa, Qa)          augmented initial second moment S~_0
    # val_ref : (1, 1) SMEM       value = -E[V_0(x_0)]
    # grad_ref: (nc, H*Qa) VMEM   [-dcost/dK_t | -dcost/dk_t] lane-concatenated
    H = gmat_ref.shape[0] // 3
    Qa = gmat_ref.shape[-1]
    f32 = jnp.float32

    Vh = jnp.zeros((Qa, Qa), f32)      # V~_{t+1}  (augmented value, carry)
    Wacc = jnp.zeros((Qa, Qa), f32)    # deferred sum_t W_t (.) V_{t+1}
    Sh = s0_ref[...]                   # S~_t      (augmented 2nd moment, carry)

    ab = [None] * H                    # (nc, Qa) per t: [A_t | b_t]  (vregs)
    smom = [None] * H                  # (Qa, Qa) per t: S~_t         (vregs)

    # The two recursions are data independent; interleaving them in one
    # unrolled loop lets each chain's MXU latency hide the other's.
    for i in range(H):
        tb = H - 1 - i                 # backward (Riccati) time index
        tf = i                         # forward (moment) time index

        # ---- backward value recursion: 2 fused chained matmuls ------------
        g_b = gmat_ref[0 * H + tb]     # G~_tb
        w_b = gmat_ref[2 * H + tb]     # W~_tb
        lhs2 = pair_ref[0 * H + tb]    # [G~^T ; Fu^T|0]
        cst2 = pair_ref[1 * H + tb]    # [Ccl~ ; Acl0|bcl0]
        m1 = _dot(Vh, g_b)                         # V~ G~
        Wacc = Wacc + w_b * Vh                     # deferred tr(W V_{t+1}) (VPU)
        res = cst2 + _dot(lhs2, m1)                # [V~_tb ; A_tb | b_tb]
        ab[tb] = res[Qa:, :]                       # keep in vregs
        Vh = res[:Qa, :]

        # ---- forward moment recursion (independent chain) ------------------
        smom[tf] = Sh
        g_f = gmat_ref[0 * H + tf]
        gt_f = gmat_ref[1 * H + tf]
        w_f = gmat_ref[2 * H + tf]
        Sh = w_f + _dot(g_f, _dot(Sh, gt_f))       # S~' = G~ S~ G~^T + W~

    # ---- ExpectedValue epilogue: cost = 1/2 sum(S~_0 (.) V~_0 + Wacc) ------
    val_ref[0, 0] = -0.5 * jnp.sum(s0_ref[...] * Vh + Wacc)

    # ---- analytic SVG: unchained, fully pipelined; one lane-dense store ----
    # dcost/d[K_t | k_t] = [A_t | b_t] @ S~_t ;  SVG = grad of (-cost).
    grad_ref[...] = jnp.concatenate(
        [-_dot(ab[t], smom[t]) for t in range(H)], axis=-1)


def analytic_svg(K, k, F, f, W, C, c, mu0, sig0):
    """AnalyticSVG.forward(): returns (value, (grad_K, grad_k))."""
    H, nc, ns = K.shape
    Qa = ns + 1
    f32 = jnp.float32
    hp = jax.lax.Precision.HIGHEST          # one-time batched precompute
    mm = lambda a, b: jnp.einsum("hij,hjk->hik", a, b, precision=hp)
    swap = lambda x: jnp.swapaxes(x, -1, -2)

    K = K.astype(f32); k = k.astype(f32)
    F = F.astype(f32); f = f.astype(f32); W = W.astype(f32)
    C = C.astype(f32); c = c.astype(f32)
    mu0 = mu0.astype(f32); sig0 = sig0.astype(f32)

    # LQG cost / covariances are symmetric by construction; the value depends
    # only on the symmetric part, so symmetrizing is exact and lets the whole
    # backward recursion run in homogeneous (augmented) coordinates.
    C = 0.5 * (C + swap(C))
    W = 0.5 * (W + swap(W))
    sig0 = 0.5 * (sig0 + sig0.T)

    Fx, Fu = F[:, :, :ns], F[:, :, ns:]
    Cxx, Cxu = C[:, :ns, :ns], C[:, :ns, ns:]
    Cux, Cuu = C[:, ns:, :ns], C[:, ns:, ns:]
    cx, cu = c[:, :ns, None], c[:, ns:, None]
    kcol, fcol = k[:, :, None], f[:, :, None]
    KT = swap(K)

    # V-independent closed-loop quantities (batched, off the serial chain).
    G = Fx + mm(Fu, K)                           # closed-loop gain
    gcl = mm(Fu, kcol) + fcol                    # closed-loop offset
    Acl0 = Cux + mm(Cuu, K)                      # C_ux + C_uu K
    bcl0 = mm(Cuu, kcol) + cu                    # C_uu k + c_u
    Ccl = Cxx + mm(Cxu, K) + mm(KT, Acl0)        # M^T C M
    ccl = cx + mm(Cxu, kcol) + mm(KT, bcl0)      # M^T (C m + c)
    ccorner = (jnp.einsum("hi,hij,hj->h", k, Cuu, k, precision=hp)
               + 2.0 * jnp.einsum("hi,hi->h", k, c[:, ns:]))   # m^T C m + 2 m^T c

    # Augmented (homogeneous-coordinate) per-step blocks.
    one = jnp.ones((H, 1, 1), f32)
    zrow = jnp.zeros((H, 1, ns), f32)
    Ghat = jnp.concatenate(
        [jnp.concatenate([G, gcl], axis=2),
         jnp.concatenate([zrow, one], axis=2)], axis=1)           # (H,Qa,Qa)
    GhatT = swap(Ghat)
    Cclhat = jnp.concatenate(
        [jnp.concatenate([Ccl, ccl], axis=2),
         jnp.concatenate([swap(ccl), ccorner[:, None, None]], axis=2)],
        axis=1)                                                    # (H,Qa,Qa)
    What = jnp.pad(W, ((0, 0), (0, 1), (0, 1)))                    # (H,Qa,Qa)
    FuTa = jnp.pad(swap(Fu), ((0, 0), (0, 0), (0, 1)))             # (H,nc,Qa)
    AB0 = jnp.concatenate([Acl0, bcl0], axis=2)                    # (H,nc,Qa)

    # Fused second-matmul operands: LHS stacked on sublanes + additive consts.
    lhs2 = jnp.concatenate([GhatT, FuTa], axis=1)                  # (H,Qa+nc,Qa)
    cst2 = jnp.concatenate([Cclhat, AB0], axis=1)                  # (H,Qa+nc,Qa)

    # Augmented initial second moment S~_0 = [[Sig0 + mu mu^T, mu],[mu^T, 1]].
    mu_c = mu0[:, None]
    S0hat = jnp.concatenate(
        [jnp.concatenate([sig0 + mu_c * mu_c.T, mu_c], axis=1),
         jnp.concatenate([mu_c.T, jnp.ones((1, 1), f32)], axis=1)], axis=0)

    gmat = jnp.concatenate([Ghat, GhatT, What], axis=0)            # (3H,Qa,Qa)
    pair = jnp.concatenate([lhs2, cst2], axis=0)                   # (2H,Qa+nc,Qa)

    val, grads = pl.pallas_call(
        _analytic_svg_kernel,
        out_shape=(
            jax.ShapeDtypeStruct((1, 1), f32),            # value (scalar)
            jax.ShapeDtypeStruct((nc, H * Qa), f32),      # lane-dense SVG slab
        ),
        in_specs=[pl.BlockSpec(memory_space=pltpu.MemorySpace.VMEM)] * 3,
        out_specs=(pl.BlockSpec(memory_space=pltpu.MemorySpace.SMEM),
                   pl.BlockSpec(memory_space=pltpu.MemorySpace.VMEM)),
    )(gmat, pair, S0hat)

    gall = jnp.transpose(grads.reshape(nc, H, Qa), (1, 0, 2))      # (H,nc,Qa)
    return val[0, 0], (gall[:, :, :ns], gall[:, :, ns])


# ---------------- pure-JAX reference (for self-verification only) -----------
def _value_ref(K, k, F, f, W, C, c, mu0, sig0):
    ns = mu0.shape[0]
    eye = jnp.eye(ns, dtype=K.dtype)

    def step(carry, inp):
        V, v, cst = carry
        Ft, ft, Wt, Ct, ct, Kt, kt = inp
        Qmat = Ct + Ft.T @ V @ Ft
        qvec = ct + Ft.T @ (V @ ft + v)
        qcst = cst + 0.5 * ft @ V @ ft + ft @ v + 0.5 * jnp.trace(Wt @ V)
        M = jnp.concatenate([eye, Kt], axis=0)
        m = jnp.concatenate([jnp.zeros((ns,), K.dtype), kt], axis=0)
        Vn = M.T @ Qmat @ M
        vn = M.T @ (Qmat @ m + qvec)
        cn = 0.5 * m @ Qmat @ m + m @ qvec + qcst
        return (Vn, vn, cn), None

    init = (jnp.zeros((ns, ns), K.dtype), jnp.zeros((ns,), K.dtype),
            jnp.zeros((), K.dtype))
    (V, v, cst), _ = lax.scan(step, init, (F, f, W, C, c, K, k), reverse=True)
    cost = 0.5 * jnp.trace(sig0 @ V) + 0.5 * mu0 @ V @ mu0 + v @ mu0 + cst
    return -cost


if __name__ == "__main__":
    n_state, n_ctrl, horizon = 8, 4, 8
    n_tau = n_state + n_ctrl

    key = jax.random.PRNGKey(0)
    kK, kk, kF, kf, kW, kC, kc, km, kS = jax.random.split(key, 9)

    # deterministic synthetic policy + LQG model parameters
    K = 0.1 * jax.random.normal(kK, (horizon, n_ctrl, n_state), jnp.float32)
    k_ = 0.1 * jax.random.normal(kk, (horizon, n_ctrl), jnp.float32)
    F = 0.3 * jax.random.normal(kF, (horizon, n_state, n_tau), jnp.float32)
    f_ = 0.1 * jax.random.normal(kf, (horizon, n_state), jnp.float32)
    Wl = 0.1 * jax.random.normal(kW, (horizon, n_state, n_state), jnp.float32)
    W = Wl @ jnp.swapaxes(Wl, -1, -2) + 1e-3 * jnp.eye(n_state, dtype=jnp.float32)
    Cl = 0.3 * jax.random.normal(kC, (horizon, n_tau, n_tau), jnp.float32)
    C = Cl @ jnp.swapaxes(Cl, -1, -2) + jnp.eye(n_tau, dtype=jnp.float32)
    c_ = 0.1 * jax.random.normal(kc, (horizon, n_tau), jnp.float32)
    mu0 = 0.5 * jax.random.normal(km, (n_state,), jnp.float32)
    Sl = 0.3 * jax.random.normal(kS, (n_state, n_state), jnp.float32)
    sig0 = Sl @ Sl.T + 0.1 * jnp.eye(n_state, dtype=jnp.float32)

    value, (grad_K, grad_k) = jax.jit(analytic_svg)(
        K, k_, F, f_, W, C, c_, mu0, sig0)
    jax.block_until_ready((value, grad_K, grad_k))

    # self-check: Pallas kernel vs. pure-JAX value + autodiff SVG at highest
    # precision.  In-kernel matmuls now also run at HIGHEST (review), so the
    # tolerances are tight; any algebra bug is O(1) and would blow past them.
    with jax.default_matmul_precision("highest"):
        ref_value = _value_ref(K, k_, F, f_, W, C, c_, mu0, sig0)
        ref_gK, ref_gk = jax.grad(_value_ref, argnums=(0, 1))(
            K, k_, F, f_, W, C, c_, mu0, sig0)
    np.testing.assert_allclose(np.asarray(value), np.asarray(ref_value),
                               rtol=2e-3, atol=1e-3)
    np.testing.assert_allclose(np.asarray(grad_K), np.asarray(ref_gK),
                               rtol=2e-3, atol=1e-3)
    np.testing.assert_allclose(np.asarray(grad_k), np.asarray(ref_gk),
                               rtol=2e-3, atol=1e-3)

    print("KERNEL_OK")
</pallas_src>

<mosaic_0001>
module attributes {stable_mosaic.version = 11 : i64} {
  func.func @_analytic_svg_kernel(%arg0: memref<24x9x9xf32, #tpu.memory_space<vmem>>, %arg1: memref<16x13x9xf32, #tpu.memory_space<vmem>>, %arg2: memref<9x9xf32, #tpu.memory_space<vmem>>, %arg3: memref<1x1xf32, #tpu.memory_space<smem>>, %arg4: memref<4x72xf32, #tpu.memory_space<vmem>>) attributes {dimension_semantics = [], scalar_prefetch = 0 : i64, scratch_operands = 0 : i64, tpu.core_type = #tpu.core_type<tc>} {
    %cst = arith.constant 0.000000e+00 : f32
    %0 = vector.broadcast %cst : f32 to vector<9x9xf32>
    %cst_0 = arith.constant 0.000000e+00 : f32
    %1 = vector.broadcast %cst_0 : f32 to vector<9x9xf32>
    %c0 = arith.constant 0 : index
    %c0_1 = arith.constant 0 : index
    %2 = vector.load %arg2[%c0, %c0_1] : memref<9x9xf32, #tpu.memory_space<vmem>>, vector<9x9xf32>
    %c7 = arith.constant 7 : index
    %c0_2 = arith.constant 0 : index
    %c0_3 = arith.constant 0 : index
    %3 = vector.load %arg0[%c7, %c0_2, %c0_3] : memref<24x9x9xf32, #tpu.memory_space<vmem>>, vector<1x9x9xf32>
    %4 = vector.shape_cast %3 : vector<1x9x9xf32> to vector<9x9xf32>
    %c23 = arith.constant 23 : index
    %c0_4 = arith.constant 0 : index
    %c0_5 = arith.constant 0 : index
    %5 = vector.load %arg0[%c23, %c0_4, %c0_5] : memref<24x9x9xf32, #tpu.memory_space<vmem>>, vector<1x9x9xf32>
    %6 = vector.shape_cast %5 : vector<1x9x9xf32> to vector<9x9xf32>
    %c7_6 = arith.constant 7 : index
    %c0_7 = arith.constant 0 : index
    %c0_8 = arith.constant 0 : index
    %7 = vector.load %arg1[%c7_6, %c0_7, %c0_8] : memref<16x13x9xf32, #tpu.memory_space<vmem>>, vector<1x13x9xf32>
    %8 = vector.shape_cast %7 : vector<1x13x9xf32> to vector<13x9xf32>
    %c15 = arith.constant 15 : index
    %c0_9 = arith.constant 0 : index
    %c0_10 = arith.constant 0 : index
    %9 = vector.load %arg1[%c15, %c0_9, %c0_10] : memref<16x13x9xf32, #tpu.memory_space<vmem>>, vector<1x13x9xf32>
    %10 = vector.shape_cast %9 : vector<1x13x9xf32> to vector<13x9xf32>
    %cst_11 = arith.constant dense<0.000000e+00> : vector<9x9xf32>
    %11 = tpu.matmul %0, %4, %cst_11 {dimension_numbers = #tpu.dot_dimension_numbers<[1], [0], [0], [1], [0, 0, 1, 1], [], []>, precision = #tpu.contract_precision<fp32>} : vector<9x9xf32>, vector<9x9xf32>, vector<9x9xf32> -> vector<9x9xf32>
    %12 = arith.mulf %6, %0 : vector<9x9xf32>
    %13 = arith.addf %1, %12 : vector<9x9xf32>
    %cst_12 = arith.constant dense<0.000000e+00> : vector<13x9xf32>
    %14 = tpu.matmul %8, %11, %cst_12 {dimension_numbers = #tpu.dot_dimension_numbers<[1], [0], [0], [1], [0, 0, 1, 1], [], []>, precision = #tpu.contract_precision<fp32>} : vector<13x9xf32>, vector<9x9xf32>, vector<13x9xf32> -> vector<13x9xf32>
    %15 = arith.addf %10, %14 : vector<13x9xf32>
    %16 = vector.extract_strided_slice %15 {offsets = [9, 0], sizes = [4, 9], strides = [1, 1]} : vector<13x9xf32> to vector<4x9xf32>
    %17 = vector.extract_strided_slice %15 {offsets = [0, 0], sizes = [9, 9], strides = [1, 1]} : vector<13x9xf32> to vector<9x9xf32>
    %c0_13 = arith.constant 0 : index
    %c0_14 = arith.constant 0 : index
    %c0_15 = arith.constant 0 : index
    %18 = vector.load %arg0[%c0_13, %c0_14, %c0_15] : memref<24x9x9xf32, #tpu.memory_space<vmem>>, vector<1x9x9xf32>
    %19 = vector.shape_cast %18 : vector<1x9x9xf32> to vector<9x9xf32>
    %c8 = arith.constant 8 : index
    %c0_16 = arith.constant 0 : index
    %c0_17 = arith.constant 0 : index
    %20 = vector.load %arg0[%c8, %c0_16, %c0_17] : memref<24x9x9xf32, #tpu.memory_space<vmem>>, vector<1x9x9xf32>
    %21 = vector.shape_cast %20 : vector<1x9x9xf32> to vector<9x9xf32>
    %c16 = arith.constant 16 : index
    %c0_18 = arith.constant 0 : index
    %c0_19 = arith.constant 0 : index
    %22 = vector.load %arg0[%c16, %c0_18, %c0_19] : memref<24x9x9xf32, #tpu.memory_space<vmem>>, vector<1x9x9xf32>
    %23 = vector.shape_cast %22 : vector<1x9x9xf32> to vector<9x9xf32>
    %cst_20 = arith.constant dense<0.000000e+00> : vector<9x9xf32>
    %24 = tpu.matmul %2, %21, %cst_20 {dimension_numbers = #tpu.dot_dimension_numbers<[1], [0], [0], [1], [0, 0, 1, 1], [], []>, precision = #tpu.contract_precision<fp32>} : vector<9x9xf32>, vector<9x9xf32>, vector<9x9xf32> -> vector<9x9xf32>
    %cst_21 = arith.constant dense<0.000000e+00> : vector<9x9xf32>
    %25 = tpu.matmul %19, %24, %cst_21 {dimension_numbers = #tpu.dot_dimension_numbers<[1], [0], [0], [1], [0, 0, 1, 1], [], []>, precision = #tpu.contract_precision<fp32>} : vector<9x9xf32>, vector<9x9xf32>, vector<9x9xf32> -> vector<9x9xf32>
    %26 = arith.addf %23, %25 : vector<9x9xf32>
    %c6 = arith.constant 6 : index
    %c0_22 = arith.constant 0 : index
    %c0_23 = arith.constant 0 : index
    %27 = vector.load %arg0[%c6, %c0_22, %c0_23] : memref<24x9x9xf32, #tpu.memory_space<vmem>>, vector<1x9x9xf32>
    %28 = vector.shape_cast %27 : vector<1x9x9xf32> to vector<9x9xf32>
    %c22 = arith.constant 22 : index
    %c0_24 = arith.constant 0 : index
    %c0_25 = arith.constant 0 : index
    %29 = vector.load %arg0[%c22, %c0_24, %c0_25] : memref<24x9x9xf32, #tpu.memory_space<vmem>>, vector<1x9x9xf32>
    %30 = vector.shape_cast %29 : vector<1x9x9xf32> to vector<9x9xf32>
    %c6_26 = arith.constant 6 : index
    %c0_27 = arith.constant 0 : index
    %c0_28 = arith.constant 0 : index
    %31 = vector.load %arg1[%c6_26, %c0_27, %c0_28] : memref<16x13x9xf32, #tpu.memory_space<vmem>>, vector<1x13x9xf32>
    %32 = vector.shape_cast %31 : vector<1x13x9xf32> to vector<13x9xf32>
    %c14 = arith.constant 14 : index
    %c0_29 = arith.constant 0 : index
    %c0_30 = arith.constant 0 : index
    %33 = vector.load %arg1[%c14, %c0_29, %c0_30] : memref<16x13x9xf32, #tpu.memory_space<vmem>>, vector<1x13x9xf32>
    %34 = vector.shape_cast %33 : vector<1x13x9xf32> to vector<13x9xf32>
    %cst_31 = arith.constant dense<0.000000e+00> : vector<9x9xf32>
    %35 = tpu.matmul %17, %28, %cst_31 {dimension_numbers = #tpu.dot_dimension_numbers<[1], [0], [0], [1], [0, 0, 1, 1], [], []>, precision = #tpu.contract_precision<fp32>} : vector<9x9xf32>, vector<9x9xf32>, vector<9x9xf32> -> vector<9x9xf32>
    %36 = arith.mulf %30, %17 : vector<9x9xf32>
    %37 = arith.addf %13, %36 : vector<9x9xf32>
    %cst_32 = arith.constant dense<0.000000e+00> : vector<13x9xf32>
    %38 = tpu.matmul %32, %35, %cst_32 {dimension_numbers = #tpu.dot_dimension_numbers<[1], [0], [0], [1], [0, 0, 1, 1], [], []>, precision = #tpu.contract_precision<fp32>} : vector<13x9xf32>, vector<9x9xf32>, vector<13x9xf32> -> vector<13x9xf32>
    %39 = arith.addf %34, %38 : vector<13x9xf32>
    %40 = vector.extract_strided_slice %39 {offsets = [9, 0], sizes = [4, 9], strides = [1, 1]} : vector<13x9xf32> to vector<4x9xf32>
    %41 = vector.extract_strided_slice %39 {offsets = [0, 0], sizes = [9, 9], strides = [1, 1]} : vector<13x9xf32> to vector<9x9xf32>
    %c1 = arith.constant 1 : index
    %c0_33 = arith.constant 0 : index
    %c0_34 = arith.constant 0 : index
    %42 = vector.load %arg0[%c1, %c0_33, %c0_34] : memref<24x9x9xf32, #tpu.memory_space<vmem>>, vector<1x9x9xf32>
    %43 = vector.shape_cast %42 : vector<1x9x9xf32> to vector<9x9xf32>
    %c9 = arith.constant 9 : index
    %c0_35 = arith.constant 0 : index
    %c0_36 = arith.constant 0 : index
    %44 = vector.load %arg0[%c9, %c0_35, %c0_36] : memref<24x9x9xf32, #tpu.memory_space<vmem>>, vector<1x9x9xf32>
    %45 = vector.shape_cast %44 : vector<1x9x9xf32> to vector<9x9xf32>
    %c17 = arith.constant 17 : index
    %c0_37 = arith.constant 0 : index
    %c0_38 = arith.constant 0 : index
    %46 = vector.load %arg0[%c17, %c0_37, %c0_38] : memref<24x9x9xf32, #tpu.memory_space<vmem>>, vector<1x9x9xf32>
    %47 = vector.shape_cast %46 : vector<1x9x9xf32> to vector<9x9xf32>
    %cst_39 = arith.constant dense<0.000000e+00> : vector<9x9xf32>
    %48 = tpu.matmul %26, %45, %cst_39 {dimension_numbers = #tpu.dot_dimension_numbers<[1], [0], [0], [1], [0, 0, 1, 1], [], []>, precision = #tpu.contract_precision<fp32>} : vector<9x9xf32>, vector<9x9xf32>, vector<9x9xf32> -> vector<9x9xf32>
    %cst_40 = arith.constant dense<0.000000e+00> : vector<9x9xf32>
    %49 = tpu.matmul %43, %48, %cst_40 {dimension_numbers = #tpu.dot_dimension_numbers<[1], [0], [0], [1], [0, 0, 1, 1], [], []>, precision = #tpu.contract_precision<fp32>} : vector<9x9xf32>, vector<9x9xf32>, vector<9x9xf32> -> vector<9x9xf32>
    %50 = arith.addf %47, %49 : vector<9x9xf32>
    %c5 = arith.constant 5 : index
    %c0_41 = arith.constant 0 : index
    %c0_42 = arith.constant 0 : index
    %51 = vector.load %arg0[%c5, %c0_41, %c0_42] : memref<24x9x9xf32, #tpu.memory_space<vmem>>, vector<1x9x9xf32>
    %52 = vector.shape_cast %51 : vector<1x9x9xf32> to vector<9x9xf32>
    %c21 = arith.constant 21 : index
    %c0_43 = arith.constant 0 : index
    %c0_44 = arith.constant 0 : index
    %53 = vector.load %arg0[%c21, %c0_43, %c0_44] : memref<24x9x9xf32, #tpu.memory_space<vmem>>, vector<1x9x9xf32>
    %54 = vector.shape_cast %53 : vector<1x9x9xf32> to vector<9x9xf32>
    %c5_45 = arith.constant 5 : index
    %c0_46 = arith.constant 0 : index
    %c0_47 = arith.constant 0 : index
    %55 = vector.load %arg1[%c5_45, %c0_46, %c0_47] : memref<16x13x9xf32, #tpu.memory_space<vmem>>, vector<1x13x9xf32>
    %56 = vector.shape_cast %55 : vector<1x13x9xf32> to vector<13x9xf32>
    %c13 = arith.constant 13 : index
    %c0_48 = arith.constant 0 : index
    %c0_49 = arith.constant 0 : index
    %57 = vector.load %arg1[%c13, %c0_48, %c0_49] : memref<16x13x9xf32, #tpu.memory_space<vmem>>, vector<1x13x9xf32>
    %58 = vector.shape_cast %57 : vector<1x13x9xf32> to vector<13x9xf32>
    %cst_50 = arith.constant dense<0.000000e+00> : vector<9x9xf32>
    %59 = tpu.matmul %41, %52, %cst_50 {dimension_numbers = #tpu.dot_dimension_numbers<[1], [0], [0], [1], [0, 0, 1, 1], [], []>, precision = #tpu.contract_precision<fp32>} : vector<9x9xf32>, vector<9x9xf32>, vector<9x9xf32> -> vector<9x9xf32>
    %60 = arith.mulf %54, %41 : vector<9x9xf32>
    %61 = arith.addf %37, %60 : vector<9x9xf32>
    %cst_51 = arith.constant dense<0.000000e+00> : vector<13x9xf32>
    %62 = tpu.matmul %56, %59, %cst_51 {dimension_numbers = #tpu.dot_dimension_numbers<[1], [0], [0], [1], [0, 0, 1, 1], [], []>, precision = #tpu.contract_precision<fp32>} : vector<13x9xf32>, vector<9x9xf32>, vector<13x9xf32> -> vector<13x9xf32>
    %63 = arith.addf %58, %62 : vector<13x9xf32>
    %64 = vector.extract_strided_slice %63 {offsets = [9, 0], sizes = [4, 9], strides = [1, 1]} : vector<13x9xf32> to vector<4x9xf32>
    %65 = vector.extract_strided_slice %63 {offsets = [0, 0], sizes = [9, 9], strides = [1, 1]} : vector<13x9xf32> to vector<9x9xf32>
    %c2 = arith.constant 2 : index
    %c0_52 = arith.constant 0 : index
    %c0_53 = arith.constant 0 : index
    %66 = vector.load %arg0[%c2, %c0_52, %c0_53] : memref<24x9x9xf32, #tpu.memory_space<vmem>>, vector<1x9x9xf32>
    %67 = vector.shape_cast %66 : vector<1x9x9xf32> to vector<9x9xf32>
    %c10 = arith.constant 10 : index
    %c0_54 = arith.constant 0 : index
    %c0_55 = arith.constant 0 : index
    %68 = vector.load %arg0[%c10, %c0_54, %c0_55] : memref<24x9x9xf32, #tpu.memory_space<vmem>>, vector<1x9x9xf32>
    %69 = vector.shape_cast %68 : vector<1x9x9xf32> to vector<9x9xf32>
    %c18 = arith.constant 18 : index
    %c0_56 = arith.constant 0 : index
    %c0_57 = arith.constant 0 : index
    %70 = vector.load %arg0[%c18, %c0_56, %c0_57] : memref<24x9x9xf32, #tpu.memory_space<vmem>>, vector<1x9x9xf32>
    %71 = vector.shape_cast %70 : vector<1x9x9xf32> to vector<9x9xf32>
    %cst_58 = arith.constant dense<0.000000e+00> : vector<9x9xf32>
    %72 = tpu.matmul %50, %69, %cst_58 {dimension_numbers = #tpu.dot_dimension_numbers<[1], [0], [0], [1], [0, 0, 1, 1], [], []>, precision = #tpu.contract_precision<fp32>} : vector<9x9xf32>, vector<9x9xf32>, vector<9x9xf32> -> vector<9x9xf32>
    %cst_59 = arith.constant dense<0.000000e+00> : vector<9x9xf32>
    %73 = tpu.matmul %67, %72, %cst_59 {dimension_numbers = #tpu.dot_dimension_numbers<[1], [0], [0], [1], [0, 0, 1, 1], [], []>, precision = #tpu.contract_precision<fp32>} : vector<9x9xf32>, vector<9x9xf32>, vector<9x9xf32> -> vector<9x9xf32>
    %74 = arith.addf %71, %73 : vector<9x9xf32>
    %c4 = arith.constant 4 : index
    %c0_60 = arith.constant 0 : index
    %c0_61 = arith.constant 0 : index
    %75 = vector.load %arg0[%c4, %c0_60, %c0_61] : memref<24x9x9xf32, #tpu.memory_space<vmem>>, vector<1x9x9xf32>
    %76 = vector.shape_cast %75 : vector<1x9x9xf32> to vector<9x9xf32>
    %c20 = arith.constant 20 : index
    %c0_62 = arith.constant 0 : index
    %c0_63 = arith.constant 0 : index
    %77 = vector.load %arg0[%c20, %c0_62, %c0_63] : memref<24x9x9xf32, #tpu.memory_space<vmem>>, vector<1x9x9xf32>
    %78 = vector.shape_cast %77 : vector<1x9x9xf32> to vector<9x9xf32>
    %c4_64 = arith.constant 4 : index
    %c0_65 = arith.constant 0 : index
    %c0_66 = arith.constant 0 : index
    %79 = vector.load %arg1[%c4_64, %c0_65, %c0_66] : memref<16x13x9xf32, #tpu.memory_space<vmem>>, vector<1x13x9xf32>
    %80 = vector.shape_cast %79 : vector<1x13x9xf32> to vector<13x9xf32>
    %c12 = arith.constant 12 : index
    %c0_67 = arith.constant 0 : index
    %c0_68 = arith.constant 0 : index
    %81 = vector.load %arg1[%c12, %c0_67, %c0_68] : memref<16x13x9xf32, #tpu.memory_space<vmem>>, vector<1x13x9xf32>
    %82 = vector.shape_cast %81 : vector<1x13x9xf32> to vector<13x9xf32>
    %cst_69 = arith.constant dense<0.000000e+00> : vector<9x9xf32>
    %83 = tpu.matmul %65, %76, %cst_69 {dimension_numbers = #tpu.dot_dimension_numbers<[1], [0], [0], [1], [0, 0, 1, 1], [], []>, precision = #tpu.contract_precision<fp32>} : vector<9x9xf32>, vector<9x9xf32>, vector<9x9xf32> -> vector<9x9xf32>
    %84 = arith.mulf %78, %65 : vector<9x9xf32>
    %85 = arith.addf %61, %84 : vector<9x9xf32>
    %cst_70 = arith.constant dense<0.000000e+00> : vector<13x9xf32>
    %86 = tpu.matmul %80, %83, %cst_70 {dimension_numbers = #tpu.dot_dimension_numbers<[1], [0], [0], [1], [0, 0, 1, 1], [], []>, precision = #tpu.contract_precision<fp32>} : vector<13x9xf32>, vector<9x9xf32>, vector<13x9xf32> -> vector<13x9xf32>
    %87 = arith.addf %82, %86 : vector<13x9xf32>
    %88 = vector.extract_strided_slice %87 {offsets = [9, 0], sizes = [4, 9], strides = [1, 1]} : vector<13x9xf32> to vector<4x9xf32>
    %89 = vector.extract_strided_slice %87 {offsets = [0, 0], sizes = [9, 9], strides = [1, 1]} : vector<13x9xf32> to vector<9x9xf32>
    %c3 = arith.constant 3 : index
    %c0_71 = arith.constant 0 : index
    %c0_72 = arith.constant 0 : index
    %90 = vector.load %arg0[%c3, %c0_71, %c0_72] : memref<24x9x9xf32, #tpu.memory_space<vmem>>, vector<1x9x9xf32>
    %91 = vector.shape_cast %90 : vector<1x9x9xf32> to vector<9x9xf32>
    %c11 = arith.constant 11 : index
    %c0_73 = arith.constant 0 : index
    %c0_74 = arith.constant 0 : index
    %92 = vector.load %arg0[%c11, %c0_73, %c0_74] : memref<24x9x9xf32, #tpu.memory_space<vmem>>, vector<1x9x9xf32>
    %93 = vector.shape_cast %92 : vector<1x9x9xf32> to vector<9x9xf32>
    %c19 = arith.constant 19 : index
    %c0_75 = arith.constant 0 : index
    %c0_76 = arith.constant 0 : index
    %94 = vector.load %arg0[%c19, %c0_75, %c0_76] : memref<24x9x9xf32, #tpu.memory_space<vmem>>, vector<1x9x9xf32>
    %95 = vector.shape_cast %94 : vector<1x9x9xf32> to vector<9x9xf32>
    %cst_77 = arith.constant dense<0.000000e+00> : vector<9x9xf32>
    %96 = tpu.matmul %74, %93, %cst_77 {dimension_numbers = #tpu.dot_dimension_numbers<[1], [0], [0], [1], [0, 0, 1, 1], [], []>, precision = #tpu.contract_precision<fp32>} : vector<9x9xf32>, vector<9x9xf32>, vector<9x9xf32> -> vector<9x9xf32>
    %cst_78 = arith.constant dense<0.000000e+00> : vector<9x9xf32>
    %97 = tpu.matmul %91, %96, %cst_78 {dimension_numbers = #tpu.dot_dimension_numbers<[1], [0], [0], [1], [0, 0, 1, 1], [], []>, precision = #tpu.contract_precision<fp32>} : vector<9x9xf32>, vector<9x9xf32>, vector<9x9xf32> -> vector<9x9xf32>
    %98 = arith.addf %95, %97 : vector<9x9xf32>
    %c3_79 = arith.constant 3 : index
    %c0_80 = arith.constant 0 : index
    %c0_81 = arith.constant 0 : index
    %99 = vector.load %arg0[%c3_79, %c0_80, %c0_81] : memref<24x9x9xf32, #tpu.memory_space<vmem>>, vector<1x9x9xf32>
    %100 = vector.shape_cast %99 : vector<1x9x9xf32> to vector<9x9xf32>
    %c19_82 = arith.constant 19 : index
    %c0_83 = arith.constant 0 : index
    %c0_84 = arith.constant 0 : index
    %101 = vector.load %arg0[%c19_82, %c0_83, %c0_84] : memref<24x9x9xf32, #tpu.memory_space<vmem>>, vector<1x9x9xf32>
    %102 = vector.shape_cast %101 : vector<1x9x9xf32> to vector<9x9xf32>
    %c3_85 = arith.constant 3 : index
    %c0_86 = arith.constant 0 : index
    %c0_87 = arith.constant 0 : index
    %103 = vector.load %arg1[%c3_85, %c0_86, %c0_87] : memref<16x13x9xf32, #tpu.memory_space<vmem>>, vector<1x13x9xf32>
    %104 = vector.shape_cast %103 : vector<1x13x9xf32> to vector<13x9xf32>
    %c11_88 = arith.constant 11 : index
    %c0_89 = arith.constant 0 : index
    %c0_90 = arith.constant 0 : index
    %105 = vector.load %arg1[%c11_88, %c0_89, %c0_90] : memref<16x13x9xf32, #tpu.memory_space<vmem>>, vector<1x13x9xf32>
    %106 = vector.shape_cast %105 : vector<1x13x9xf32> to vector<13x9xf32>
    %cst_91 = arith.constant dense<0.000000e+00> : vector<9x9xf32>
    %107 = tpu.matmul %89, %100, %cst_91 {dimension_numbers = #tpu.dot_dimension_numbers<[1], [0], [0], [1], [0, 0, 1, 1], [], []>, precision = #tpu.contract_precision<fp32>} : vector<9x9xf32>, vector<9x9xf32>, vector<9x9xf32> -> vector<9x9xf32>
    %108 = arith.mulf %102, %89 : vector<9x9xf32>
    %109 = arith.addf %85, %108 : vector<9x9xf32>
    %cst_92 = arith.constant dense<0.000000e+00> : vector<13x9xf32>
    %110 = tpu.matmul %104, %107, %cst_92 {dimension_numbers = #tpu.dot_dimension_numbers<[1], [0], [0], [1], [0, 0, 1, 1], [], []>, precision = #tpu.contract_precision<fp32>} : vector<13x9xf32>, vector<9x9xf32>, vector<13x9xf32> -> vector<13x9xf32>
    %111 = arith.addf %106, %110 : vector<13x9xf32>
    %112 = vector.extract_strided_slice %111 {offsets = [9, 0], sizes = [4, 9], strides = [1, 1]} : vector<13x9xf32> to vector<4x9xf32>
    %113 = vector.extract_strided_slice %111 {offsets = [0, 0], sizes = [9, 9], strides = [1, 1]} : vector<13x9xf32> to vector<9x9xf32>
    %c4_93 = arith.constant 4 : index
    %c0_94 = arith.constant 0 : index
    %c0_95 = arith.constant 0 : index
    %114 = vector.load %arg0[%c4_93, %c0_94, %c0_95] : memref<24x9x9xf32, #tpu.memory_space<vmem>>, vector<1x9x9xf32>
    %115 = vector.shape_cast %114 : vector<1x9x9xf32> to vector<9x9xf32>
    %c12_96 = arith.constant 12 : index
    %c0_97 = arith.constant 0 : index
    %c0_98 = arith.constant 0 : index
    %116 = vector.load %arg0[%c12_96, %c0_97, %c0_98] : memref<24x9x9xf32, #tpu.memory_space<vmem>>, vector<1x9x9xf32>
    %117 = vector.shape_cast %116 : vector<1x9x9xf32> to vector<9x9xf32>
    %c20_99 = arith.constant 20 : index
    %c0_100 = arith.constant 0 : index
    %c0_101 = arith.constant 0 : index
    %118 = vector.load %arg0[%c20_99, %c0_100, %c0_101] : memref<24x9x9xf32, #tpu.memory_space<vmem>>, vector<1x9x9xf32>
    %119 = vector.shape_cast %118 : vector<1x9x9xf32> to vector<9x9xf32>
    %cst_102 = arith.constant dense<0.000000e+00> : vector<9x9xf32>
    %120 = tpu.matmul %98, %117, %cst_102 {dimension_numbers = #tpu.dot_dimension_numbers<[1], [0], [0], [1], [0, 0, 1, 1], [], []>, precision = #tpu.contract_precision<fp32>} : vector<9x9xf32>, vector<9x9xf32>, vector<9x9xf32> -> vector<9x9xf32>
    %cst_103 = arith.constant dense<0.000000e+00> : vector<9x9xf32>
    %121 = tpu.matmul %115, %120, %cst_103 {dimension_numbers = #tpu.dot_dimension_numbers<[1], [0], [0], [1], [0, 0, 1, 1], [], []>, precision = #tpu.contract_precision<fp32>} : vector<9x9xf32>, vector<9x9xf32>, vector<9x9xf32> -> vector<9x9xf32>
    %122 = arith.addf %119, %121 : vector<9x9xf32>
    %c2_104 = arith.constant 2 : index
    %c0_105 = arith.constant 0 : index
    %c0_106 = arith.constant 0 : index
    %123 = vector.load %arg0[%c2_104, %c0_105, %c0_106] : memref<24x9x9xf32, #tpu.memory_space<vmem>>, vector<1x9x9xf32>
    %124 = vector.shape_cast %123 : vector<1x9x9xf32> to vector<9x9xf32>
    %c18_107 = arith.constant 18 : index
    %c0_108 = arith.constant 0 : index
    %c0_109 = arith.constant 0 : index
    %125 = vector.load %arg0[%c18_107, %c0_108, %c0_109] : memref<24x9x9xf32, #tpu.memory_space<vmem>>, vector<1x9x9xf32>
    %126 = vector.shape_cast %125 : vector<1x9x9xf32> to vector<9x9xf32>
    %c2_110 = arith.constant 2 : index
    %c0_111 = arith.constant 0 : index
    %c0_112 = arith.constant 0 : index
    %127 = vector.load %arg1[%c2_110, %c0_111, %c0_112] : memref<16x13x9xf32, #tpu.memory_space<vmem>>, vector<1x13x9xf32>
    %128 = vector.shape_cast %127 : vector<1x13x9xf32> to vector<13x9xf32>
    %c10_113 = arith.constant 10 : index
    %c0_114 = arith.constant 0 : index
    %c0_115 = arith.constant 0 : index
    %129 = vector.load %arg1[%c10_113, %c0_114, %c0_115] : memref<16x13x9xf32, #tpu.memory_space<vmem>>, vector<1x13x9xf32>
    %130 = vector.shape_cast %129 : vector<1x13x9xf32> to vector<13x9xf32>
    %cst_116 = arith.constant dense<0.000000e+00> : vector<9x9xf32>
    %131 = tpu.matmul %113, %124, %cst_116 {dimension_numbers = #tpu.dot_dimension_numbers<[1], [0], [0], [1], [0, 0, 1, 1], [], []>, precision = #tpu.contract_precision<fp32>} : vector<9x9xf32>, vector<9x9xf32>, vector<9x9xf32> -> vector<9x9xf32>
    %132 = arith.mulf %126, %113 : vector<9x9xf32>
    %133 = arith.addf %109, %132 : vector<9x9xf32>
    %cst_117 = arith.constant dense<0.000000e+00> : vector<13x9xf32>
    %134 = tpu.matmul %128, %131, %cst_117 {dimension_numbers = #tpu.dot_dimension_numbers<[1], [0], [0], [1], [0, 0, 1, 1], [], []>, precision = #tpu.contract_precision<fp32>} : vector<13x9xf32>, vector<9x9xf32>, vector<13x9xf32> -> vector<13x9xf32>
    %135 = arith.addf %130, %134 : vector<13x9xf32>
    %136 = vector.extract_strided_slice %135 {offsets = [9, 0], sizes = [4, 9], strides = [1, 1]} : vector<13x9xf32> to vector<4x9xf32>
    %137 = vector.extract_strided_slice %135 {offsets = [0, 0], sizes = [9, 9], strides = [1, 1]} : vector<13x9xf32> to vector<9x9xf32>
    %c5_118 = arith.constant 5 : index
    %c0_119 = arith.constant 0 : index
    %c0_120 = arith.constant 0 : index
    %138 = vector.load %arg0[%c5_118, %c0_119, %c0_120] : memref<24x9x9xf32, #tpu.memory_space<vmem>>, vector<1x9x9xf32>
    %139 = vector.shape_cast %138 : vector<1x9x9xf32> to vector<9x9xf32>
    %c13_121 = arith.constant 13 : index
    %c0_122 = arith.constant 0 : index
    %c0_123 = arith.constant 0 : index
    %140 = vector.load %arg0[%c13_121, %c0_122, %c0_123] : memref<24x9x9xf32, #tpu.memory_space<vmem>>, vector<1x9x9xf32>
    %141 = vector.shape_cast %140 : vector<1x9x9xf32> to vector<9x9xf32>
    %c21_124 = arith.constant 21 : index
    %c0_125 = arith.constant 0 : index
    %c0_126 = arith.constant 0 : index
    %142 = vector.load %arg0[%c21_124, %c0_125, %c0_126] : memref<24x9x9xf32, #tpu.memory_space<vmem>>, vector<1x9x9xf32>
    %143 = vector.shape_cast %142 : vector<1x9x9xf32> to vector<9x9xf32>
    %cst_127 = arith.constant dense<0.000000e+00> : vector<9x9xf32>
    %144 = tpu.matmul %122, %141, %cst_127 {dimension_numbers = #tpu.dot_dimension_numbers<[1], [0], [0], [1], [0, 0, 1, 1], [], []>, precision = #tpu.contract_precision<fp32>} : vector<9x9xf32>, vector<9x9xf32>, vector<9x9xf32> -> vector<9x9xf32>
    %cst_128 = arith.constant dense<0.000000e+00> : vector<9x9xf32>
    %145 = tpu.matmul %139, %144, %cst_128 {dimension_numbers = #tpu.dot_dimension_numbers<[1], [0], [0], [1], [0, 0, 1, 1], [], []>, precision = #tpu.contract_precision<fp32>} : vector<9x9xf32>, vector<9x9xf32>, vector<9x9xf32> -> vector<9x9xf32>
    %146 = arith.addf %143, %145 : vector<9x9xf32>
    %c1_129 = arith.constant 1 : index
    %c0_130 = arith.constant 0 : index
    %c0_131 = arith.constant 0 : index
    %147 = vector.load %arg0[%c1_129, %c0_130, %c0_131] : memref<24x9x9xf32, #tpu.memory_space<vmem>>, vector<1x9x9xf32>
    %148 = vector.shape_cast %147 : vector<1x9x9xf32> to vector<9x9xf32>
    %c17_132 = arith.constant 17 : index
    %c0_133 = arith.constant 0 : index
    %c0_134 = arith.constant 0 : index
    %149 = vector.load %arg0[%c17_132, %c0_133, %c0_134] : memref<24x9x9xf32, #tpu.memory_space<vmem>>, vector<1x9x9xf32>
    %150 = vector.shape_cast %149 : vector<1x9x9xf32> to vector<9x9xf32>
    %c1_135 = arith.constant 1 : index
    %c0_136 = arith.constant 0 : index
    %c0_137 = arith.constant 0 : index
    %151 = vector.load %arg1[%c1_135, %c0_136, %c0_137] : memref<16x13x9xf32, #tpu.memory_space<vmem>>, vector<1x13x9xf32>
    %152 = vector.shape_cast %151 : vector<1x13x9xf32> to vector<13x9xf32>
    %c9_138 = arith.constant 9 : index
    %c0_139 = arith.constant 0 : index
    %c0_140 = arith.constant 0 : index
    %153 = vector.load %arg1[%c9_138, %c0_139, %c0_140] : memref<16x13x9xf32, #tpu.memory_space<vmem>>, vector<1x13x9xf32>
    %154 = vector.shape_cast %153 : vector<1x13x9xf32> to vector<13x9xf32>
    %cst_141 = arith.constant dense<0.000000e+00> : vector<9x9xf32>
    %155 = tpu.matmul %137, %148, %cst_141 {dimension_numbers = #tpu.dot_dimension_numbers<[1], [0], [0], [1], [0, 0, 1, 1], [], []>, precision = #tpu.contract_precision<fp32>} : vector<9x9xf32>, vector<9x9xf32>, vector<9x9xf32> -> vector<9x9xf32>
    %156 = arith.mulf %150, %137 : vector<9x9xf32>
    %157 = arith.addf %133, %156 : vector<9x9xf32>
    %cst_142 = arith.constant dense<0.000000e+00> : vector<13x9xf32>
    %158 = tpu.matmul %152, %155, %cst_142 {dimension_numbers = #tpu.dot_dimension_numbers<[1], [0], [0], [1], [0, 0, 1, 1], [], []>, precision = #tpu.contract_precision<fp32>} : vector<13x9xf32>, vector<9x9xf32>, vector<13x9xf32> -> vector<13x9xf32>
    %159 = arith.addf %154, %158 : vector<13x9xf32>
    %160 = vector.extract_strided_slice %159 {offsets = [9, 0], sizes = [4, 9], strides = [1, 1]} : vector<13x9xf32> to vector<4x9xf32>
    %161 = vector.extract_strided_slice %159 {offsets = [0, 0], sizes = [9, 9], strides = [1, 1]} : vector<13x9xf32> to vector<9x9xf32>
    %c6_143 = arith.constant 6 : index
    %c0_144 = arith.constant 0 : index
    %c0_145 = arith.constant 0 : index
    %162 = vector.load %arg0[%c6_143, %c0_144, %c0_145] : memref<24x9x9xf32, #tpu.memory_space<vmem>>, vector<1x9x9xf32>
    %163 = vector.shape_cast %162 : vector<1x9x9xf32> to vector<9x9xf32>
    %c14_146 = arith.constant 14 : index
    %c0_147 = arith.constant 0 : index
    %c0_148 = arith.constant 0 : index
    %164 = vector.load %arg0[%c14_146, %c0_147, %c0_148] : memref<24x9x9xf32, #tpu.memory_space<vmem>>, vector<1x9x9xf32>
    %165 = vector.shape_cast %164 : vector<1x9x9xf32> to vector<9x9xf32>
    %c22_149 = arith.constant 22 : index
    %c0_150 = arith.constant 0 : index
    %c0_151 = arith.constant 0 : index
    %166 = vector.load %arg0[%c22_149, %c0_150, %c0_151] : memref<24x9x9xf32, #tpu.memory_space<vmem>>, vector<1x9x9xf32>
    %167 = vector.shape_cast %166 : vector<1x9x9xf32> to vector<9x9xf32>
    %cst_152 = arith.constant dense<0.000000e+00> : vector<9x9xf32>
    %168 = tpu.matmul %146, %165, %cst_152 {dimension_numbers = #tpu.dot_dimension_numbers<[1], [0], [0], [1], [0, 0, 1, 1], [], []>, precision = #tpu.contract_precision<fp32>} : vector<9x9xf32>, vector<9x9xf32>, vector<9x9xf32> -> vector<9x9xf32>
    %cst_153 = arith.constant dense<0.000000e+00> : vector<9x9xf32>
    %169 = tpu.matmul %163, %168, %cst_153 {dimension_numbers = #tpu.dot_dimension_numbers<[1], [0], [0], [1], [0, 0, 1, 1], [], []>, precision = #tpu.contract_precision<fp32>} : vector<9x9xf32>, vector<9x9xf32>, vector<9x9xf32> -> vector<9x9xf32>
    %170 = arith.addf %167, %169 : vector<9x9xf32>
    %c0_154 = arith.constant 0 : index
    %c0_155 = arith.constant 0 : index
    %c0_156 = arith.constant 0 : index
    %171 = vector.load %arg0[%c0_154, %c0_155, %c0_156] : memref<24x9x9xf32, #tpu.memory_space<vmem>>, vector<1x9x9xf32>
    %172 = vector.shape_cast %171 : vector<1x9x9xf32> to vector<9x9xf32>
    %c16_157 = arith.constant 16 : index
    %c0_158 = arith.constant 0 : index
    %c0_159 = arith.constant 0 : index
    %173 = vector.load %arg0[%c16_157, %c0_158, %c0_159] : memref<24x9x9xf32, #tpu.memory_space<vmem>>, vector<1x9x9xf32>
    %174 = vector.shape_cast %173 : vector<1x9x9xf32> to vector<9x9xf32>
    %c0_160 = arith.constant 0 : index
    %c0_161 = arith.constant 0 : index
    %c0_162 = arith.constant 0 : index
    %175 = vector.load %arg1[%c0_160, %c0_161, %c0_162] : memref<16x13x9xf32, #tpu.memory_space<vmem>>, vector<1x13x9xf32>
    %176 = vector.shape_cast %175 : vector<1x13x9xf32> to vector<13x9xf32>
    %c8_163 = arith.constant 8 : index
    %c0_164 = arith.constant 0 : index
    %c0_165 = arith.constant 0 : index
    %177 = vector.load %arg1[%c8_163, %c0_164, %c0_165] : memref<16x13x9xf32, #tpu.memory_space<vmem>>, vector<1x13x9xf32>
    %178 = vector.shape_cast %177 : vector<1x13x9xf32> to vector<13x9xf32>
    %cst_166 = arith.constant dense<0.000000e+00> : vector<9x9xf32>
    %179 = tpu.matmul %161, %172, %cst_166 {dimension_numbers = #tpu.dot_dimension_numbers<[1], [0], [0], [1], [0, 0, 1, 1], [], []>, precision = #tpu.contract_precision<fp32>} : vector<9x9xf32>, vector<9x9xf32>, vector<9x9xf32> -> vector<9x9xf32>
    %180 = arith.mulf %174, %161 : vector<9x9xf32>
    %181 = arith.addf %157, %180 : vector<9x9xf32>
    %cst_167 = arith.constant dense<0.000000e+00> : vector<13x9xf32>
    %182 = tpu.matmul %176, %179, %cst_167 {dimension_numbers = #tpu.dot_dimension_numbers<[1], [0], [0], [1], [0, 0, 1, 1], [], []>, precision = #tpu.contract_precision<fp32>} : vector<13x9xf32>, vector<9x9xf32>, vector<13x9xf32> -> vector<13x9xf32>
    %183 = arith.addf %178, %182 : vector<13x9xf32>
    %184 = vector.extract_strided_slice %183 {offsets = [9, 0], sizes = [4, 9], strides = [1, 1]} : vector<13x9xf32> to vector<4x9xf32>
    %185 = vector.extract_strided_slice %183 {offsets = [0, 0], sizes = [9, 9], strides = [1, 1]} : vector<13x9xf32> to vector<9x9xf32>
    %c0_168 = arith.constant 0 : index
    %c0_169 = arith.constant 0 : index
    %186 = vector.load %arg2[%c0_168, %c0_169] : memref<9x9xf32, #tpu.memory_space<vmem>>, vector<9x9xf32>
    %187 = arith.mulf %186, %185 : vector<9x9xf32>
    %188 = arith.addf %187, %181 : vector<9x9xf32>
    %189 = vector.shape_cast %188 : vector<9x9xf32> to vector<1x9x9xf32>
    %cst_170 = arith.constant dense<0.000000e+00> : vector<1xf32>
    %190 = vector.multi_reduction <add>, %189, %cst_170 [1, 2] : vector<1x9x9xf32> to vector<1xf32>
    %191 = vector.shape_cast %190 : vector<1xf32> to vector<1x1x1xf32>
    %192 = vector.extract %191[0, 0, 0] : f32 from vector<1x1x1xf32>
    %cst_171 = arith.constant -5.000000e-01 : f32
    %193 = arith.mulf %cst_171, %192 : f32
    %c0_172 = arith.constant 0 : index
    %c0_173 = arith.constant 0 : index
    %194 = memref.load %arg3[%c0_172, %c0_173] : memref<1x1xf32, #tpu.memory_space<smem>>
    memref.store %193, %arg3[%c0_172, %c0_173] : memref<1x1xf32, #tpu.memory_space<smem>>
    %cst_174 = arith.constant dense<0.000000e+00> : vector<4x9xf32>
    %195 = tpu.matmul %184, %2, %cst_174 {dimension_numbers = #tpu.dot_dimension_numbers<[1], [0], [0], [1], [0, 0, 1, 1], [], []>, precision = #tpu.contract_precision<fp32>} : vector<4x9xf32>, vector<9x9xf32>, vector<4x9xf32> -> vector<4x9xf32>
    %cst_175 = arith.constant 0.000000e+00 : f32
    %196 = vector.broadcast %cst_175 : f32 to vector<4x9xf32>
    %197 = arith.subf %196, %195 : vector<4x9xf32>
    %cst_176 = arith.constant dense<0.000000e+00> : vector<4x9xf32>
    %198 = tpu.matmul %160, %26, %cst_176 {dimension_numbers = #tpu.dot_dimension_numbers<[1], [0], [0], [1], [0, 0, 1, 1], [], []>, precision = #tpu.contract_precision<fp32>} : vector<4x9xf32>, vector<9x9xf32>, vector<4x9xf32> -> vector<4x9xf32>
    %cst_177 = arith.constant 0.000000e+00 : f32
    %199 = vector.broadcast %cst_177 : f32 to vector<4x9xf32>
    %200 = arith.subf %199, %198 : vector<4x9xf32>
    %cst_178 = arith.constant dense<0.000000e+00> : vector<4x9xf32>
    %201 = tpu.matmul %136, %50, %cst_178 {dimension_numbers = #tpu.dot_dimension_numbers<[1], [0], [0], [1], [0, 0, 1, 1], [], []>, precision = #tpu.contract_precision<fp32>} : vector<4x9xf32>, vector<9x9xf32>, vector<4x9xf32> -> vector<4x9xf32>
    %cst_179 = arith.constant 0.000000e+00 : f32
    %202 = vector.broadcast %cst_179 : f32 to vector<4x9xf32>
    %203 = arith.subf %202, %201 : vector<4x9xf32>
    %cst_180 = arith.constant dense<0.000000e+00> : vector<4x9xf32>
    %204 = tpu.matmul %112, %74, %cst_180 {dimension_numbers = #tpu.dot_dimension_numbers<[1], [0], [0], [1], [0, 0, 1, 1], [], []>, precision = #tpu.contract_precision<fp32>} : vector<4x9xf32>, vector<9x9xf32>, vector<4x9xf32> -> vector<4x9xf32>
    %cst_181 = arith.constant 0.000000e+00 : f32
    %205 = vector.broadcast %cst_181 : f32 to vector<4x9xf32>
    %206 = arith.subf %205, %204 : vector<4x9xf32>
    %cst_182 = arith.constant dense<0.000000e+00> : vector<4x9xf32>
    %207 = tpu.matmul %88, %98, %cst_182 {dimension_numbers = #tpu.dot_dimension_numbers<[1], [0], [0], [1], [0, 0, 1, 1], [], []>, precision = #tpu.contract_precision<fp32>} : vector<4x9xf32>, vector<9x9xf32>, vector<4x9xf32> -> vector<4x9xf32>
    %cst_183 = arith.constant 0.000000e+00 : f32
    %208 = vector.broadcast %cst_183 : f32 to vector<4x9xf32>
    %209 = arith.subf %208, %207 : vector<4x9xf32>
    %cst_184 = arith.constant dense<0.000000e+00> : vector<4x9xf32>
    %210 = tpu.matmul %64, %122, %cst_184 {dimension_numbers = #tpu.dot_dimension_numbers<[1], [0], [0], [1], [0, 0, 1, 1], [], []>, precision = #tpu.contract_precision<fp32>} : vector<4x9xf32>, vector<9x9xf32>, vector<4x9xf32> -> vector<4x9xf32>
    %cst_185 = arith.constant 0.000000e+00 : f32
    %211 = vector.broadcast %cst_185 : f32 to vector<4x9xf32>
    %212 = arith.subf %211, %210 : vector<4x9xf32>
    %cst_186 = arith.constant dense<0.000000e+00> : vector<4x9xf32>
    %213 = tpu.matmul %40, %146, %cst_186 {dimension_numbers = #tpu.dot_dimension_numbers<[1], [0], [0], [1], [0, 0, 1, 1], [], []>, precision = #tpu.contract_precision<fp32>} : vector<4x9xf32>, vector<9x9xf32>, vector<4x9xf32> -> vector<4x9xf32>
    %cst_187 = arith.constant 0.000000e+00 : f32
    %214 = vector.broadcast %cst_187 : f32 to vector<4x9xf32>
    %215 = arith.subf %214, %213 : vector<4x9xf32>
    %cst_188 = arith.constant dense<0.000000e+00> : vector<4x9xf32>
    %216 = tpu.matmul %16, %170, %cst_188 {dimension_numbers = #tpu.dot_dimension_numbers<[1], [0], [0], [1], [0, 0, 1, 1], [], []>, precision = #tpu.contract_precision<fp32>} : vector<4x9xf32>, vector<9x9xf32>, vector<4x9xf32> -> vector<4x9xf32>
    %cst_189 = arith.constant 0.000000e+00 : f32
    %217 = vector.broadcast %cst_189 : f32 to vector<4x9xf32>
    %218 = arith.subf %217, %216 : vector<4x9xf32>
    %219 = tpu.concatenate %197, %200, %203, %206, %209, %212, %215, %218 in 1 : vector<4x9xf32>, vector<4x9xf32>, vector<4x9xf32>, vector<4x9xf32>, vector<4x9xf32>, vector<4x9xf32>, vector<4x9xf32>, vector<4x9xf32> -> vector<4x72xf32>
    %c0_190 = arith.constant 0 : index
    %c0_191 = arith.constant 0 : index
    %220 = vector.load %arg4[%c0_190, %c0_191] : memref<4x72xf32, #tpu.memory_space<vmem>>, vector<4x72xf32>
    tpu.vector_store %arg4[%c0_190, %c0_191], %219 {strides = array<i32>} : memref<4x72xf32, #tpu.memory_space<vmem>>, vector<4x72xf32>,
    return
  }
}

</mosaic_0001>

<bundles_post_ra>
// kernel: analytic_svg.1
= control target key start
LH: loop header
LB: loop body
LE: loop exit
PB: predicated region body
PF: predicated region fallthrough
CT: control target
= control target key end

     0   :  { %vm35_vm0 = vcmask 1040384   ;;  %v21901_v4 = vmov 0.0   ;;  %s24305_s0 = inlined_call_operand.vmem [shape: f32[24,9,9], index: 0, kind: input, shape index: {}]   ;;  %s24306_s1 = inlined_call_operand.vmem [shape: f32[16,13,9], index: 1, kind: input, shape index: {}]   ;;  %s24307_s2 = inlined_call_operand.vmem [shape: f32[9,9], index: 2, kind: input, shape index: {}]   ;;  %s24308_s3 = inlined_call_operand.hbm [shape: f32[1,1], index: 3, kind: output, shape index: {0}]   ;;  %s24309_s4 = inlined_call_operand.vmem [shape: f32[4,72], index: 4, kind: output, shape index: {1}]  }
   0x1   :  { %v19321_v0 = vld [vmem:[%s24305_s0 + $0x78] sm:$0x1]  ;;  %v19320_v1 = vld [vmem:[%s24305_s0 + $0x70] sm:$0xff]  ;;  %20262 = vmatprep.mubr.f32.mxu0 %v21901_v4  ;;  %20269 = vmatprep.mubr.f32.mxu1 %v21901_v4 }
   0x2   :  { %v37_v2 = vsel %vm35_vm0, %v19321_v0, 0  ;;  %v71_v3 = vand.u32 4294901760, %v19320_v1 }
   0x3   :  { %10 = vsyncpa [#allocation3], 0  ;;  %v68_v5 = vand.u32 4294901760, %v37_v2  ;;  %v19324_v14 = vld [vmem:[%s24306_s1 + $0x70] sm:$0xff]  ;;  %vm31_vm1 = vcmask 72704   ;;  %v17_v46 = vld [vmem:[%s24307_s2] sm:$0xff] }
   0x4   :  { %v163_v6 = vsub.f32 %v19320_v1, %v71_v3  ;;  %v546_v15 = vsel %vm31_vm1, %v19324_v14, 0  ;;  %v19325_v22 = vld [vmem:[%s24306_s1 + $0x78] sm:$0x1f]  ;;  %v18_v49 = vld [vmem:[%s24307_s2 + $0x8] sm:$0x1]  ;;  %v1067_v54 = vsel %vm31_vm1, %v17_v46, 0 }
   0x5   :  { %20258 = vmatprep.subr.mxu0 %v68_v5  ;;  %v156_v7 = vsub.f32 %v37_v2, %v68_v5  ;;  %v21959_v16 = vand.u32 4294901760, %v546_v15  ;;  %v549_v25 = vsel %vm31_vm1, %v19325_v22, 0  ;;  %v19329_v52 = vld [vmem:[%s24305_s0 + $0x88] sm:$0x1]  ;;  %v1070_v56 = vsel %vm31_vm1, %v18_v49, 0  ;;  %v19328_v63 = vld [vmem:[%s24305_s0 + $0x80] sm:$0xff] }
   0x6   :  { %20259 = vmatpush3.msra.mxu0 %v68_v5  ;;  %v164_v8 = vand.u32 4294901760, %v163_v6  ;;  %v21973_v26 = vand.u32 4294901760, %v549_v25  ;;  %v1073_v59 = vsel %vm35_vm0, %v19329_v52, 0  ;;  %v21998_v61 = vand.u32 4294901760, %v1067_v54  ;;  %s21903_s16 = smov 9   ;;  %s21904_s17 = smov 18  }
   0x7   :  { %20260 = vmatprep.subr.mxu0 %v71_v3  ;;  %v157_v9 = vand.u32 4294901760, %v156_v7  ;;  %v21962_v17 = vsub.f32 %v546_v15, %v21959_v16  ;;  %v22004_v0 = vand.u32 4294901760, %v1070_v56  ;;  %v22007_v2 = vand.u32 4294901760, %v1073_v59  ;;  %s21905_s18 = smov 27   ;;  %s21906_s19 = smov 36  }
   0x8   :  { %20261 = vmatpush3.msra.mxu0 %v71_v3  ;;  %v165_v10 = vsub.f32 %v163_v6, %v164_v8  ;;  %v21976_v33 = vsub.f32 %v549_v25, %v21973_v26  ;;  %vm21902_vm2 = vmmov 0   ;;  %vm15523_vm3 = vcmask 65536   ;;  %s21907_s20 = smov 45   ;;  %s21908_s21 = smov 54  }
   0x9   :  { %20263 = vmatmul.mubr.f32.vlgmr.msra.gmra.mxu0 %v21901_v4  ;;  %v158_v11 = vsub.f32 %v156_v7, %v157_v9  ;;  %20272 = vmatprep.subr.mxu0 %v156_v7  ;;  %v623_v18 = vand.u32 4294901760, %v21962_v17  ;;  %s21909_s22 = smov [#allocation2]   ;;  %s21910_s25 = smov 63   ;;  %vm19289_vm4 = vcmask 146432   ;;  %vm19291_vm5 = vcmask 220160  }
   0xa   :  { %20273 = vmatpush3.msra.mxu0 %v156_v7  ;;  %20276 = vmatprep.mubr.f32.mxu0 %v21901_v4  ;;  %v166_v13 = vand.u32 4294901760, %v165_v10  ;;  %v633_v41 = vand.u32 4294901760, %v21976_v33  ;;  %v22013_v7 = vsub.f32 %v1067_v54, %v21998_v61  ;;  %vm19293_vm6 = vcmask 293888  }
   0xb   :  { %v159_v12 = vand.u32 4294901760, %v158_v11  ;;  %20274 = vmatprep.subr.mxu0 %v163_v6  ;;  %v624_v19 = vsub.f32 %v21962_v17, %v623_v18  ;;  %v1192_v11 = vsub.f32 %v1073_v59, %v22007_v2  ;;  %vm19295_vm7 = vcmask 367616  }
   0xc   :  { %20275 = vmatpush3.msra.mxu0 %v163_v6  ;;  %v634_v48 = vsub.f32 %v21976_v33, %v633_v41  ;;  %v22010_v6 = vand.u32 4294901760, %v19328_v63  ;;  %vm19297_vm8 = vcmask 441344   ;;  %vm19299_vm9 = vcmask 515072  }
   0xd   :  { %20265 = vmatprep.subr.mxu1 %v159_v12  ;;  %20277 = vmatmul.mubr.f32.vlgmr.msra.gmra.mxu0 %v21901_v4  ;;  %v625_v20 = vand.u32 4294901760, %v624_v19  ;;  %v1193_v15 = vand.u32 4294901760, %v1192_v11  ;;  %vm19301_vm10 = vcmask 584704  }
   0xe   :  { %20266 = vmatpush3.msra.mxu1 %v159_v12  ;;  %20286 = vmatprep.subr.mxu0 %v157_v9  ;;  %v635_v58 = vand.u32 4294901760, %v634_v48  ;;  %v1144_v12 = vand.u32 4294901760, %v22013_v7 }
   0xf   :  { %20267 = vmatprep.subr.mxu1 %v166_v13  ;;  %20287 = vmatpush3.msra.mxu0 %v157_v9  ;;  %v22016_v9 = vsub.f32 %v1070_v56, %v22004_v0  ;;  %v1194_v22 = vsub.f32 %v1192_v11, %v1193_v15 }
  0x10   :  { %20268 = vmatpush3.msra.mxu1 %v166_v13  ;;  %20288 = vmatprep.subr.mxu0 %v164_v8  ;;  %v1199_v13 = vsub.f32 %v19328_v63, %v22010_v6  ;;  %v1145_v19 = vsub.f32 %v22013_v7, %v1144_v12 }
  0x11   :  { %20270 = vmatmul.mubr.f32.vlgmr.msra.gmra.mxu1 %v21901_v4  ;;  %20279 = vmatprep.subr.mxu1 %v68_v5  ;;  %v1154_v14 = vand.u32 4294901760, %v22016_v9 }
  0x12   :  { %20280 = vmatpush3.msra.mxu1 %v68_v5  ;;  %20283 = vmatprep.mubr.f32.mxu1 %v21901_v4 }
  0x13   :  { %20281 = vmatprep.subr.mxu1 %v71_v3  ;;  %20289 = vmatpush3.msra.mxu0 %v164_v8 }
  0x14   :  { %20282 = vmatpush3.msra.mxu1 %v71_v3  ;;  %20290 = vmatprep.mubr.f32.mxu0 %v21901_v4 }
  0x15   :  { %20284 = vmatmul.mubr.f32.vlgmr.msra.gmra.mxu1 %v21901_v4  ;;  %20291 = vmatmul.mubr.f32.vlgmr.msra.gmra.mxu0 %v21901_v4 }
  0x16   :  { %20293 = vmatprep.subr.mxu1 %v68_v5  ;;  %20297 = vmatprep.mubr.f32.mxu1 %v21901_v4 }
  0x17   :  { %20294 = vmatpush3.msra.mxu1 %v68_v5  ;;  %20304 = vmatprep.mubr.f32.mxu0 %v625_v20  ;;  %v1200_v20 = vand.u32 4294901760, %v1199_v13 }
  0x18   :  { %20295 = vmatprep.subr.mxu1 %v71_v3 }
  0x19   :  { %20296 = vmatpush3.msra.mxu1 %v71_v3 }
  0x1a   :  { %20298 = vmatmul.mubr.f32.vlgmr.msra.gmra.mxu1 %v21901_v4 }
  0x1b   :  { %20311 = vmatprep.mubr.f32.mxu1 %v21959_v16 }
  0xc9   :  { %v20264_v21 = vpop.f32.mrf.mxu0 }
  0xcb   :  { %v112_v23 = vpop.f32.mrf.mxu0 }
  0xcd   :  { %v20278_v24 = vpop.f32.mrf.mxu0 }
  0xcf   :  { %v285_v28 = vpop.f32.mrf.mxu0 }
  0xd1   :  { %v20271_v27 = vpop.f32.mrf.mxu1 }
  0xd2   :  { %v210_v29 = vadd.f32 %v20271_v27, %v20264_v21  ;;  %v1155_v21 = vsub.f32 %v22016_v9, %v1154_v14 }
  0xd3   :  { %v203_v30 = vpop.f32.mrf.mxu1 }
  0xd4   :  { %v293_v31 = vadd.f32 %v20278_v24, %v210_v29  ;;  %v204_v32 = vadd.f32 %v203_v30, %v112_v23  ;;  %v1156_v23 = vand.u32 4294901760, %v1155_v21  ;;  %v1195_v24 = vand.u32 4294901760, %v1194_v22 }
  0xd5   :  { %v20285_v34 = vpop.f32.mrf.mxu1  ;;  %v20292_v35 = vpop.f32.mrf.mxu0 }
  0xd6   :  { %v286_v36 = vadd.f32 %v285_v28, %v204_v32  ;;  %v376_v37 = vadd.f32 %v20285_v34, %v293_v31 }
  0xd7   :  { %v367_v38 = vpop.f32.mrf.mxu1  ;;  %v452_v42 = vpop.f32.mrf.mxu0 }
  0xd8   :  { %v459_v39 = vadd.f32 %v20292_v35, %v376_v37  ;;  %v368_v40 = vadd.f32 %v367_v38, %v286_v36 }
  0xda   :  { %v453_v43 = vadd.f32 %v452_v42, %v368_v40  ;;  %v20299_v44 = vpop.f32.mrf.mxu1 }
  0xdb   :  { %v538_v45 = vadd.f32 %v20299_v44, %v459_v39 }
  0xdc   :  { %v531_v47 = vpop.f32.mrf.mxu1 }
  0xdd   :  { %v552_v50 = vsel %vm35_vm0, %v538_v45, 0  ;;  %v532_v51 = vadd.f32 %v531_v47, %v453_v43  ;;  %v1059_v47 = vld [vmem:[%s24305_s0 + $0x8] sm:$0x1] }
  0xde   :  { %v583_v53 = vand.u32 4294901760, %v552_v50  ;;  %v1581_v52 = vsel %vm31_vm1, %v1059_v47, 0  ;;  %v19332_v47 = vld [vmem:[%s24305_s0 + $0x60] sm:$0xff] }
  0xdf   :  { %v21993_v55 = vand.u32 4294901760, %v532_v51 }
  0xe0   :  { %v671_v57 = vsub.f32 %v552_v50, %v583_v53  ;;  %20300 = vmatprep.subr.mxu0 %v583_v53 }
  0xe1   :  { %v678_v60 = vsub.f32 %v532_v51, %v21993_v55  ;;  %20301 = vmatpush3.msra.mxu0 %v583_v53 }
  0xe2   :  { %20302 = vmatprep.subr.mxu0 %v21993_v55  ;;  %v672_v62 = vand.u32 4294901760, %v671_v57 }
  0xe3   :  { %20303 = vmatpush3.msra.mxu0 %v21993_v55  ;;  %v679_v1 = vand.u32 4294901760, %v678_v60 }
  0xe4   :  { %20314 = vmatprep.subr.mxu0 %v671_v57  ;;  %20305 = vmatmul.mubr.f32.vlgmr.msra.gmra.mxu0 %v635_v58  ;;  %v673_v3 = vsub.f32 %v671_v57, %v672_v62  ;;  %v22076_v58 = vand.u32 4294901760, %v1581_v52 }
  0xe5   :  { %20315 = vmatpush3.msra.mxu0 %v671_v57  ;;  %20318 = vmatprep.mubr.f32.mxu0 %v21962_v17  ;;  %v680_v5 = vsub.f32 %v678_v60, %v679_v1  ;;  %v1146_v17 = vand.u32 4294901760, %v1145_v19 }
  0xe6   :  { %20316 = vmatprep.subr.mxu0 %v678_v60  ;;  %v674_v8 = vand.u32 4294901760, %v673_v3  ;;  %v22082_v3 = vsub.f32 %v1581_v52, %v22076_v58 }
  0xe7   :  { %20317 = vmatpush3.msra.mxu0 %v678_v60  ;;  %v681_v10 = vand.u32 4294901760, %v680_v5 }
  0xe8   :  { %20307 = vmatprep.subr.mxu1 %v674_v8  ;;  %20328 = vmatprep.subr.mxu0 %v672_v62 }
  0xe9   :  { %20308 = vmatpush3.msra.mxu1 %v674_v8  ;;  %20319 = vmatmul.mubr.f32.vlgmr.msra.gmra.mxu0 %v21976_v33 }
  0xea   :  { %20329 = vmatpush3.msra.mxu0 %v672_v62  ;;  %20309 = vmatprep.subr.mxu1 %v681_v10 }
  0xeb   :  { %20330 = vmatprep.subr.mxu0 %v679_v1  ;;  %20310 = vmatpush3.msra.mxu1 %v681_v10 }
  0xec   :  { %20331 = vmatpush3.msra.mxu0 %v679_v1  ;;  %20312 = vmatmul.mubr.f32.vlgmr.msra.gmra.mxu1 %v21973_v26  ;;  %v19326_v1 = vld [vmem:[%s24306_s1 + $0xf0] sm:$0xff] }
  0xed   :  { %20321 = vmatprep.subr.mxu1 %v583_v53  ;;  %20325 = vmatprep.mubr.f32.mxu1 %v623_v18  ;;  %v1201_v18 = vsub.f32 %v1199_v13, %v1200_v20 }
  0xee   :  { %20322 = vmatpush3.msra.mxu1 %v583_v53  ;;  %20332 = vmatprep.mubr.f32.mxu0 %v21959_v16 }
  0xef   :  { %20323 = vmatprep.subr.mxu1 %v21993_v55  ;;  %20333 = vmatmul.mubr.f32.vlgmr.msra.gmra.mxu0 %v21973_v26  ;;  %v1202_v25 = vand.u32 4294901760, %v1201_v18 }
  0xf0   :  { %20324 = vmatpush3.msra.mxu1 %v21993_v55  ;;  %20342 = vmatprep.subr.mxu0 %v22007_v2 }
  0xf1   :  { %20326 = vmatmul.mubr.f32.vlgmr.msra.gmra.mxu1 %v633_v41  ;;  %20335 = vmatprep.subr.mxu1 %v583_v53 }
  0xf2   :  { %20336 = vmatpush3.msra.mxu1 %v583_v53  ;;  %20343 = vmatpush3.msra.mxu0 %v22007_v2 }
  0xf3   :  { %20337 = vmatprep.subr.mxu1 %v21993_v55  ;;  %20344 = vmatprep.subr.mxu0 %v22010_v6 }
  0xf4   :  { %20338 = vmatpush3.msra.mxu1 %v21993_v55  ;;  %20339 = vmatprep.mubr.f32.mxu1 %v21959_v16  ;;  %v1058_v16 = vld [vmem:[%s24305_s0] sm:$0xff] }
  0xf5   :  { %20345 = vmatpush3.msra.mxu0 %v22010_v6  ;;  %20346 = vmatprep.mubr.f32.mxu0 %v1146_v17 }
  0xf6   :  { %20340 = vmatmul.mubr.f32.vlgmr.msra.gmra.mxu1 %v21973_v26  ;;  %20347 = vmatmul.mubr.f32.vlgmr.msra.gmra.mxu0 %v1156_v23  ;;  %v1578_v26 = vsel %vm31_vm1, %v1058_v16, 0 }
  0xf7   :  { %20349 = vmatprep.subr.mxu1 %v1195_v24  ;;  %20356 = vmatprep.subr.mxu0 %v1192_v11  ;;  %v22062_v27 = vand.u32 4294901760, %v1578_v26 }
  0xf8   :  { %20350 = vmatpush3.msra.mxu1 %v1195_v24  ;;  %20357 = vmatpush3.msra.mxu0 %v1192_v11  ;;  %v19327_v11 = vld [vmem:[%s24306_s1 + $0xf8] sm:$0x1f] }
  0xf9   :  { %20351 = vmatprep.subr.mxu1 %v1202_v25  ;;  %20358 = vmatprep.subr.mxu0 %v1199_v13  ;;  %v22065_v28 = vsub.f32 %v1578_v26, %v22062_v27 }
  0xfa   :  { %20352 = vmatpush3.msra.mxu1 %v1202_v25  ;;  %20353 = vmatprep.mubr.f32.mxu1 %v21998_v61 }
  0xfb   :  { %20359 = vmatpush3.msra.mxu0 %v1199_v13  ;;  %20360 = vmatprep.mubr.f32.mxu0 %v22013_v7  ;;  %v1655_v29 = vand.u32 4294901760, %v22065_v28 }
  0xfc   :  { %20354 = vmatmul.mubr.f32.vlgmr.msra.gmra.mxu1 %v22004_v0  ;;  %20361 = vmatmul.mubr.f32.vlgmr.msra.gmra.mxu0 %v22016_v9 }
  0xfd   :  { %20363 = vmatprep.subr.mxu1 %v22007_v2  ;;  %20370 = vmatprep.subr.mxu0 %v1193_v15  ;;  %v1656_v30 = vsub.f32 %v22065_v28, %v1655_v29 }
  0xfe   :  { %20364 = vmatpush3.msra.mxu1 %v22007_v2  ;;  %20371 = vmatpush3.msra.mxu0 %v1193_v15 }
  0xff   :  { %20365 = vmatprep.subr.mxu1 %v22010_v6  ;;  %20372 = vmatprep.subr.mxu0 %v1200_v20  ;;  %v1657_v31 = vand.u32 4294901760, %v1656_v30 }
 0x100   :  { %20366 = vmatpush3.msra.mxu1 %v22010_v6  ;;  %20367 = vmatprep.mubr.f32.mxu1 %v1144_v12 }
 0x101   :  { %20373 = vmatpush3.msra.mxu0 %v1200_v20  ;;  %20374 = vmatprep.mubr.f32.mxu0 %v21998_v61 }
 0x102   :  { %20368 = vmatmul.mubr.f32.vlgmr.msra.gmra.mxu1 %v1154_v14  ;;  %20375 = vmatmul.mubr.f32.vlgmr.msra.gmra.mxu0 %v22004_v0  ;;  %v1665_v14 = vand.u32 4294901760, %v22082_v3 }
 0x103   :  { %20377 = vmatprep.subr.mxu1 %v22007_v2  ;;  %20381 = vmatprep.mubr.f32.mxu1 %v21998_v61 }
 0x104   :  { %20378 = vmatpush3.msra.mxu1 %v22007_v2  ;;  %20388 = vmatprep.mubr.f32.mxu0 %v1657_v31  ;;  %v1666_v23 = vsub.f32 %v22082_v3, %v1665_v14 }
 0x105   :  { %20379 = vmatprep.subr.mxu1 %v22010_v6 }
 0x106   :  { %20380 = vmatpush3.msra.mxu1 %v22010_v6 }
 0x107   :  { %20382 = vmatmul.mubr.f32.vlgmr.msra.gmra.mxu1 %v22004_v0 }
 0x108   :  { %20395 = vmatprep.mubr.f32.mxu1 %v22062_v27 }
 0x1a4   :  { %v20306_v32 = vpop.f32.mrf.mxu0 }
 0x1a6   :  { %v627_v33 = vpop.f32.mrf.mxu0 }
 0x1a9   :  { %v20320_v34 = vpop.f32.mrf.mxu0 }
 0x1ab   :  { %v800_v35 = vpop.f32.mrf.mxu0 }
 0x1ac   :  { %v20313_v36 = vpop.f32.mrf.mxu1 }
 0x1ad   :  { %v725_v43 = vadd.f32 %v20313_v36, %v20306_v32  ;;  %v19333_v32 = vld [vmem:[%s24305_s0 + $0x68] sm:$0x1] }
 0x1ae   :  { %v718_v37 = vpop.f32.mrf.mxu1 }
 0x1af   :  { %v20334_v38 = vpop.f32.mrf.mxu0  ;;  %v719_v39 = vadd.f32 %v718_v37, %v627_v33  ;;  %v808_v48 = vadd.f32 %v20320_v34, %v725_v43  ;;  %v1667_v34 = vand.u32 4294901760, %v1666_v23 }
 0x1b1   :  { %v20327_v40 = vpop.f32.mrf.mxu1  ;;  %v967_v41 = vpop.f32.mrf.mxu0  ;;  %v801_v44 = vadd.f32 %v800_v35, %v719_v39  ;;  %v2109_v39 = vsel %vm35_vm0, %v19333_v32, 0 }
 0x1b2   :  { %v891_v53 = vadd.f32 %v20327_v40, %v808_v48  ;;  %v22122_v43 = vand.u32 4294901760, %v2109_v39 }
 0x1b3   :  { %v882_v42 = vpop.f32.mrf.mxu1 }
 0x1b4   :  { %v883_v49 = vadd.f32 %v882_v42, %v801_v44  ;;  %v974_v63 = vadd.f32 %v20334_v38, %v891_v53 }
 0x1b6   :  { %v20341_v45 = vpop.f32.mrf.mxu1  ;;  %v20348_v46 = vpop.f32.mrf.mxu0  ;;  %v968_v54 = vadd.f32 %v967_v41, %v883_v49  ;;  %v22132_v49 = vand.u32 4294901760, %v19332_v47 }
 0x1b7   :  { %v1053_v8 = vadd.f32 %v20341_v45, %v974_v63 }
 0x1b8   :  { %v1046_v50 = vpop.f32.mrf.mxu1  ;;  %v1148_v51 = vpop.f32.mrf.mxu0  ;;  %v2235_v53 = vsub.f32 %v19332_v47, %v22132_v49 }
 0x1b9   :  { %v1047_v0 = vadd.f32 %v1046_v50, %v968_v54  ;;  %v22090_v21 = vadd.f32 %v19327_v11, %v1053_v8  ;;  %v2228_v50 = vsub.f32 %v2109_v39, %v22122_v43  ;;  %v19330_v39 = vld [vmem:[%s24305_s0 + $0x100] sm:$0xff] }
 0x1bb   :  { %v22084_v9 = vadd.f32 %v19326_v1, %v1047_v0  ;;  %v2106_v30 = vsel %vm31_vm1, %v22090_v21, 0  ;;  %v2229_v54 = vand.u32 4294901760, %v2228_v50 }
 0x1bc   :  { %v20355_v55 = vpop.f32.mrf.mxu1  ;;  %v20362_v56 = vpop.f32.mrf.mxu0  ;;  %v22113_v36 = vand.u32 4294901760, %v2106_v30 }
 0x1bd   :  { %v1246_v57 = vadd.f32 %v20355_v55, %v20348_v46  ;;  %v2103_v22 = vsel %vm31_vm1, %v22084_v9, 0 }
 0x1be   :  { %v1239_v59 = vpop.f32.mrf.mxu1  ;;  %v1321_v60 = vpop.f32.mrf.mxu0  ;;  %v22098_v16 = vand.u32 4294901760, %v2103_v22  ;;  %v22125_v44 = vsub.f32 %v2106_v30, %v22113_v36 }
 0x1bf   :  { %v1329_v61 = vadd.f32 %v20362_v56, %v1246_v57  ;;  %v1240_v62 = vadd.f32 %v1239_v59, %v1148_v51  ;;  %v2230_v57 = vsub.f32 %v2228_v50, %v2229_v54  ;;  %v2236_v59 = vand.u32 4294901760, %v2235_v53 }
 0x1c0   :  { %v22116_v37 = vsub.f32 %v2103_v22, %v22098_v16  ;;  %v2190_v52 = vand.u32 4294901760, %v22125_v44 }
 0x1c1   :  { %v1322_v2 = vadd.f32 %v1321_v60, %v1240_v62  ;;  %v2237_v62 = vsub.f32 %v2235_v53, %v2236_v59 }
 0x1c2   :  { %v20369_v5 = vpop.f32.mrf.mxu1  ;;  %v20376_v6 = vpop.f32.mrf.mxu0  ;;  %v2180_v46 = vand.u32 4294901760, %v22116_v37  ;;  %v2191_v56 = vsub.f32 %v22125_v44, %v2190_v52 }
 0x1c3   :  { %v1412_v7 = vadd.f32 %v20369_v5, %v1329_v61  ;;  %v2231_v61 = vand.u32 4294901760, %v2230_v57 }
 0x1c4   :  { %v1403_v10 = vpop.f32.mrf.mxu1  ;;  %v1488_v15 = vpop.f32.mrf.mxu0  ;;  %v2181_v51 = vsub.f32 %v22116_v37, %v2180_v46  ;;  %v2192_v60 = vand.u32 4294901760, %v2191_v56 }
 0x1c5   :  { %v1495_v12 = vadd.f32 %v20376_v6, %v1412_v7  ;;  %v1404_v13 = vadd.f32 %v1403_v10, %v1322_v2 }
 0x1c6   :  { %v2182_v55 = vand.u32 4294901760, %v2181_v51 }
 0x1c7   :  { %v1489_v19 = vadd.f32 %v1488_v15, %v1404_v13  ;;  %v20383_v20 = vpop.f32.mrf.mxu1 }
 0x1c8   :  { %v1574_v17 = vadd.f32 %v20383_v20, %v1495_v12 }
 0x1c9   :  { %v1567_v18 = vpop.f32.mrf.mxu1 }
 0x1ca   :  { %v1584_v24 = vsel %vm35_vm0, %v1574_v17, 0  ;;  %v1568_v25 = vadd.f32 %v1567_v18, %v1489_v19  ;;  %v19337_v18 = vld [vmem:[%s24306_s1 + $0x68] sm:$0x1f] }
 0x1cb   :  { %v22100_v26 = vand.u32 4294901760, %v1584_v24 }
 0x1cc   :  { %v22104_v31 = vand.u32 4294901760, %v1568_v25 }
 0x1cd   :  { %v1703_v33 = vsub.f32 %v1584_v24, %v22100_v26  ;;  %20384 = vmatprep.subr.mxu0 %v22100_v26 }
 0x1ce   :  { %v1710_v35 = vsub.f32 %v1568_v25, %v22104_v31  ;;  %20385 = vmatpush3.msra.mxu0 %v22100_v26 }
 0x1cf   :  { %20386 = vmatprep.subr.mxu0 %v22104_v31  ;;  %v1704_v38 = vand.u32 4294901760, %v1703_v33 }
 0x1d0   :  { %20387 = vmatpush3.msra.mxu0 %v22104_v31  ;;  %v1711_v40 = vand.u32 4294901760, %v1710_v35 }
 0x1d1   :  { %20389 = vmatmul.mubr.f32.vlgmr.msra.gmra.mxu0 %v1667_v34  ;;  %20398 = vmatprep.subr.mxu0 %v1703_v33  ;;  %v1705_v41 = vsub.f32 %v1703_v33, %v1704_v38 }
 0x1d2   :  { %20399 = vmatpush3.msra.mxu0 %v1703_v33  ;;  %20402 = vmatprep.mubr.f32.mxu0 %v22065_v28  ;;  %v1712_v42 = vsub.f32 %v1710_v35, %v1711_v40  ;;  %v2238_v28 = vand.u32 4294901760, %v2237_v62 }
 0x1d3   :  { %20400 = vmatprep.subr.mxu0 %v1710_v35  ;;  %v1706_v45 = vand.u32 4294901760, %v1705_v41 }
 0x1d4   :  { %20401 = vmatpush3.msra.mxu0 %v1710_v35  ;;  %v1713_v48 = vand.u32 4294901760, %v1712_v42 }
 0x1d5   :  { %20391 = vmatprep.subr.mxu1 %v1706_v45  ;;  %20403 = vmatmul.mubr.f32.vlgmr.msra.gmra.mxu0 %v22082_v3 }
 0x1d6   :  { %20412 = vmatprep.subr.mxu0 %v1704_v38  ;;  %20392 = vmatpush3.msra.mxu1 %v1706_v45 }
 0x1d7   :  { %20413 = vmatpush3.msra.mxu0 %v1704_v38  ;;  %20393 = vmatprep.subr.mxu1 %v1713_v48 }
 0x1d8   :  { %20414 = vmatprep.subr.mxu0 %v1711_v40  ;;  %20394 = vmatpush3.msra.mxu1 %v1713_v48 }
 0x1d9   :  { %20415 = vmatpush3.msra.mxu0 %v1711_v40  ;;  %20416 = vmatprep.mubr.f32.mxu0 %v22062_v27 }
 0x1da   :  { %20396 = vmatmul.mubr.f32.vlgmr.msra.gmra.mxu1 %v22076_v58  ;;  %20405 = vmatprep.subr.mxu1 %v22100_v26 }
 0x1db   :  { %20417 = vmatmul.mubr.f32.vlgmr.msra.gmra.mxu0 %v22076_v58  ;;  %20426 = vmatprep.subr.mxu0 %v22122_v43 }
 0x1dc   :  { %20406 = vmatpush3.msra.mxu1 %v22100_v26  ;;  %20427 = vmatpush3.msra.mxu0 %v22122_v43 }
 0x1dd   :  { %20430 = vmatprep.mubr.f32.mxu0 %v2182_v55  ;;  %20407 = vmatprep.subr.mxu1 %v22104_v31 }
 0x1de   :  { %20428 = vmatprep.subr.mxu0 %v22132_v49  ;;  %20408 = vmatpush3.msra.mxu1 %v22104_v31 }
 0x1df   :  { %20409 = vmatprep.mubr.f32.mxu1 %v1655_v29  ;;  %20429 = vmatpush3.msra.mxu0 %v22132_v49 }
 0x1e0   :  { %20410 = vmatmul.mubr.f32.vlgmr.msra.gmra.mxu1 %v1665_v14  ;;  %20419 = vmatprep.subr.mxu1 %v22100_v26 }
 0x1e1   :  { %20431 = vmatmul.mubr.f32.vlgmr.msra.gmra.mxu0 %v2192_v60  ;;  %20440 = vmatprep.subr.mxu0 %v2228_v50 }
 0x1e2   :  { %20420 = vmatpush3.msra.mxu1 %v22100_v26  ;;  %20441 = vmatpush3.msra.mxu0 %v2228_v50  ;;  %v19331_v50 = vld [vmem:[%s24305_s0 + $0x108] sm:$0x1] }
 0x1e3   :  { %20444 = vmatprep.mubr.f32.mxu0 %v22116_v37  ;;  %20421 = vmatprep.subr.mxu1 %v22104_v31 }
 0x1e4   :  { %20442 = vmatprep.subr.mxu0 %v2235_v53  ;;  %20422 = vmatpush3.msra.mxu1 %v22104_v31 }
 0x1e5   :  { %20423 = vmatprep.mubr.f32.mxu1 %v22062_v27  ;;  %20443 = vmatpush3.msra.mxu0 %v2235_v53  ;;  %v19336_v27 = vld [vmem:[%s24306_s1 + $0x60] sm:$0xff] }
 0x1e6   :  { %20424 = vmatmul.mubr.f32.vlgmr.msra.gmra.mxu1 %v22076_v58  ;;  %20433 = vmatprep.subr.mxu1 %v2231_v61  ;;  %v2618_v29 = vsel %vm31_vm1, %v19336_v27, 0 }
 0x1e7   :  { %20445 = vmatmul.mubr.f32.vlgmr.msra.gmra.mxu0 %v22125_v44  ;;  %20454 = vmatprep.subr.mxu0 %v2229_v54  ;;  %v22184_v58 = vand.u32 4294901760, %v2618_v29 }
 0x1e8   :  { %20434 = vmatpush3.msra.mxu1 %v2231_v61  ;;  %20437 = vmatprep.mubr.f32.mxu1 %v22098_v16 }
 0x1e9   :  { %20455 = vmatpush3.msra.mxu0 %v2229_v54  ;;  %20458 = vmatprep.mubr.f32.mxu0 %v22098_v16  ;;  %v22187_v63 = vsub.f32 %v2618_v29, %v22184_v58 }
 0x1ea   :  { %20435 = vmatprep.subr.mxu1 %v2238_v28  ;;  %20456 = vmatprep.subr.mxu0 %v2236_v59 }
 0x1eb   :  { %20436 = vmatpush3.msra.mxu1 %v2238_v28  ;;  %20457 = vmatpush3.msra.mxu0 %v2236_v59  ;;  %v2695_v0 = vand.u32 4294901760, %v22187_v63 }
 0x1ec   :  { %20438 = vmatmul.mubr.f32.vlgmr.msra.gmra.mxu1 %v22113_v36  ;;  %20447 = vmatprep.subr.mxu1 %v22122_v43 }
 0x1ed   :  { %20459 = vmatmul.mubr.f32.vlgmr.msra.gmra.mxu0 %v22113_v36  ;;  %20448 = vmatpush3.msra.mxu1 %v22122_v43  ;;  %v2696_v1 = vsub.f32 %v22187_v63, %v2695_v0 }
 0x1ee   :  { %20451 = vmatprep.mubr.f32.mxu1 %v2180_v46  ;;  %20449 = vmatprep.subr.mxu1 %v22132_v49 }
 0x1ef   :  { %20450 = vmatpush3.msra.mxu1 %v22132_v49  ;;  %v2697_v2 = vand.u32 4294901760, %v2696_v1 }
 0x1f0   :  { %20452 = vmatmul.mubr.f32.vlgmr.msra.gmra.mxu1 %v2190_v52  ;;  %20461 = vmatprep.subr.mxu1 %v22122_v43 }
 0x1f1   :  { %20462 = vmatpush3.msra.mxu1 %v22122_v43  ;;  %20465 = vmatprep.mubr.f32.mxu1 %v22098_v16  ;;  %v2621_v16 = vsel %vm31_vm1, %v19337_v18, 0 }
 0x1f2   :  { %20463 = vmatprep.subr.mxu1 %v22132_v49  ;;  %20472 = vmatprep.mubr.f32.mxu0 %v2697_v2  ;;  %v22198_v33 = vand.u32 4294901760, %v2621_v16 }
 0x1f3   :  { %20464 = vmatpush3.msra.mxu1 %v22132_v49 }
 0x1f4   :  { %20466 = vmatmul.mubr.f32.vlgmr.msra.gmra.mxu1 %v22113_v36  ;;  %v22204_v41 = vsub.f32 %v2621_v16, %v22198_v33 }
 0x1f5   :  { %20479 = vmatprep.mubr.f32.mxu1 %v22184_v58 }
 0x1f6   :  { %v2705_v52 = vand.u32 4294901760, %v22204_v41 }
 0x1f8   :  { %v2706_v28 = vsub.f32 %v22204_v41, %v2705_v52 }
 0x291   :  { %v20390_v3 = vpop.f32.mrf.mxu0 }
 0x293   :  { %v1659_v5 = vpop.f32.mrf.mxu0 }
 0x295   :  { %v20404_v6 = vpop.f32.mrf.mxu0 }
 0x297   :  { %v1832_v7 = vpop.f32.mrf.mxu0 }
 0x29a   :  { %v20397_v8 = vpop.f32.mrf.mxu1 }
 0x29b   :  { %v20418_v10 = vpop.f32.mrf.mxu0  ;;  %v1757_v15 = vadd.f32 %v20397_v8, %v20390_v3  ;;  %v2707_v8 = vand.u32 4294901760, %v2706_v28 }
 0x29c   :  { %v1750_v11 = vpop.f32.mrf.mxu1 }
 0x29d   :  { %v1751_v12 = vadd.f32 %v1750_v11, %v1659_v5  ;;  %v1999_v13 = vpop.f32.mrf.mxu0  ;;  %v1840_v23 = vadd.f32 %v20404_v6, %v1757_v15  ;;  %v19343_v6 = vld [vmem:[%s24305_s0 + $0x98] sm:$0x1] }
 0x29f   :  { %v1833_v20 = vadd.f32 %v1832_v7, %v1751_v12 }
 0x2a0   :  { %v20411_v14 = vpop.f32.mrf.mxu1 }
 0x2a1   :  { %v20432_v19 = vpop.f32.mrf.mxu0  ;;  %v1923_v31 = vadd.f32 %v20411_v14, %v1840_v23 }
 0x2a2   :  { %v1914_v22 = vpop.f32.mrf.mxu1 }
 0x2a3   :  { %v2184_v17 = vpop.f32.mrf.mxu0  ;;  %v1915_v24 = vadd.f32 %v1914_v22, %v1833_v20  ;;  %v2006_v36 = vadd.f32 %v20418_v10, %v1923_v31 }
 0x2a5   :  { %v2000_v32 = vadd.f32 %v1999_v13, %v1915_v24  ;;  %v3146_v13 = vsel %vm35_vm0, %v19343_v6, 0  ;;  %v19342_v24 = vld [vmem:[%s24305_s0 + $0x90] sm:$0xff]  ;;  %v19323_v6 = vld [vmem:[%s24305_s0 + $0x178] sm:$0x1] }
 0x2a6   :  { %v20425_v25 = vpop.f32.mrf.mxu1  ;;  %v22244_v22 = vand.u32 4294901760, %v3146_v13  ;;  %v22254_v16 = vand.u32 4294901760, %v19342_v24 }
 0x2a7   :  { %v20446_v26 = vpop.f32.mrf.mxu0  ;;  %v2085_v46 = vadd.f32 %v20425_v25, %v2006_v36 }
 0x2a8   :  { %v2078_v30 = vpop.f32.mrf.mxu1 }
 0x2a9   :  { %v2357_v34 = vpop.f32.mrf.mxu0  ;;  %v2079_v37 = vadd.f32 %v2078_v30, %v2000_v32  ;;  %v22212_v57 = vadd.f32 %v19331_v50, %v2085_v46  ;;  %v3272_v32 = vsub.f32 %v19342_v24, %v22254_v16 }
 0x2ab   :  { %v22206_v47 = vadd.f32 %v19330_v39, %v2079_v37  ;;  %v3143_v3 = vsel %vm31_vm1, %v22212_v57, 0 }
 0x2ac   :  { %v20439_v35 = vpop.f32.mrf.mxu1  ;;  %v22235_v11 = vand.u32 4294901760, %v3143_v3 }
 0x2ad   :  { %v2282_v38 = vadd.f32 %v20439_v35, %v20432_v19  ;;  %v20460_v44 = vpop.f32.mrf.mxu0  ;;  %v3140_v59 = vsel %vm31_vm1, %v22206_v47, 0 }
 0x2ae   :  { %v2275_v40 = vpop.f32.mrf.mxu1  ;;  %v22220_v1 = vand.u32 4294901760, %v3140_v59 }
 0x2af   :  { %v2276_v42 = vadd.f32 %v2275_v40, %v2184_v17  ;;  %v2365_v43 = vadd.f32 %v20446_v26, %v2282_v38  ;;  %v2524_v55 = vpop.f32.mrf.mxu0  ;;  %v22247_v17 = vsub.f32 %v3143_v3, %v22235_v11  ;;  %v3265_v26 = vsub.f32 %v3146_v13, %v22244_v22  ;;  %v19341_v3 = vld [vmem:[%s24305_s0 + $0x18] sm:$0x1] }
 0x2b0   :  { %v20453_v45 = vpop.f32.mrf.mxu1  ;;  %v22240_v14 = vsub.f32 %v3140_v59, %v22220_v1  ;;  %v3273_v38 = vand.u32 4294901760, %v3272_v32 }
 0x2b1   :  { %v2448_v48 = vadd.f32 %v20453_v45, %v2365_v43  ;;  %v2358_v49 = vadd.f32 %v2357_v34, %v2276_v42  ;;  %v3227_v31 = vand.u32 4294901760, %v22247_v17  ;;  %v3266_v34 = vand.u32 4294901760, %v3265_v26 }
 0x2b2   :  { %v2439_v51 = vpop.f32.mrf.mxu1  ;;  %v3217_v23 = vand.u32 4294901760, %v22240_v14  ;;  %v3274_v42 = vsub.f32 %v3272_v32, %v3273_v38 }
 0x2b3   :  { %v2440_v53 = vadd.f32 %v2439_v51, %v2358_v49  ;;  %v2531_v54 = vadd.f32 %v20460_v44, %v2448_v48  ;;  %v3228_v36 = vsub.f32 %v22247_v17, %v3227_v31  ;;  %v3267_v37 = vsub.f32 %v3265_v26, %v3266_v34 }
 0x2b4   :  { %v20467_v56 = vpop.f32.mrf.mxu1  ;;  %v3218_v30 = vsub.f32 %v22240_v14, %v3217_v23 }
 0x2b5   :  { %v2610_v60 = vadd.f32 %v20467_v56, %v2531_v54  ;;  %v2525_v61 = vadd.f32 %v2524_v55, %v2440_v53  ;;  %v3229_v39 = vand.u32 4294901760, %v3228_v36  ;;  %v3268_v40 = vand.u32 4294901760, %v3267_v37 }
 0x2b6   :  { %v2603_v62 = vpop.f32.mrf.mxu1  ;;  %v3219_v35 = vand.u32 4294901760, %v3218_v30  ;;  %v19348_v30 = vld [vmem:[%s24305_s0 + $0x150] sm:$0xff] }
 0x2b7   :  { %v2624_v27 = vsel %vm35_vm0, %v2610_v60, 0  ;;  %v2604_v29 = vadd.f32 %v2603_v62, %v2525_v61 }
 0x2b8   :  { %v22222_v2 = vand.u32 4294901760, %v2624_v27 }
 0x2b9   :  { %v22226_v5 = vand.u32 4294901760, %v2604_v29 }
 0x2ba   :  { %v2743_v7 = vsub.f32 %v2624_v27, %v22222_v2  ;;  %20468 = vmatprep.subr.mxu0 %v22222_v2 }
 0x2bb   :  { %v2750_v10 = vsub.f32 %v2604_v29, %v22226_v5  ;;  %20469 = vmatpush3.msra.mxu0 %v22222_v2 }
 0x2bc   :  { %20470 = vmatprep.subr.mxu0 %v22226_v5  ;;  %v2744_v12 = vand.u32 4294901760, %v2743_v7 }
 0x2bd   :  { %20471 = vmatpush3.msra.mxu0 %v22226_v5  ;;  %v2751_v15 = vand.u32 4294901760, %v2750_v10 }
 0x2be   :  { %20473 = vmatmul.mubr.f32.vlgmr.msra.gmra.mxu0 %v2707_v8  ;;  %20482 = vmatprep.subr.mxu0 %v2743_v7  ;;  %v2745_v19 = vsub.f32 %v2743_v7, %v2744_v12  ;;  %v19339_v8 = vld [vmem:[%s24306_s1 + $0xe8] sm:$0x1f] }
 0x2bf   :  { %20483 = vmatpush3.msra.mxu0 %v2743_v7  ;;  %20486 = vmatprep.mubr.f32.mxu0 %v22187_v63  ;;  %v2752_v20 = vsub.f32 %v2750_v10, %v2751_v15  ;;  %v3275_v63 = vand.u32 4294901760, %v3274_v42  ;;  %v19335_v7 = vld [vmem:[%s24305_s0 + $0x168] sm:$0x1] }
 0x2c0   :  { %20484 = vmatprep.subr.mxu0 %v2750_v10  ;;  %v2746_v18 = vand.u32 4294901760, %v2745_v19  ;;  %v19338_v19 = vld [vmem:[%s24306_s1 + $0xe0] sm:$0xff] }
 0x2c1   :  { %20485 = vmatpush3.msra.mxu0 %v2750_v10  ;;  %v2753_v25 = vand.u32 4294901760, %v2752_v20 }
 0x2c2   :  { %20475 = vmatprep.subr.mxu1 %v2746_v18  ;;  %20487 = vmatmul.mubr.f32.vlgmr.msra.gmra.mxu0 %v22204_v41 }
 0x2c3   :  { %20496 = vmatprep.subr.mxu0 %v2744_v12  ;;  %20476 = vmatpush3.msra.mxu1 %v2746_v18  ;;  %v2614_v18 = vmul.f32 %v19335_v7, %v22090_v21 }
 0x2c4   :  { %20497 = vmatpush3.msra.mxu0 %v2744_v12  ;;  %20477 = vmatprep.subr.mxu1 %v2753_v25  ;;  %v19334_v12 = vld [vmem:[%s24305_s0 + $0x160] sm:$0xff] }
 0x2c5   :  { %20498 = vmatprep.subr.mxu0 %v2751_v15  ;;  %20478 = vmatpush3.msra.mxu1 %v2753_v25 }
 0x2c6   :  { %20499 = vmatpush3.msra.mxu0 %v2751_v15  ;;  %20500 = vmatprep.mubr.f32.mxu0 %v22184_v58 }
 0x2c7   :  { %20480 = vmatmul.mubr.f32.vlgmr.msra.gmra.mxu1 %v22198_v33  ;;  %20489 = vmatprep.subr.mxu1 %v22222_v2 }
 0x2c8   :  { %20501 = vmatmul.mubr.f32.vlgmr.msra.gmra.mxu0 %v22198_v33  ;;  %20510 = vmatprep.subr.mxu0 %v22244_v22 }
 0x2c9   :  { %20490 = vmatpush3.msra.mxu1 %v22222_v2  ;;  %20511 = vmatpush3.msra.mxu0 %v22244_v22 }
 0x2ca   :  { %20514 = vmatprep.mubr.f32.mxu0 %v3219_v35  ;;  %20491 = vmatprep.subr.mxu1 %v22226_v5 }
 0x2cb   :  { %20512 = vmatprep.subr.mxu0 %v22254_v16  ;;  %20492 = vmatpush3.msra.mxu1 %v22226_v5 }
 0x2cc   :  { %20493 = vmatprep.mubr.f32.mxu1 %v2695_v0  ;;  %20513 = vmatpush3.msra.mxu0 %v22254_v16 }
 0x2cd   :  { %20494 = vmatmul.mubr.f32.vlgmr.msra.gmra.mxu1 %v2705_v52  ;;  %20503 = vmatprep.subr.mxu1 %v22222_v2 }
 0x2ce   :  { %20515 = vmatmul.mubr.f32.vlgmr.msra.gmra.mxu0 %v3229_v39  ;;  %20524 = vmatprep.subr.mxu0 %v3265_v26 }
 0x2cf   :  { %20504 = vmatpush3.msra.mxu1 %v22222_v2  ;;  %20525 = vmatpush3.msra.mxu0 %v3265_v26 }
 0x2d0   :  { %20528 = vmatprep.mubr.f32.mxu0 %v22240_v14  ;;  %20505 = vmatprep.subr.mxu1 %v22226_v5  ;;  %v3654_v14 = vsel %vm31_vm1, %v19341_v3, 0  ;;  %v19347_v3 = vld [vmem:[%s24305_s0 + $0x58] sm:$0x1] }
 0x2d1   :  { %20526 = vmatprep.subr.mxu0 %v3272_v32  ;;  %20506 = vmatpush3.msra.mxu1 %v22226_v5  ;;  %v22345_v26 = vand.u32 4294901760, %v3654_v14 }
 0x2d2   :  { %20507 = vmatprep.mubr.f32.mxu1 %v22184_v58  ;;  %20527 = vmatpush3.msra.mxu0 %v3272_v32  ;;  %v19340_v58 = vld [vmem:[%s24305_s0 + $0x10] sm:$0xff] }
 0x2d3   :  { %20508 = vmatmul.mubr.f32.vlgmr.msra.gmra.mxu1 %v22198_v33  ;;  %20517 = vmatprep.subr.mxu1 %v3268_v40  ;;  %v3651_v0 = vsel %vm31_vm1, %v19340_v58, 0  ;;  %v22352_v42 = vsub.f32 %v3654_v14, %v22345_v26 }
 0x2d4   :  { %20529 = vmatmul.mubr.f32.vlgmr.msra.gmra.mxu0 %v22247_v17  ;;  %20538 = vmatprep.subr.mxu0 %v3266_v34  ;;  %v22306_v33 = vand.u32 4294901760, %v3651_v0  ;;  %v542_v17 = vmul.f32 0.0, %v19323_v6 }
 0x2d5   :  { %20518 = vmatpush3.msra.mxu1 %v3268_v40  ;;  %20521 = vmatprep.mubr.f32.mxu1 %v22220_v1 }
 0x2d6   :  { %20539 = vmatpush3.msra.mxu0 %v3266_v34  ;;  %20542 = vmatprep.mubr.f32.mxu0 %v22220_v1  ;;  %v22309_v41 = vsub.f32 %v3651_v0, %v22306_v33  ;;  %v2616_v36 = vadd.f32 %v2614_v18, %v542_v17  ;;  %v19346_v18 = vld [vmem:[%s24305_s0 + $0x50] sm:$0xff] }
 0x2d7   :  { %20519 = vmatprep.subr.mxu1 %v3275_v63  ;;  %20540 = vmatprep.subr.mxu0 %v3273_v38 }
 0x2d8   :  { %20520 = vmatpush3.msra.mxu1 %v3275_v63  ;;  %20541 = vmatpush3.msra.mxu0 %v3273_v38  ;;  %v3728_v43 = vand.u32 4294901760, %v22309_v41 }
 0x2d9   :  { %20522 = vmatmul.mubr.f32.vlgmr.msra.gmra.mxu1 %v22235_v11  ;;  %20531 = vmatprep.subr.mxu1 %v22244_v22 }
 0x2da   :  { %20543 = vmatmul.mubr.f32.vlgmr.msra.gmra.mxu0 %v22235_v11  ;;  %20532 = vmatpush3.msra.mxu1 %v22244_v22  ;;  %v3729_v44 = vsub.f32 %v22309_v41, %v3728_v43 }
 0x2db   :  { %20535 = vmatprep.mubr.f32.mxu1 %v3217_v23  ;;  %20533 = vmatprep.subr.mxu1 %v22254_v16 }
 0x2dc   :  { %20534 = vmatpush3.msra.mxu1 %v22254_v16  ;;  %v3730_v45 = vand.u32 4294901760, %v3729_v44 }
 0x2dd   :  { %20536 = vmatmul.mubr.f32.vlgmr.msra.gmra.mxu1 %v3227_v31  ;;  %20545 = vmatprep.subr.mxu1 %v22244_v22 }
 0x2de   :  { %20546 = vmatpush3.msra.mxu1 %v22244_v22  ;;  %20549 = vmatprep.mubr.f32.mxu1 %v22220_v1  ;;  %v19349_v22 = vld [vmem:[%s24305_s0 + $0x158] sm:$0x1] }
 0x2df   :  { %20547 = vmatprep.subr.mxu1 %v22254_v16  ;;  %20556 = vmatprep.mubr.f32.mxu0 %v3730_v45 }
 0x2e0   :  { %20548 = vmatpush3.msra.mxu1 %v22254_v16  ;;  %v2613_v16 = vmul.f32 %v19334_v12, %v22084_v9  ;;  %v4182_v12 = vsel %vm35_vm0, %v19347_v3, 0 }
 0x2e1   :  { %20550 = vmatmul.mubr.f32.vlgmr.msra.gmra.mxu1 %v22235_v11  ;;  %v19322_v11 = vld [vmem:[%s24305_s0 + $0x170] sm:$0xff] }
 0x2e2   :  { %20563 = vmatprep.mubr.f32.mxu1 %v22306_v33  ;;  %v541_v25 = vmul.f32 0.0, %v19322_v11 }
 0x2e4   :  { %v2615_v39 = vadd.f32 %v2613_v16, %v541_v25  ;;  %v22398_v25 = vand.u32 4294901760, %v19346_v18 }
 0x37e   :  { %v20474_v46 = vpop.f32.mrf.mxu0 }
 0x380   :  { %v2699_v48 = vpop.f32.mrf.mxu0 }
 0x382   :  { %v20488_v49 = vpop.f32.mrf.mxu0 }
 0x384   :  { %v2872_v50 = vpop.f32.mrf.mxu0 }
 0x387   :  { %v20481_v51 = vpop.f32.mrf.mxu1 }
 0x388   :  { %v2797_v52 = vadd.f32 %v20481_v51, %v20474_v46  ;;  %v20502_v53 = vpop.f32.mrf.mxu0 }
 0x389   :  { %v2790_v54 = vpop.f32.mrf.mxu1 }
 0x38a   :  { %v2791_v55 = vadd.f32 %v2790_v54, %v2699_v48  ;;  %v3039_v56 = vpop.f32.mrf.mxu0  ;;  %v2880_v59 = vadd.f32 %v20488_v49, %v2797_v52 }
 0x38c   :  { %v2873_v60 = vadd.f32 %v2872_v50, %v2791_v55  ;;  %v3738_v50 = vand.u32 4294901760, %v22352_v42 }
 0x38d   :  { %v20495_v61 = vpop.f32.mrf.mxu1 }
 0x38e   :  { %v2963_v62 = vadd.f32 %v20495_v61, %v2880_v59  ;;  %v20516_v28 = vpop.f32.mrf.mxu0  ;;  %v3739_v61 = vsub.f32 %v22352_v42, %v3738_v50 }
 0x38f   :  { %v2954_v27 = vpop.f32.mrf.mxu1 }
 0x390   :  { %v2955_v29 = vadd.f32 %v2954_v27, %v2873_v60  ;;  %v3046_v1 = vadd.f32 %v20502_v53, %v2963_v62  ;;  %v3221_v2 = vpop.f32.mrf.mxu0  ;;  %v3740_v6 = vand.u32 4294901760, %v3739_v61 }
 0x392   :  { %v3040_v5 = vadd.f32 %v3039_v56, %v2955_v29 }
 0x393   :  { %v20509_v10 = vpop.f32.mrf.mxu1 }
 0x394   :  { %v3125_v13 = vadd.f32 %v20509_v10, %v3046_v1  ;;  %v20530_v15 = vpop.f32.mrf.mxu0 }
 0x395   :  { %v3118_v20 = vpop.f32.mrf.mxu1 }
 0x396   :  { %v22342_v23 = vadd.f32 %v19339_v8, %v3125_v13  ;;  %v3119_v24 = vadd.f32 %v3118_v20, %v3040_v5  ;;  %v3394_v34 = vpop.f32.mrf.mxu0 }
 0x398   :  { %v3128_v31 = vadd.f32 %v19338_v19, %v3119_v24  ;;  %v4687_v32 = vmul.f32 %v19349_v22, %v22342_v23  ;;  %v4179_v1 = vsel %vm31_vm1, %v22342_v23, 0  ;;  %v22388_v19 = vand.u32 4294901760, %v4182_v12 }
 0x399   :  { %v20523_v35 = vpop.f32.mrf.mxu1  ;;  %v22379_v8 = vand.u32 4294901760, %v4179_v1 }
 0x39a   :  { %v3319_v37 = vadd.f32 %v20523_v35, %v20516_v28  ;;  %v4686_v38 = vmul.f32 %v19348_v30, %v3128_v31  ;;  %v22354_v9 = vadd.f32 %v4687_v32, %v2616_v36  ;;  %v20544_v44 = vpop.f32.mrf.mxu0  ;;  %v4176_v55 = vsel %vm31_vm1, %v3128_v31, 0 }
 0x39b   :  { %v3312_v40 = vpop.f32.mrf.mxu1  ;;  %v22364_v27 = vand.u32 4294901760, %v4176_v55  ;;  %v22391_v20 = vsub.f32 %v4179_v1, %v22379_v8  ;;  %v4301_v16 = vsub.f32 %v4182_v12, %v22388_v19  ;;  %v4308_v32 = vsub.f32 %v19346_v18, %v22398_v25 }
 0x39c   :  { %v3313_v63 = vadd.f32 %v3312_v40, %v3221_v2  ;;  %v3402_v58 = vadd.f32 %v20530_v15, %v3319_v37  ;;  %v22356_v0 = vadd.f32 %v4686_v38, %v2615_v39  ;;  %v3561_v53 = vpop.f32.mrf.mxu0 }
 0x39d   :  { %v20537_v45 = vpop.f32.mrf.mxu1  ;;  %v22382_v10 = vsub.f32 %v4176_v55, %v22364_v27  ;;  %v4263_v31 = vand.u32 4294901760, %v22391_v20  ;;  %v4309_v38 = vand.u32 4294901760, %v4308_v32 }
 0x39e   :  { %v3485_v46 = vadd.f32 %v20537_v45, %v3402_v58  ;;  %v3395_v48 = vadd.f32 %v3394_v34, %v3313_v63  ;;  %v4302_v34 = vand.u32 4294901760, %v4301_v16 }
 0x39f   :  { %v3476_v49 = vpop.f32.mrf.mxu1  ;;  %v4253_v17 = vand.u32 4294901760, %v22382_v10  ;;  %v4264_v36 = vsub.f32 %v22391_v20, %v4263_v31  ;;  %v4310_v63 = vsub.f32 %v4308_v32, %v4309_v38 }
 0x3a0   :  { %v3477_v51 = vadd.f32 %v3476_v49, %v3395_v48  ;;  %v3568_v52 = vadd.f32 %v20544_v44, %v3485_v46  ;;  %v4303_v37 = vsub.f32 %v4301_v16, %v4302_v34 }
 0x3a1   :  { %v20551_v54 = vpop.f32.mrf.mxu1  ;;  %v4254_v30 = vsub.f32 %v22382_v10, %v4253_v17  ;;  %v4265_v39 = vand.u32 4294901760, %v4264_v36 }
 0x3a2   :  { %v3647_v56 = vadd.f32 %v20551_v54, %v3568_v52  ;;  %v3562_v59 = vadd.f32 %v3561_v53, %v3477_v51  ;;  %v4304_v40 = vand.u32 4294901760, %v4303_v37 }
 0x3a3   :  { %v3640_v60 = vpop.f32.mrf.mxu1  ;;  %v4255_v35 = vand.u32 4294901760, %v4254_v30 }
 0x3a4   :  { %v3657_v62 = vsel %vm35_vm0, %v3647_v56, 0  ;;  %v3641_v28 = vadd.f32 %v3640_v60, %v3562_v59 }
 0x3a5   :  { %v22366_v29 = vand.u32 4294901760, %v3657_v62 }
 0x3a6   :  { %v22370_v2 = vand.u32 4294901760, %v3641_v28 }
 0x3a7   :  { %v3776_v5 = vsub.f32 %v3657_v62, %v22366_v29  ;;  %20552 = vmatprep.subr.mxu0 %v22366_v29 }
 0x3a8   :  { %v3783_v7 = vsub.f32 %v3641_v28, %v22370_v2  ;;  %20553 = vmatpush3.msra.mxu0 %v22366_v29 }
 0x3a9   :  { %20554 = vmatprep.subr.mxu0 %v22370_v2  ;;  %v3777_v11 = vand.u32 4294901760, %v3776_v5 }
 0x3aa   :  { %20555 = vmatpush3.msra.mxu0 %v22370_v2  ;;  %v3784_v13 = vand.u32 4294901760, %v3783_v7 }
 0x3ab   :  { %20557 = vmatmul.mubr.f32.vlgmr.msra.gmra.mxu0 %v3740_v6  ;;  %20566 = vmatprep.subr.mxu0 %v3776_v5  ;;  %v3778_v14 = vsub.f32 %v3776_v5, %v3777_v11 }
 0x3ac   :  { %20567 = vmatpush3.msra.mxu0 %v3776_v5  ;;  %20570 = vmatprep.mubr.f32.mxu0 %v22309_v41  ;;  %v3785_v15 = vsub.f32 %v3783_v7, %v3784_v13  ;;  %v4311_v41 = vand.u32 4294901760, %v4310_v63 }
 0x3ad   :  { %20568 = vmatprep.subr.mxu0 %v3783_v7  ;;  %v3779_v22 = vand.u32 4294901760, %v3778_v14 }
 0x3ae   :  { %20569 = vmatpush3.msra.mxu0 %v3783_v7  ;;  %v3786_v24 = vand.u32 4294901760, %v3785_v15 }
 0x3af   :  { %20559 = vmatprep.subr.mxu1 %v3779_v22  ;;  %20571 = vmatmul.mubr.f32.vlgmr.msra.gmra.mxu0 %v22352_v42 }
 0x3b0   :  { %20580 = vmatprep.subr.mxu0 %v3777_v11  ;;  %20560 = vmatpush3.msra.mxu1 %v3779_v22 }
 0x3b1   :  { %20581 = vmatpush3.msra.mxu0 %v3777_v11  ;;  %20561 = vmatprep.subr.mxu1 %v3786_v24 }
 0x3b2   :  { %20582 = vmatprep.subr.mxu0 %v3784_v13  ;;  %20562 = vmatpush3.msra.mxu1 %v3786_v24 }
 0x3b3   :  { %20583 = vmatpush3.msra.mxu0 %v3784_v13  ;;  %20584 = vmatprep.mubr.f32.mxu0 %v22306_v33 }
 0x3b4   :  { %20564 = vmatmul.mubr.f32.vlgmr.msra.gmra.mxu1 %v22345_v26  ;;  %20573 = vmatprep.subr.mxu1 %v22366_v29 }
 0x3b5   :  { %20585 = vmatmul.mubr.f32.vlgmr.msra.gmra.mxu0 %v22345_v26  ;;  %20594 = vmatprep.subr.mxu0 %v22388_v19 }
 0x3b6   :  { %20574 = vmatpush3.msra.mxu1 %v22366_v29  ;;  %20595 = vmatpush3.msra.mxu0 %v22388_v19 }
 0x3b7   :  { %20598 = vmatprep.mubr.f32.mxu0 %v4255_v35  ;;  %20575 = vmatprep.subr.mxu1 %v22370_v2 }
 0x3b8   :  { %20596 = vmatprep.subr.mxu0 %v22398_v25  ;;  %20576 = vmatpush3.msra.mxu1 %v22370_v2 }
 0x3b9   :  { %20577 = vmatprep.mubr.f32.mxu1 %v3728_v43  ;;  %20597 = vmatpush3.msra.mxu0 %v22398_v25 }
 0x3ba   :  { %20578 = vmatmul.mubr.f32.vlgmr.msra.gmra.mxu1 %v3738_v50  ;;  %20587 = vmatprep.subr.mxu1 %v22366_v29 }
 0x3bb   :  { %20599 = vmatmul.mubr.f32.vlgmr.msra.gmra.mxu0 %v4265_v39  ;;  %20608 = vmatprep.subr.mxu0 %v4301_v16 }
 0x3bc   :  { %20588 = vmatpush3.msra.mxu1 %v22366_v29  ;;  %20609 = vmatpush3.msra.mxu0 %v4301_v16 }
 0x3bd   :  { %20612 = vmatprep.mubr.f32.mxu0 %v22382_v10  ;;  %20589 = vmatprep.subr.mxu1 %v22370_v2 }
 0x3be   :  { %20610 = vmatprep.subr.mxu0 %v4308_v32  ;;  %20590 = vmatpush3.msra.mxu1 %v22370_v2 }
 0x3bf   :  { %20591 = vmatprep.mubr.f32.mxu1 %v22306_v33  ;;  %20611 = vmatpush3.msra.mxu0 %v4308_v32  ;;  %v19350_v33 = vld [vmem:[%s24306_s1 + $0x50] sm:$0xff] }
 0x3c0   :  { %20592 = vmatmul.mubr.f32.vlgmr.msra.gmra.mxu1 %v22345_v26  ;;  %20601 = vmatprep.subr.mxu1 %v4304_v40  ;;  %v4691_v43 = vsel %vm31_vm1, %v19350_v33, 0 }
 0x3c1   :  { %20613 = vmatmul.mubr.f32.vlgmr.msra.gmra.mxu0 %v22391_v20  ;;  %20622 = vmatprep.subr.mxu0 %v4302_v34  ;;  %v22450_v26 = vand.u32 4294901760, %v4691_v43 }
 0x3c2   :  { %20602 = vmatpush3.msra.mxu1 %v4304_v40  ;;  %20605 = vmatprep.mubr.f32.mxu1 %v22364_v27 }
 0x3c3   :  { %20623 = vmatpush3.msra.mxu0 %v4302_v34  ;;  %20626 = vmatprep.mubr.f32.mxu0 %v22364_v27  ;;  %v22453_v42 = vsub.f32 %v4691_v43, %v22450_v26  ;;  %v19345_v34 = vld [vmem:[%s24305_s0 + $0x118] sm:$0x1] }
 0x3c4   :  { %20603 = vmatprep.subr.mxu1 %v4311_v41  ;;  %20624 = vmatprep.subr.mxu0 %v4309_v38 }
 0x3c5   :  { %20604 = vmatpush3.msra.mxu1 %v4311_v41  ;;  %20625 = vmatpush3.msra.mxu0 %v4309_v38  ;;  %v4768_v58 = vand.u32 4294901760, %v22453_v42 }
 0x3c6   :  { %20606 = vmatmul.mubr.f32.vlgmr.msra.gmra.mxu1 %v22379_v8  ;;  %20615 = vmatprep.subr.mxu1 %v22388_v19 }
 0x3c7   :  { %20627 = vmatmul.mubr.f32.vlgmr.msra.gmra.mxu0 %v22379_v8  ;;  %20616 = vmatpush3.msra.mxu1 %v22388_v19  ;;  %v4769_v44 = vsub.f32 %v22453_v42, %v4768_v58 }
 0x3c8   :  { %20619 = vmatprep.mubr.f32.mxu1 %v4253_v17  ;;  %20617 = vmatprep.subr.mxu1 %v22398_v25 }
 0x3c9   :  { %20618 = vmatpush3.msra.mxu1 %v22398_v25  ;;  %v4770_v45 = vand.u32 4294901760, %v4769_v44 }
 0x3ca   :  { %20620 = vmatmul.mubr.f32.vlgmr.msra.gmra.mxu1 %v4263_v31  ;;  %20629 = vmatprep.subr.mxu1 %v22388_v19 }
 0x3cb   :  { %20630 = vmatpush3.msra.mxu1 %v22388_v19  ;;  %20633 = vmatprep.mubr.f32.mxu1 %v22364_v27  ;;  %v19351_v27 = vld [vmem:[%s24306_s1 + $0x58] sm:$0x1f]  ;;  %v19344_v19 = vld [vmem:[%s24305_s0 + $0x110] sm:$0xff] }
 0x3cc   :  { %20631 = vmatprep.subr.mxu1 %v22398_v25  ;;  %20640 = vmatprep.mubr.f32.mxu0 %v4770_v45  ;;  %v4694_v3 = vsel %vm31_vm1, %v19351_v27, 0 }
 0x3cd   :  { %20632 = vmatpush3.msra.mxu1 %v22398_v25  ;;  %v22464_v10 = vand.u32 4294901760, %v4694_v3 }
 0x3ce   :  { %20634 = vmatmul.mubr.f32.vlgmr.msra.gmra.mxu1 %v22379_v8 }
 0x3cf   :  { %20647 = vmatprep.mubr.f32.mxu1 %v22450_v26  ;;  %v22470_v22 = vsub.f32 %v4694_v3, %v22464_v10 }
 0x3d1   :  { %v4778_v36 = vand.u32 4294901760, %v22470_v22 }
 0x3d3   :  { %v4779_v45 = vsub.f32 %v22470_v22, %v4778_v36 }
 0x46b   :  { %v20558_v46 = vpop.f32.mrf.mxu0 }
 0x46d   :  { %v3732_v48 = vpop.f32.mrf.mxu0 }
 0x46f   :  { %v20572_v49 = vpop.f32.mrf.mxu0 }
 0x471   :  { %v3905_v50 = vpop.f32.mrf.mxu0 }
 0x474   :  { %v20565_v51 = vpop.f32.mrf.mxu1 }
 0x475   :  { %v20586_v52 = vpop.f32.mrf.mxu0  ;;  %v3830_v59 = vadd.f32 %v20565_v51, %v20558_v46 }
 0x476   :  { %v3823_v53 = vpop.f32.mrf.mxu1 }
 0x477   :  { %v3824_v54 = vadd.f32 %v3823_v53, %v3732_v48  ;;  %v4072_v55 = vpop.f32.mrf.mxu0  ;;  %v3913_v29 = vadd.f32 %v20572_v49, %v3830_v59  ;;  %v19357_v53 = vld [vmem:[%s24305_s0 + $0xa8] sm:$0x1] }
 0x479   :  { %v3906_v61 = vadd.f32 %v3905_v50, %v3824_v54 }
 0x47a   :  { %v20579_v56 = vpop.f32.mrf.mxu1 }
 0x47b   :  { %v20600_v60 = vpop.f32.mrf.mxu0  ;;  %v3996_v7 = vadd.f32 %v20579_v56, %v3913_v29 }
 0x47c   :  { %v3987_v62 = vpop.f32.mrf.mxu1 }
 0x47d   :  { %v4257_v28 = vpop.f32.mrf.mxu0  ;;  %v3988_v1 = vadd.f32 %v3987_v62, %v3906_v61  ;;  %v4079_v13 = vadd.f32 %v20586_v52, %v3996_v7  ;;  %v5219_v61 = vsel %vm35_vm0, %v19357_v53, 0 }
 0x47f   :  { %v4073_v8 = vadd.f32 %v4072_v55, %v3988_v1  ;;  %v4780_v55 = vand.u32 4294901760, %v4779_v45  ;;  %v22510_v1 = vand.u32 4294901760, %v5219_v61 }
 0x480   :  { %v20593_v2 = vpop.f32.mrf.mxu1 }
 0x481   :  { %v20614_v5 = vpop.f32.mrf.mxu0  ;;  %v4158_v16 = vadd.f32 %v20593_v2, %v4079_v13 }
 0x482   :  { %v4151_v6 = vpop.f32.mrf.mxu1 }
 0x483   :  { %v4430_v11 = vpop.f32.mrf.mxu0  ;;  %v4152_v14 = vadd.f32 %v4151_v6, %v4073_v8  ;;  %v22478_v63 = vadd.f32 %v19345_v34, %v4158_v16  ;;  %v19356_v6 = vld [vmem:[%s24305_s0 + $0xa0] sm:$0xff] }
 0x484   :  { %v22520_v8 = vand.u32 4294901760, %v19356_v6 }
 0x485   :  { %v22472_v30 = vadd.f32 %v19344_v19, %v4152_v14  ;;  %v5216_v51 = vsel %vm31_vm1, %v22478_v63, 0 }
 0x486   :  { %v20607_v12 = vpop.f32.mrf.mxu1  ;;  %v22501_v59 = vand.u32 4294901760, %v5216_v51  ;;  %v5345_v14 = vsub.f32 %v19356_v6, %v22520_v8  ;;  %v19362_v6 = vld [vmem:[%s24305_s0 + $0x140] sm:$0xff] }
 0x487   :  { %v4355_v15 = vadd.f32 %v20607_v12, %v20600_v60  ;;  %v20628_v24 = vpop.f32.mrf.mxu0  ;;  %v5213_v41 = vsel %vm31_vm1, %v22472_v30, 0 }
 0x488   :  { %v4348_v20 = vpop.f32.mrf.mxu1  ;;  %v22486_v49 = vand.u32 4294901760, %v5213_v41  ;;  %v22513_v2 = vsub.f32 %v5216_v51, %v22501_v59 }
 0x489   :  { %v4349_v17 = vadd.f32 %v4348_v20, %v4257_v28  ;;  %v4438_v18 = vadd.f32 %v20614_v5, %v4355_v15  ;;  %v4597_v39 = vpop.f32.mrf.mxu0 }
 0x48a   :  { %v20621_v25 = vpop.f32.mrf.mxu1  ;;  %v22506_v62 = vsub.f32 %v5213_v41, %v22486_v49  ;;  %v5300_v13 = vand.u32 4294901760, %v22513_v2 }
 0x48b   :  { %v4521_v31 = vadd.f32 %v20621_v25, %v4438_v18  ;;  %v4431_v32 = vadd.f32 %v4430_v11, %v4349_v17  ;;  %v5338_v11 = vsub.f32 %v5219_v61, %v22510_v1  ;;  %v5346_v18 = vand.u32 4294901760, %v5345_v14 }
 0x48c   :  { %v4512_v35 = vpop.f32.mrf.mxu1  ;;  %v5290_v5 = vand.u32 4294901760, %v22506_v62  ;;  %v5301_v20 = vsub.f32 %v22513_v2, %v5300_v13 }
 0x48d   :  { %v4513_v37 = vadd.f32 %v4512_v35, %v4431_v32  ;;  %v4604_v38 = vadd.f32 %v20628_v24, %v4521_v31  ;;  %v5339_v15 = vand.u32 4294901760, %v5338_v11  ;;  %v5347_v16 = vsub.f32 %v5345_v14, %v5346_v18 }
 0x48e   :  { %v20635_v40 = vpop.f32.mrf.mxu1  ;;  %v5291_v12 = vsub.f32 %v22506_v62, %v5290_v5  ;;  %v5302_v24 = vand.u32 4294901760, %v5301_v20 }
 0x48f   :  { %v4683_v33 = vadd.f32 %v20635_v40, %v4604_v38  ;;  %v4598_v43 = vadd.f32 %v4597_v39, %v4513_v37  ;;  %v5340_v17 = vsub.f32 %v5338_v11, %v5339_v15 }
 0x490   :  { %v4676_v44 = vpop.f32.mrf.mxu1  ;;  %v5292_v19 = vand.u32 4294901760, %v5291_v12 }
 0x491   :  { %v4697_v46 = vsel %vm35_vm0, %v4683_v33, 0  ;;  %v4677_v48 = vadd.f32 %v4676_v44, %v4598_v43  ;;  %v5341_v25 = vand.u32 4294901760, %v5340_v17 }
 0x492   :  { %v22488_v50 = vand.u32 4294901760, %v4697_v46 }
 0x493   :  { %v22492_v52 = vand.u32 4294901760, %v4677_v48 }
 0x494   :  { %v4816_v54 = vsub.f32 %v4697_v46, %v22488_v50  ;;  %20636 = vmatprep.subr.mxu0 %v22488_v50 }
 0x495   :  { %v4823_v56 = vsub.f32 %v4677_v48, %v22492_v52  ;;  %20637 = vmatpush3.msra.mxu0 %v22488_v50 }
 0x496   :  { %20638 = vmatprep.subr.mxu0 %v22492_v52  ;;  %v4817_v60 = vand.u32 4294901760, %v4816_v54 }
 0x497   :  { %20639 = vmatpush3.msra.mxu0 %v22492_v52  ;;  %v4824_v28 = vand.u32 4294901760, %v4823_v56 }
 0x498   :  { %20641 = vmatmul.mubr.f32.vlgmr.msra.gmra.mxu0 %v4780_v55  ;;  %20650 = vmatprep.subr.mxu0 %v4816_v54  ;;  %v4818_v27 = vsub.f32 %v4816_v54, %v4817_v60  ;;  %v19355_v55 = vld [vmem:[%s24305_s0 + $0x28] sm:$0x1] }
 0x499   :  { %20651 = vmatpush3.msra.mxu0 %v4816_v54  ;;  %20654 = vmatprep.mubr.f32.mxu0 %v22453_v42  ;;  %v4825_v29 = vsub.f32 %v4823_v56, %v4824_v28  ;;  %v5348_v42 = vand.u32 4294901760, %v5347_v16 }
 0x49a   :  { %20652 = vmatprep.subr.mxu0 %v4823_v56  ;;  %v4819_v3 = vand.u32 4294901760, %v4818_v27  ;;  %v19352_v27 = vld [vmem:[%s24306_s1 + $0xd0] sm:$0xff] }
 0x49b   :  { %20653 = vmatpush3.msra.mxu0 %v4823_v56  ;;  %v4826_v7 = vand.u32 4294901760, %v4825_v29 }
 0x49c   :  { %20643 = vmatprep.subr.mxu1 %v4819_v3  ;;  %20655 = vmatmul.mubr.f32.vlgmr.msra.gmra.mxu0 %v22470_v22 }
 0x49d   :  { %20664 = vmatprep.subr.mxu0 %v4817_v60  ;;  %20644 = vmatpush3.msra.mxu1 %v4819_v3 }
 0x49e   :  { %20665 = vmatpush3.msra.mxu0 %v4817_v60  ;;  %20645 = vmatprep.subr.mxu1 %v4826_v7 }
 0x49f   :  { %20666 = vmatprep.subr.mxu0 %v4824_v28  ;;  %20646 = vmatpush3.msra.mxu1 %v4826_v7 }
 0x4a0   :  { %20667 = vmatpush3.msra.mxu0 %v4824_v28  ;;  %20668 = vmatprep.mubr.f32.mxu0 %v22450_v26 }
 0x4a1   :  { %20648 = vmatmul.mubr.f32.vlgmr.msra.gmra.mxu1 %v22464_v10  ;;  %20657 = vmatprep.subr.mxu1 %v22488_v50 }
 0x4a2   :  { %20669 = vmatmul.mubr.f32.vlgmr.msra.gmra.mxu0 %v22464_v10  ;;  %20678 = vmatprep.subr.mxu0 %v22510_v1 }
 0x4a3   :  { %20658 = vmatpush3.msra.mxu1 %v22488_v50  ;;  %20679 = vmatpush3.msra.mxu0 %v22510_v1 }
 0x4a4   :  { %20682 = vmatprep.mubr.f32.mxu0 %v5292_v19  ;;  %20659 = vmatprep.subr.mxu1 %v22492_v52 }
 0x4a5   :  { %20680 = vmatprep.subr.mxu0 %v22520_v8  ;;  %20660 = vmatpush3.msra.mxu1 %v22492_v52 }
 0x4a6   :  { %20661 = vmatprep.mubr.f32.mxu1 %v4768_v58  ;;  %20681 = vmatpush3.msra.mxu0 %v22520_v8 }
 0x4a7   :  { %20662 = vmatmul.mubr.f32.vlgmr.msra.gmra.mxu1 %v4778_v36  ;;  %20671 = vmatprep.subr.mxu1 %v22488_v50 }
 0x4a8   :  { %20683 = vmatmul.mubr.f32.vlgmr.msra.gmra.mxu0 %v5302_v24  ;;  %20692 = vmatprep.subr.mxu0 %v5338_v11 }
 0x4a9   :  { %20672 = vmatpush3.msra.mxu1 %v22488_v50  ;;  %20693 = vmatpush3.msra.mxu0 %v5338_v11 }
 0x4aa   :  { %20696 = vmatprep.mubr.f32.mxu0 %v22506_v62  ;;  %20673 = vmatprep.subr.mxu1 %v22492_v52  ;;  %v5727_v62 = vsel %vm31_vm1, %v19355_v55, 0 }
 0x4ab   :  { %20694 = vmatprep.subr.mxu0 %v5345_v14  ;;  %20674 = vmatpush3.msra.mxu1 %v22492_v52 }
 0x4ac   :  { %20675 = vmatprep.mubr.f32.mxu1 %v22450_v26  ;;  %20695 = vmatpush3.msra.mxu0 %v5345_v14  ;;  %v19354_v26 = vld [vmem:[%s24305_s0 + $0x20] sm:$0xff] }
 0x4ad   :  { %20676 = vmatmul.mubr.f32.vlgmr.msra.gmra.mxu1 %v22464_v10  ;;  %20685 = vmatprep.subr.mxu1 %v5341_v25  ;;  %v5724_v58 = vsel %vm31_vm1, %v19354_v26, 0 }
 0x4ae   :  { %20697 = vmatmul.mubr.f32.vlgmr.msra.gmra.mxu0 %v22513_v2  ;;  %20706 = vmatprep.subr.mxu0 %v5339_v15  ;;  %v22572_v10 = vand.u32 4294901760, %v5724_v58 }
 0x4af   :  { %20686 = vmatpush3.msra.mxu1 %v5341_v25  ;;  %20689 = vmatprep.mubr.f32.mxu1 %v22486_v49 }
 0x4b0   :  { %20707 = vmatpush3.msra.mxu0 %v5339_v15  ;;  %20710 = vmatprep.mubr.f32.mxu0 %v22486_v49  ;;  %v22575_v22 = vsub.f32 %v5724_v58, %v22572_v10 }
 0x4b1   :  { %20687 = vmatprep.subr.mxu1 %v5348_v42  ;;  %20708 = vmatprep.subr.mxu0 %v5346_v18 }
 0x4b2   :  { %20688 = vmatpush3.msra.mxu1 %v5348_v42  ;;  %20709 = vmatpush3.msra.mxu0 %v5346_v18  ;;  %v5801_v31 = vand.u32 4294901760, %v22575_v22 }
 0x4b3   :  { %20690 = vmatmul.mubr.f32.vlgmr.msra.gmra.mxu1 %v22501_v59  ;;  %20699 = vmatprep.subr.mxu1 %v22510_v1 }
 0x4b4   :  { %20711 = vmatmul.mubr.f32.vlgmr.msra.gmra.mxu0 %v22501_v59  ;;  %20700 = vmatpush3.msra.mxu1 %v22510_v1  ;;  %v5802_v32 = vsub.f32 %v22575_v22, %v5801_v31 }
 0x4b5   :  { %20703 = vmatprep.mubr.f32.mxu1 %v5290_v5  ;;  %20701 = vmatprep.subr.mxu1 %v22520_v8  ;;  %v22597_v5 = vand.u32 4294901760, %v5727_v62 }
 0x4b6   :  { %20702 = vmatpush3.msra.mxu1 %v22520_v8  ;;  %v5803_v34 = vand.u32 4294901760, %v5802_v32 }
 0x4b7   :  { %20704 = vmatmul.mubr.f32.vlgmr.msra.gmra.mxu1 %v5300_v13  ;;  %20713 = vmatprep.subr.mxu1 %v22510_v1  ;;  %v22604_v19 = vsub.f32 %v5727_v62, %v22597_v5 }
 0x4b8   :  { %20714 = vmatpush3.msra.mxu1 %v22510_v1  ;;  %20717 = vmatprep.mubr.f32.mxu1 %v22486_v49  ;;  %v19363_v1 = vld [vmem:[%s24305_s0 + $0x148] sm:$0x1] }
 0x4b9   :  { %20715 = vmatprep.subr.mxu1 %v22520_v8  ;;  %20724 = vmatprep.mubr.f32.mxu0 %v5803_v34  ;;  %v5811_v32 = vand.u32 4294901760, %v22604_v19 }
 0x4ba   :  { %20716 = vmatpush3.msra.mxu1 %v22520_v8 }
 0x4bb   :  { %20718 = vmatmul.mubr.f32.vlgmr.msra.gmra.mxu1 %v22501_v59  ;;  %v19353_v59 = vld [vmem:[%s24306_s1 + $0xd8] sm:$0x1f] }
 0x4bc   :  { %20731 = vmatprep.mubr.f32.mxu1 %v22572_v10 }
 0x558   :  { %v20642_v35 = vpop.f32.mrf.mxu0 }
 0x55a   :  { %v4772_v36 = vpop.f32.mrf.mxu0 }
 0x55c   :  { %v20656_v37 = vpop.f32.mrf.mxu0 }
 0x55e   :  { %v4945_v38 = vpop.f32.mrf.mxu0 }
 0x561   :  { %v20649_v39 = vpop.f32.mrf.mxu1 }
 0x562   :  { %v4870_v40 = vadd.f32 %v20649_v39, %v20642_v35  ;;  %v20670_v41 = vpop.f32.mrf.mxu0 }
 0x563   :  { %v4863_v33 = vpop.f32.mrf.mxu1 }
 0x564   :  { %v4864_v43 = vadd.f32 %v4863_v33, %v4772_v36  ;;  %v5112_v44 = vpop.f32.mrf.mxu0  ;;  %v4953_v45 = vadd.f32 %v20656_v37, %v4870_v40 }
 0x566   :  { %v4946_v46 = vadd.f32 %v4945_v38, %v4864_v43 }
 0x567   :  { %v20663_v48 = vpop.f32.mrf.mxu1 }
 0x568   :  { %v5036_v49 = vadd.f32 %v20663_v48, %v4953_v45  ;;  %v20684_v50 = vpop.f32.mrf.mxu0  ;;  %v19361_v48 = vld [vmem:[%s24305_s0 + $0x48] sm:$0x1] }
 0x569   :  { %v5027_v51 = vpop.f32.mrf.mxu1  ;;  %v6255_v55 = vsel %vm35_vm0, %v19361_v48, 0 }
 0x56a   :  { %v5028_v52 = vadd.f32 %v5027_v51, %v4946_v46  ;;  %v5119_v53 = vadd.f32 %v20670_v41, %v5036_v49  ;;  %v5294_v54 = vpop.f32.mrf.mxu0 }
 0x56c   :  { %v5113_v56 = vadd.f32 %v5112_v44, %v5028_v52 }
 0x56d   :  { %v20677_v60 = vpop.f32.mrf.mxu1 }
 0x56e   :  { %v5198_v61 = vadd.f32 %v20677_v60, %v5119_v53  ;;  %v20698_v28 = vpop.f32.mrf.mxu0 }
 0x56f   :  { %v5191_v29 = vpop.f32.mrf.mxu1 }
 0x570   :  { %v22595_v2 = vadd.f32 %v19353_v59, %v5198_v61  ;;  %v5192_v3 = vadd.f32 %v5191_v29, %v5113_v56  ;;  %v5467_v11 = vpop.f32.mrf.mxu0  ;;  %v22642_v61 = vand.u32 4294901760, %v6255_v55  ;;  %v19360_v29 = vld [vmem:[%s24305_s0 + $0x40] sm:$0xff] }
 0x572   :  { %v5201_v7 = vadd.f32 %v19352_v27, %v5192_v3  ;;  %v6760_v8 = vmul.f32 %v19363_v1, %v22595_v2  ;;  %v6252_v45 = vsel %vm31_vm1, %v22595_v2, 0  ;;  %v22652_v3 = vand.u32 4294901760, %v19360_v29 }
 0x573   :  { %v20691_v12 = vpop.f32.mrf.mxu1  ;;  %v22633_v52 = vand.u32 4294901760, %v6252_v45 }
 0x574   :  { %v5392_v13 = vadd.f32 %v20691_v12, %v20684_v50  ;;  %v6759_v14 = vmul.f32 %v19362_v6, %v5201_v7  ;;  %v22607_v20 = vadd.f32 %v6760_v8, %v22354_v9  ;;  %v20712_v25 = vpop.f32.mrf.mxu0  ;;  %v6249_v38 = vsel %vm31_vm1, %v5201_v7, 0 }
 0x575   :  { %v5385_v15 = vpop.f32.mrf.mxu1  ;;  %v22618_v43 = vand.u32 4294901760, %v6249_v38  ;;  %v22645_v62 = vsub.f32 %v6252_v45, %v22633_v52  ;;  %v6374_v6 = vsub.f32 %v6255_v55, %v22642_v61 }
 0x576   :  { %v5386_v17 = vadd.f32 %v5385_v15, %v5294_v54  ;;  %v5475_v18 = vadd.f32 %v20698_v28, %v5392_v13  ;;  %v22610_v24 = vadd.f32 %v6759_v14, %v22356_v0  ;;  %v5634_v36 = vpop.f32.mrf.mxu0  ;;  %v5812_v0 = vsub.f32 %v22604_v19, %v5811_v32 }
 0x577   :  { %v20705_v16 = vpop.f32.mrf.mxu1  ;;  %v22636_v53 = vsub.f32 %v6249_v38, %v22618_v43  ;;  %v6336_v8 = vand.u32 4294901760, %v22645_v62  ;;  %v6375_v12 = vand.u32 4294901760, %v6374_v6 }
 0x578   :  { %v5558_v42 = vadd.f32 %v20705_v16, %v5475_v18  ;;  %v5468_v26 = vadd.f32 %v5467_v11, %v5386_v17  ;;  %v5813_v50 = vand.u32 4294901760, %v5812_v0  ;;  %v6381_v11 = vsub.f32 %v19360_v29, %v22652_v3 }
 0x579   :  { %v5549_v58 = vpop.f32.mrf.mxu1  ;;  %v6326_v27 = vand.u32 4294901760, %v22636_v53  ;;  %v6337_v14 = vsub.f32 %v22645_v62, %v6336_v8  ;;  %v6376_v15 = vsub.f32 %v6374_v6, %v6375_v12 }
 0x57a   :  { %v5550_v34 = vadd.f32 %v5549_v58, %v5468_v26  ;;  %v5641_v35 = vadd.f32 %v20712_v25, %v5558_v42  ;;  %v6382_v17 = vand.u32 4294901760, %v6381_v11 }
 0x57b   :  { %v20719_v37 = vpop.f32.mrf.mxu1  ;;  %v6327_v7 = vsub.f32 %v22636_v53, %v6326_v27  ;;  %v6338_v18 = vand.u32 4294901760, %v6337_v14  ;;  %v6377_v25 = vand.u32 4294901760, %v6376_v15  ;;  %v22731_v15 = vld [vmem:[%s24305_s0 + $0x128] sm:$0x1] }
 0x57c   :  { %v5720_v9 = vadd.f32 %v20719_v37, %v5641_v35  ;;  %v5635_v39 = vadd.f32 %v5634_v36, %v5550_v34  ;;  %v6383_v16 = vsub.f32 %v6381_v11, %v6382_v17 }
 0x57d   :  { %v5713_v40 = vpop.f32.mrf.mxu1  ;;  %v6328_v13 = vand.u32 4294901760, %v6327_v7 }
 0x57e   :  { %v5730_v41 = vsel %vm35_vm0, %v5720_v9, 0  ;;  %v5714_v33 = vadd.f32 %v5713_v40, %v5635_v39 }
 0x57f   :  { %v22620_v44 = vand.u32 4294901760, %v5730_v41 }
 0x580   :  { %v22624_v46 = vand.u32 4294901760, %v5714_v33 }
 0x581   :  { %v5849_v49 = vsub.f32 %v5730_v41, %v22620_v44  ;;  %20720 = vmatprep.subr.mxu0 %v22620_v44 }
 0x582   :  { %v5856_v51 = vsub.f32 %v5714_v33, %v22624_v46  ;;  %20721 = vmatpush3.msra.mxu0 %v22620_v44 }
 0x583   :  { %20722 = vmatprep.subr.mxu0 %v22624_v46  ;;  %v5850_v54 = vand.u32 4294901760, %v5849_v49 }
 0x584   :  { %20723 = vmatpush3.msra.mxu0 %v22624_v46  ;;  %v5857_v56 = vand.u32 4294901760, %v5856_v51 }
 0x585   :  { %20725 = vmatmul.mubr.f32.vlgmr.msra.gmra.mxu0 %v5813_v50  ;;  %20734 = vmatprep.subr.mxu0 %v5849_v49  ;;  %v5851_v59 = vsub.f32 %v5849_v49, %v5850_v54 }
 0x586   :  { %20735 = vmatpush3.msra.mxu0 %v5849_v49  ;;  %20738 = vmatprep.mubr.f32.mxu0 %v22575_v22  ;;  %v5858_v60 = vsub.f32 %v5856_v51, %v5857_v56  ;;  %v6384_v22 = vand.u32 4294901760, %v6383_v16 }
 0x587   :  { %20736 = vmatprep.subr.mxu0 %v5856_v51  ;;  %v5852_v28 = vand.u32 4294901760, %v5851_v59 }
 0x588   :  { %20737 = vmatpush3.msra.mxu0 %v5856_v51  ;;  %v5859_v1 = vand.u32 4294901760, %v5858_v60 }
 0x589   :  { %20727 = vmatprep.subr.mxu1 %v5852_v28  ;;  %20739 = vmatmul.mubr.f32.vlgmr.msra.gmra.mxu0 %v22604_v19 }
 0x58a   :  { %20748 = vmatprep.subr.mxu0 %v5850_v54  ;;  %20728 = vmatpush3.msra.mxu1 %v5852_v28 }
 0x58b   :  { %20749 = vmatpush3.msra.mxu0 %v5850_v54  ;;  %20729 = vmatprep.subr.mxu1 %v5859_v1 }
 0x58c   :  { %20750 = vmatprep.subr.mxu0 %v5857_v56  ;;  %20730 = vmatpush3.msra.mxu1 %v5859_v1 }
 0x58d   :  { %20751 = vmatpush3.msra.mxu0 %v5857_v56  ;;  %20752 = vmatprep.mubr.f32.mxu0 %v22572_v10 }
 0x58e   :  { %20732 = vmatmul.mubr.f32.vlgmr.msra.gmra.mxu1 %v22597_v5  ;;  %20741 = vmatprep.subr.mxu1 %v22620_v44 }
 0x58f   :  { %20753 = vmatmul.mubr.f32.vlgmr.msra.gmra.mxu0 %v22597_v5  ;;  %20762 = vmatprep.subr.mxu0 %v22642_v61 }
 0x590   :  { %20742 = vmatpush3.msra.mxu1 %v22620_v44  ;;  %20763 = vmatpush3.msra.mxu0 %v22642_v61 }
 0x591   :  { %20766 = vmatprep.mubr.f32.mxu0 %v6328_v13  ;;  %20743 = vmatprep.subr.mxu1 %v22624_v46 }
 0x592   :  { %20764 = vmatprep.subr.mxu0 %v22652_v3  ;;  %20744 = vmatpush3.msra.mxu1 %v22624_v46 }
 0x593   :  { %20745 = vmatprep.mubr.f32.mxu1 %v5801_v31  ;;  %20765 = vmatpush3.msra.mxu0 %v22652_v3 }
 0x594   :  { %20746 = vmatmul.mubr.f32.vlgmr.msra.gmra.mxu1 %v5811_v32  ;;  %20755 = vmatprep.subr.mxu1 %v22620_v44 }
 0x595   :  { %20767 = vmatmul.mubr.f32.vlgmr.msra.gmra.mxu0 %v6338_v18  ;;  %20776 = vmatprep.subr.mxu0 %v6374_v6 }
 0x596   :  { %20756 = vmatpush3.msra.mxu1 %v22620_v44  ;;  %20777 = vmatpush3.msra.mxu0 %v6374_v6 }
 0x597   :  { %20780 = vmatprep.mubr.f32.mxu0 %v22636_v53  ;;  %20757 = vmatprep.subr.mxu1 %v22624_v46 }
 0x598   :  { %20778 = vmatprep.subr.mxu0 %v6381_v11  ;;  %20758 = vmatpush3.msra.mxu1 %v22624_v46  ;;  %v19365_v46 = vld [vmem:[%s24306_s1 + $0x48] sm:$0x1f] }
 0x599   :  { %20759 = vmatprep.mubr.f32.mxu1 %v22572_v10  ;;  %20779 = vmatpush3.msra.mxu0 %v6381_v11  ;;  %v19364_v10 = vld [vmem:[%s24306_s1 + $0x40] sm:$0xff]  ;;  %v6767_v51 = vsel %vm31_vm1, %v19365_v46, 0 }
 0x59a   :  { %20760 = vmatmul.mubr.f32.vlgmr.msra.gmra.mxu1 %v22597_v5  ;;  %20769 = vmatprep.subr.mxu1 %v6377_v25  ;;  %v6764_v31 = vsel %vm31_vm1, %v19364_v10, 0  ;;  %v22718_v56 = vand.u32 4294901760, %v6767_v51 }
 0x59b   :  { %20781 = vmatmul.mubr.f32.vlgmr.msra.gmra.mxu0 %v22645_v62  ;;  %20790 = vmatprep.subr.mxu0 %v6375_v12  ;;  %v22704_v5 = vand.u32 4294901760, %v6764_v31 }
 0x59c   :  { %20770 = vmatpush3.msra.mxu1 %v6377_v25  ;;  %20773 = vmatprep.mubr.f32.mxu1 %v22618_v43  ;;  %v22724_v1 = vsub.f32 %v6767_v51, %v22718_v56 }
 0x59d   :  { %20791 = vmatpush3.msra.mxu0 %v6375_v12  ;;  %20794 = vmatprep.mubr.f32.mxu0 %v22618_v43  ;;  %v22707_v19 = vsub.f32 %v6764_v31, %v22704_v5 }
 0x59e   :  { %20771 = vmatprep.subr.mxu1 %v6384_v22  ;;  %20792 = vmatprep.subr.mxu0 %v6382_v17  ;;  %v6851_v18 = vand.u32 4294901760, %v22724_v1 }
 0x59f   :  { %20772 = vmatpush3.msra.mxu1 %v6384_v22  ;;  %20793 = vmatpush3.msra.mxu0 %v6382_v17  ;;  %v6841_v42 = vand.u32 4294901760, %v22707_v19 }
 0x5a0   :  { %20774 = vmatmul.mubr.f32.vlgmr.msra.gmra.mxu1 %v22633_v52  ;;  %20783 = vmatprep.subr.mxu1 %v22642_v61 }
 0x5a1   :  { %20795 = vmatmul.mubr.f32.vlgmr.msra.gmra.mxu0 %v22633_v52  ;;  %20784 = vmatpush3.msra.mxu1 %v22642_v61  ;;  %v6842_v26 = vsub.f32 %v22707_v19, %v6841_v42 }
 0x5a2   :  { %20787 = vmatprep.mubr.f32.mxu1 %v6326_v27  ;;  %20785 = vmatprep.subr.mxu1 %v22652_v3  ;;  %v19358_v27 = vld [vmem:[%s24305_s0 + $0x120] sm:$0xff] }
 0x5a3   :  { %20786 = vmatpush3.msra.mxu1 %v22652_v3  ;;  %v6843_v58 = vand.u32 4294901760, %v6842_v26 }
 0x5a4   :  { %20788 = vmatmul.mubr.f32.vlgmr.msra.gmra.mxu1 %v6336_v8  ;;  %20797 = vmatprep.subr.mxu1 %v22642_v61 }
 0x5a5   :  { %20798 = vmatpush3.msra.mxu1 %v22642_v61  ;;  %20801 = vmatprep.mubr.f32.mxu1 %v22618_v43 }
 0x5a6   :  { %20799 = vmatprep.subr.mxu1 %v22652_v3  ;;  %20808 = vmatprep.mubr.f32.mxu0 %v6843_v58 }
 0x5a7   :  { %20800 = vmatpush3.msra.mxu1 %v22652_v3 }
 0x5a8   :  { %20802 = vmatmul.mubr.f32.vlgmr.msra.gmra.mxu1 %v22633_v52 }
 0x5a9   :  { %20815 = vmatprep.mubr.f32.mxu1 %v22704_v5 }
 0x645   :  { %v20726_v32 = vpop.f32.mrf.mxu0 }
 0x647   :  { %v5805_v34 = vpop.f32.mrf.mxu0 }
 0x649   :  { %v20740_v35 = vpop.f32.mrf.mxu0 }
 0x64b   :  { %v5978_v36 = vpop.f32.mrf.mxu0 }
 0x64e   :  { %v20733_v37 = vpop.f32.mrf.mxu1 }
 0x64f   :  { %v20754_v38 = vpop.f32.mrf.mxu0  ;;  %v5903_v41 = vadd.f32 %v20733_v37, %v20726_v32 }
 0x650   :  { %v5896_v9 = vpop.f32.mrf.mxu1 }
 0x651   :  { %v5897_v39 = vadd.f32 %v5896_v9, %v5805_v34  ;;  %v6145_v40 = vpop.f32.mrf.mxu0  ;;  %v5986_v48 = vadd.f32 %v20740_v35, %v5903_v41  ;;  %v6852_v35 = vsub.f32 %v22724_v1, %v6851_v18 }
 0x653   :  { %v5979_v43 = vadd.f32 %v5978_v36, %v5897_v39 }
 0x654   :  { %v20747_v0 = vpop.f32.mrf.mxu1 }
 0x655   :  { %v20768_v33 = vpop.f32.mrf.mxu0  ;;  %v6069_v54 = vadd.f32 %v20747_v0, %v5986_v48  ;;  %v19371_v0 = vld [vmem:[%s24305_s0 + $0xb8] sm:$0x1] }
 0x656   :  { %v6060_v44 = vpop.f32.mrf.mxu1  ;;  %v7292_v46 = vsel %vm35_vm0, %v19371_v0, 0 }
 0x657   :  { %v6330_v45 = vpop.f32.mrf.mxu0  ;;  %v6061_v49 = vadd.f32 %v6060_v44, %v5979_v43  ;;  %v6152_v61 = vadd.f32 %v20754_v38, %v6069_v54 }
 0x659   :  { %v6146_v55 = vadd.f32 %v6145_v40, %v6061_v49 }
 0x65a   :  { %v20761_v50 = vpop.f32.mrf.mxu1 }
 0x65b   :  { %v20782_v52 = vpop.f32.mrf.mxu0  ;;  %v6231_v11 = vadd.f32 %v20761_v50, %v6152_v61 }
 0x65c   :  { %v6224_v53 = vpop.f32.mrf.mxu1 }
 0x65d   :  { %v6503_v59 = vpop.f32.mrf.mxu0  ;;  %v6225_v62 = vadd.f32 %v6224_v53, %v6146_v55  ;;  %v22735_v31 = vadd.f32 %v22731_v15, %v6231_v11 }
 0x65f   :  { %v22726_v12 = vadd.f32 %v19358_v27, %v6225_v62  ;;  %v7289_v39 = vsel %vm31_vm1, %v22735_v31, 0 }
 0x660   :  { %v20775_v60 = vpop.f32.mrf.mxu1  ;;  %v22758_v44 = vand.u32 4294901760, %v7289_v39 }
 0x661   :  { %v6428_v28 = vadd.f32 %v20775_v60, %v20768_v33  ;;  %v20796_v7 = vpop.f32.mrf.mxu0  ;;  %v7286_v26 = vsel %vm31_vm1, %v22726_v12, 0  ;;  %v6853_v33 = vand.u32 4294901760, %v6852_v35 }
 0x662   :  { %v6421_v29 = vpop.f32.mrf.mxu1  ;;  %v22743_v38 = vand.u32 4294901760, %v7286_v26  ;;  %v22770_v53 = vsub.f32 %v7289_v39, %v22758_v44 }
 0x663   :  { %v6422_v3 = vadd.f32 %v6421_v29, %v6330_v45  ;;  %v6511_v6 = vadd.f32 %v20782_v52, %v6428_v28  ;;  %v6670_v22 = vpop.f32.mrf.mxu0  ;;  %v22767_v52 = vand.u32 4294901760, %v7292_v46 }
 0x664   :  { %v20789_v8 = vpop.f32.mrf.mxu1  ;;  %v22763_v48 = vsub.f32 %v7286_v26, %v22743_v38  ;;  %v7373_v27 = vand.u32 4294901760, %v22770_v53 }
 0x665   :  { %v6594_v13 = vadd.f32 %v20789_v8, %v6511_v6  ;;  %v6504_v14 = vadd.f32 %v6503_v59, %v6422_v3  ;;  %v19370_v59 = vld [vmem:[%s24305_s0 + $0xb0] sm:$0xff]  ;;  %v7411_v62 = vsub.f32 %v7292_v46, %v22767_v52  ;;  %v19369_v46 = vld [vmem:[%s24305_s0 + $0x38] sm:$0x1] }
 0x666   :  { %v6585_v17 = vpop.f32.mrf.mxu1  ;;  %v7363_v55 = vand.u32 4294901760, %v22763_v48  ;;  %v22777_v61 = vand.u32 4294901760, %v19370_v59 }
 0x667   :  { %v6586_v25 = vadd.f32 %v6585_v17, %v6504_v14  ;;  %v6677_v16 = vadd.f32 %v20796_v7, %v6594_v13  ;;  %v7412_v3 = vand.u32 4294901760, %v7411_v62  ;;  %v7374_v7 = vsub.f32 %v22770_v53, %v7373_v27 }
 0x668   :  { %v20803_v10 = vpop.f32.mrf.mxu1  ;;  %v7364_v28 = vsub.f32 %v22763_v48, %v7363_v55  ;;  %v7418_v29 = vsub.f32 %v19370_v59, %v22777_v61  ;;  %v22855_v59 = vld [vmem:[%s24305_s0 + $0x138] sm:$0x1] }
 0x669   :  { %v6756_v58 = vadd.f32 %v20803_v10, %v6677_v16  ;;  %v6671_v32 = vadd.f32 %v6670_v22, %v6586_v25  ;;  %v7413_v8 = vsub.f32 %v7411_v62, %v7412_v3  ;;  %v7375_v13 = vand.u32 4294901760, %v7374_v7 }
 0x66a   :  { %v6749_v34 = vpop.f32.mrf.mxu1  ;;  %v7365_v6 = vand.u32 4294901760, %v7364_v28  ;;  %v7419_v11 = vand.u32 4294901760, %v7418_v29  ;;  %v22864_v28 = vld [vmem:[%s24305_s0 + $0x130] sm:$0xff] }
 0x66b   :  { %v6770_v36 = vsel %vm35_vm0, %v6756_v58, 0  ;;  %v6750_v37 = vadd.f32 %v6749_v34, %v6671_v32  ;;  %v7414_v14 = vand.u32 4294901760, %v7413_v8 }
 0x66c   :  { %v22745_v9 = vand.u32 4294901760, %v6770_v36  ;;  %v7420_v17 = vsub.f32 %v7418_v29, %v7419_v11 }
 0x66d   :  { %v22749_v40 = vand.u32 4294901760, %v6750_v37 }
 0x66e   :  { %v6889_v41 = vsub.f32 %v6770_v36, %v22745_v9  ;;  %20804 = vmatprep.subr.mxu0 %v22745_v9 }
 0x66f   :  { %v6896_v43 = vsub.f32 %v6750_v37, %v22749_v40  ;;  %20805 = vmatpush3.msra.mxu0 %v22745_v9 }
 0x670   :  { %20806 = vmatprep.subr.mxu0 %v22749_v40  ;;  %v6890_v45 = vand.u32 4294901760, %v6889_v41 }
 0x671   :  { %20807 = vmatpush3.msra.mxu0 %v22749_v40  ;;  %v6897_v49 = vand.u32 4294901760, %v6896_v43 }
 0x672   :  { %20809 = vmatmul.mubr.f32.vlgmr.msra.gmra.mxu0 %v6853_v33  ;;  %20818 = vmatprep.subr.mxu0 %v6889_v41  ;;  %v6891_v50 = vsub.f32 %v6889_v41, %v6890_v45 }
 0x673   :  { %20819 = vmatpush3.msra.mxu0 %v6889_v41  ;;  %20822 = vmatprep.mubr.f32.mxu0 %v22707_v19  ;;  %v6898_v51 = vsub.f32 %v6896_v43, %v6897_v49  ;;  %v7421_v19 = vand.u32 4294901760, %v7420_v17 }
 0x674   :  { %20820 = vmatprep.subr.mxu0 %v6896_v43  ;;  %v6892_v54 = vand.u32 4294901760, %v6891_v50 }
 0x675   :  { %20821 = vmatpush3.msra.mxu0 %v6896_v43  ;;  %v6899_v60 = vand.u32 4294901760, %v6898_v51 }
 0x676   :  { %20811 = vmatprep.subr.mxu1 %v6892_v54  ;;  %20823 = vmatmul.mubr.f32.vlgmr.msra.gmra.mxu0 %v22724_v1 }
 0x677   :  { %20832 = vmatprep.subr.mxu0 %v6890_v45  ;;  %20812 = vmatpush3.msra.mxu1 %v6892_v54  ;;  %v19366_v54 = vld [vmem:[%s24306_s1 + $0xc0] sm:$0xff] }
 0x678   :  { %20833 = vmatpush3.msra.mxu0 %v6890_v45  ;;  %20813 = vmatprep.subr.mxu1 %v6899_v60 }
 0x679   :  { %20834 = vmatprep.subr.mxu0 %v6897_v49  ;;  %20814 = vmatpush3.msra.mxu1 %v6899_v60 }
 0x67a   :  { %20835 = vmatpush3.msra.mxu0 %v6897_v49  ;;  %20836 = vmatprep.mubr.f32.mxu0 %v22704_v5  ;;  %v19367_v49 = vld [vmem:[%s24306_s1 + $0xc8] sm:$0x1f] }
 0x67b   :  { %20816 = vmatmul.mubr.f32.vlgmr.msra.gmra.mxu1 %v22718_v56  ;;  %20825 = vmatprep.subr.mxu1 %v22745_v9 }
 0x67c   :  { %20837 = vmatmul.mubr.f32.vlgmr.msra.gmra.mxu0 %v22718_v56  ;;  %20846 = vmatprep.subr.mxu0 %v22767_v52 }
 0x67d   :  { %20826 = vmatpush3.msra.mxu1 %v22745_v9  ;;  %20847 = vmatpush3.msra.mxu0 %v22767_v52 }
 0x67e   :  { %20850 = vmatprep.mubr.f32.mxu0 %v7365_v6  ;;  %20827 = vmatprep.subr.mxu1 %v22749_v40 }
 0x67f   :  { %20848 = vmatprep.subr.mxu0 %v22777_v61  ;;  %20828 = vmatpush3.msra.mxu1 %v22749_v40 }
 0x680   :  { %20829 = vmatprep.mubr.f32.mxu1 %v6841_v42  ;;  %20849 = vmatpush3.msra.mxu0 %v22777_v61 }
 0x681   :  { %20830 = vmatmul.mubr.f32.vlgmr.msra.gmra.mxu1 %v6851_v18  ;;  %20839 = vmatprep.subr.mxu1 %v22745_v9 }
 0x682   :  { %20851 = vmatmul.mubr.f32.vlgmr.msra.gmra.mxu0 %v7375_v13  ;;  %20860 = vmatprep.subr.mxu0 %v7411_v62 }
 0x683   :  { %20840 = vmatpush3.msra.mxu1 %v22745_v9  ;;  %20861 = vmatpush3.msra.mxu0 %v7411_v62 }
 0x684   :  { %20864 = vmatprep.mubr.f32.mxu0 %v22763_v48  ;;  %20841 = vmatprep.subr.mxu1 %v22749_v40 }
 0x685   :  { %20862 = vmatprep.subr.mxu0 %v7418_v29  ;;  %20842 = vmatpush3.msra.mxu1 %v22749_v40 }
 0x686   :  { %20843 = vmatprep.mubr.f32.mxu1 %v22704_v5  ;;  %20863 = vmatpush3.msra.mxu0 %v7418_v29  ;;  %v22828_v5 = vld [vmem:[%s24305_s0 + $0x30] sm:$0xff] }
 0x687   :  { %20844 = vmatmul.mubr.f32.vlgmr.msra.gmra.mxu1 %v22718_v56  ;;  %20853 = vmatprep.subr.mxu1 %v7414_v14  ;;  %v7797_v42 = vsel %vm31_vm1, %v22828_v5, 0 }
 0x688   :  { %20865 = vmatmul.mubr.f32.vlgmr.msra.gmra.mxu0 %v22770_v53  ;;  %20874 = vmatprep.subr.mxu0 %v7412_v3  ;;  %v22832_v56 = vand.u32 4294901760, %v7797_v42 }
 0x689   :  { %20854 = vmatpush3.msra.mxu1 %v7414_v14  ;;  %20857 = vmatprep.mubr.f32.mxu1 %v22743_v38 }
 0x68a   :  { %20875 = vmatpush3.msra.mxu0 %v7412_v3  ;;  %20878 = vmatprep.mubr.f32.mxu0 %v22743_v38  ;;  %v22835_v1 = vsub.f32 %v7797_v42, %v22832_v56 }
 0x68b   :  { %20855 = vmatprep.subr.mxu1 %v7421_v19  ;;  %20876 = vmatprep.subr.mxu0 %v7419_v11 }
 0x68c   :  { %20856 = vmatpush3.msra.mxu1 %v7421_v19  ;;  %20877 = vmatpush3.msra.mxu0 %v7419_v11  ;;  %v7874_v18 = vand.u32 4294901760, %v22835_v1 }
 0x68d   :  { %20858 = vmatmul.mubr.f32.vlgmr.msra.gmra.mxu1 %v22758_v44  ;;  %20867 = vmatprep.subr.mxu1 %v22767_v52 }
 0x68e   :  { %20879 = vmatmul.mubr.f32.vlgmr.msra.gmra.mxu0 %v22758_v44  ;;  %20868 = vmatpush3.msra.mxu1 %v22767_v52  ;;  %v7875_v25 = vsub.f32 %v22835_v1, %v7874_v18 }
 0x68f   :  { %20871 = vmatprep.mubr.f32.mxu1 %v7363_v55  ;;  %20869 = vmatprep.subr.mxu1 %v22777_v61 }
 0x690   :  { %20870 = vmatpush3.msra.mxu1 %v22777_v61  ;;  %v7876_v16 = vand.u32 4294901760, %v7875_v25 }
 0x691   :  { %20872 = vmatmul.mubr.f32.vlgmr.msra.gmra.mxu1 %v7373_v27  ;;  %20881 = vmatprep.subr.mxu1 %v22767_v52 }
 0x692   :  { %20882 = vmatpush3.msra.mxu1 %v22767_v52  ;;  %20885 = vmatprep.mubr.f32.mxu1 %v22743_v38  ;;  %v7800_v52 = vsel %vm31_vm1, %v19369_v46, 0 }
 0x693   :  { %20883 = vmatprep.subr.mxu1 %v22777_v61  ;;  %20892 = vmatprep.mubr.f32.mxu0 %v7876_v16  ;;  %v22859_v62 = vand.u32 4294901760, %v7800_v52 }
 0x694   :  { %20884 = vmatpush3.msra.mxu1 %v22777_v61 }
 0x695   :  { %20886 = vmatmul.mubr.f32.vlgmr.msra.gmra.mxu1 %v22758_v44  ;;  %v22870_v13 = vsub.f32 %v7800_v52, %v22859_v62 }
 0x696   :  { %20899 = vmatprep.mubr.f32.mxu1 %v22832_v56 }
 0x732   :  { %v20810_v22 = vpop.f32.mrf.mxu0 }
 0x734   :  { %v6845_v10 = vpop.f32.mrf.mxu0 }
 0x736   :  { %v20824_v26 = vpop.f32.mrf.mxu0 }
 0x738   :  { %v7018_v58 = vpop.f32.mrf.mxu0 }
 0x73b   :  { %v20817_v32 = vpop.f32.mrf.mxu1 }
 0x73c   :  { %v6943_v34 = vadd.f32 %v20817_v32, %v20810_v22  ;;  %v20838_v35 = vpop.f32.mrf.mxu0 }
 0x73d   :  { %v6936_v36 = vpop.f32.mrf.mxu1 }
 0x73e   :  { %v6937_v37 = vadd.f32 %v6936_v36, %v6845_v10  ;;  %v7185_v38 = vpop.f32.mrf.mxu0  ;;  %v7026_v9 = vadd.f32 %v20824_v26, %v6943_v34 }
 0x740   :  { %v7019_v39 = vadd.f32 %v7018_v58, %v6937_v37  ;;  %v7884_v58 = vand.u32 4294901760, %v22870_v13 }
 0x741   :  { %v20831_v40 = vpop.f32.mrf.mxu1 }
 0x742   :  { %v7109_v0 = vadd.f32 %v20831_v40, %v7026_v9  ;;  %v20852_v41 = vpop.f32.mrf.mxu0 }
 0x743   :  { %v7100_v33 = vpop.f32.mrf.mxu1 }
 0x744   :  { %v7101_v43 = vadd.f32 %v7100_v33, %v7019_v39  ;;  %v7192_v44 = vadd.f32 %v20838_v35, %v7109_v0  ;;  %v7367_v45 = vpop.f32.mrf.mxu0 }
 0x746   :  { %v7186_v48 = vadd.f32 %v7185_v38, %v7101_v43 }
 0x747   :  { %v20845_v50 = vpop.f32.mrf.mxu1 }
 0x748   :  { %v7271_v51 = vadd.f32 %v20845_v50, %v7192_v44  ;;  %v20866_v53 = vpop.f32.mrf.mxu0 }
 0x749   :  { %v7264_v55 = vpop.f32.mrf.mxu1 }
 0x74a   :  { %v22857_v60 = vadd.f32 %v19367_v49, %v7271_v51  ;;  %v7265_v61 = vadd.f32 %v7264_v55, %v7186_v48  ;;  %v7540_v3 = vpop.f32.mrf.mxu0  ;;  %v8321_v51 = vsel %vm35_vm0, %v19369_v46, 0 }
 0x74b   :  { %v22904_v55 = vand.u32 4294901760, %v8321_v51 }
 0x74c   :  { %v7274_v27 = vadd.f32 %v19366_v54, %v7265_v61  ;;  %v8826_v29 = vmul.f32 %v22855_v59, %v22857_v60  ;;  %v8319_v33 = vsel %vm31_vm1, %v22857_v60, 0 }
 0x74d   :  { %v20859_v6 = vpop.f32.mrf.mxu1  ;;  %v22896_v49 = vand.u32 4294901760, %v8319_v33 }
 0x74e   :  { %v7465_v7 = vadd.f32 %v20859_v6, %v20852_v41  ;;  %v8825_v8 = vmul.f32 %v22864_v28, %v7274_v27  ;;  %v22873_v14 = vadd.f32 %v8826_v29, %v22607_v20  ;;  %v20880_v25 = vpop.f32.mrf.mxu0  ;;  %v8316_v37 = vsel %vm31_vm1, %v7274_v27, 0 }
 0x74f   :  { %v7458_v11 = vpop.f32.mrf.mxu1  ;;  %v22884_v0 = vand.u32 4294901760, %v8316_v37  ;;  %v22908_v27 = vsub.f32 %v8319_v33, %v22896_v49  ;;  %v22913_v6 = vand.u32 4294901760, %v22828_v5 }
 0x750   :  { %v7459_v17 = vadd.f32 %v7458_v11, %v7367_v45  ;;  %v7548_v19 = vadd.f32 %v20866_v53, %v7465_v7  ;;  %v22876_v42 = vadd.f32 %v8825_v8, %v22610_v24  ;;  %v7707_v35 = vpop.f32.mrf.mxu0  ;;  %v7885_v24 = vsub.f32 %v22870_v13, %v7884_v58 }
 0x751   :  { %v20873_v16 = vpop.f32.mrf.mxu1  ;;  %v22899_v50 = vsub.f32 %v8316_v37, %v22884_v0  ;;  %v8440_v7 = vsub.f32 %v8321_v51, %v22904_v55  ;;  %v8402_v11 = vand.u32 4294901760, %v22908_v27 }
 0x752   :  { %v7631_v22 = vadd.f32 %v20873_v16, %v7548_v19  ;;  %v7541_v10 = vadd.f32 %v7540_v3, %v7459_v17  ;;  %v7886_v45 = vand.u32 4294901760, %v7885_v24  ;;  %v8447_v17 = vsub.f32 %v22828_v5, %v22913_v6 }
 0x753   :  { %v7622_v26 = vpop.f32.mrf.mxu1  ;;  %v8392_v46 = vand.u32 4294901760, %v22899_v50  ;;  %v8441_v19 = vand.u32 4294901760, %v8440_v7  ;;  %v8403_v16 = vsub.f32 %v22908_v27, %v8402_v11 }
 0x754   :  { %v7623_v32 = vadd.f32 %v7622_v26, %v7541_v10  ;;  %v7714_v34 = vadd.f32 %v20880_v25, %v7631_v22  ;;  %v8448_v22 = vand.u32 4294901760, %v8447_v17 }
 0x755   :  { %v20887_v36 = vpop.f32.mrf.mxu1  ;;  %v8393_v8 = vsub.f32 %v22899_v50, %v8392_v46  ;;  %v8442_v5 = vsub.f32 %v8440_v7, %v8441_v19  ;;  %v8404_v10 = vand.u32 4294901760, %v8403_v16 }
 0x756   :  { %v7793_v20 = vadd.f32 %v20887_v36, %v7714_v34  ;;  %v7708_v38 = vadd.f32 %v7707_v35, %v7623_v32  ;;  %v8449_v32 = vsub.f32 %v8447_v17, %v8448_v22 }
 0x757   :  { %v7786_v9 = vpop.f32.mrf.mxu1  ;;  %v8394_v25 = vand.u32 4294901760, %v8393_v8  ;;  %v8443_v26 = vand.u32 4294901760, %v8442_v5 }
 0x758   :  { %v7803_v39 = vsel %vm35_vm0, %v7793_v20, 0  ;;  %v7787_v40 = vadd.f32 %v7786_v9, %v7708_v38 }
 0x759   :  { %v22886_v41 = vand.u32 4294901760, %v7803_v39 }
 0x75a   :  { %v22890_v43 = vand.u32 4294901760, %v7787_v40 }
 0x75b   :  { %v7922_v44 = vsub.f32 %v7803_v39, %v22886_v41  ;;  %20888 = vmatprep.subr.mxu0 %v22886_v41 }
 0x75c   :  { %v7929_v48 = vsub.f32 %v7787_v40, %v22890_v43  ;;  %20889 = vmatpush3.msra.mxu0 %v22886_v41 }
 0x75d   :  { %20890 = vmatprep.subr.mxu0 %v22890_v43  ;;  %v7923_v52 = vand.u32 4294901760, %v7922_v44 }
 0x75e   :  { %20891 = vmatpush3.msra.mxu0 %v22890_v43  ;;  %v7930_v53 = vand.u32 4294901760, %v7929_v48 }
 0x75f   :  { %20893 = vmatmul.mubr.f32.vlgmr.msra.gmra.mxu0 %v7886_v45  ;;  %20902 = vmatprep.subr.mxu0 %v7922_v44  ;;  %v7924_v54 = vsub.f32 %v7922_v44, %v7923_v52 }
 0x760   :  { %20903 = vmatpush3.msra.mxu0 %v7922_v44  ;;  %20906 = vmatprep.mubr.f32.mxu0 %v22835_v1  ;;  %v7931_v61 = vsub.f32 %v7929_v48, %v7930_v53  ;;  %v8450_v1 = vand.u32 4294901760, %v8449_v32 }
 0x761   :  { %20904 = vmatprep.subr.mxu0 %v7929_v48  ;;  %v7925_v29 = vand.u32 4294901760, %v7924_v54 }
 0x762   :  { %20905 = vmatpush3.msra.mxu0 %v7929_v48  ;;  %v7932_v3 = vand.u32 4294901760, %v7931_v61 }
 0x763   :  { %20895 = vmatprep.subr.mxu1 %v7925_v29  ;;  %20907 = vmatmul.mubr.f32.vlgmr.msra.gmra.mxu0 %v22870_v13 }
 0x764   :  { %20916 = vmatprep.subr.mxu0 %v7923_v52  ;;  %20896 = vmatpush3.msra.mxu1 %v7925_v29 }
 0x765   :  { %20917 = vmatpush3.msra.mxu0 %v7923_v52  ;;  %20897 = vmatprep.subr.mxu1 %v7932_v3 }
 0x766   :  { %20918 = vmatprep.subr.mxu0 %v7930_v53  ;;  %20898 = vmatpush3.msra.mxu1 %v7932_v3 }
 0x767   :  { %20919 = vmatpush3.msra.mxu0 %v7930_v53  ;;  %20920 = vmatprep.mubr.f32.mxu0 %v22832_v56 }
 0x768   :  { %20900 = vmatmul.mubr.f32.vlgmr.msra.gmra.mxu1 %v22859_v62  ;;  %20909 = vmatprep.subr.mxu1 %v22886_v41 }
 0x769   :  { %20921 = vmatmul.mubr.f32.vlgmr.msra.gmra.mxu0 %v22859_v62  ;;  %20930 = vmatprep.subr.mxu0 %v22904_v55 }
 0x76a   :  { %20910 = vmatpush3.msra.mxu1 %v22886_v41  ;;  %20931 = vmatpush3.msra.mxu0 %v22904_v55 }
 0x76b   :  { %20934 = vmatprep.mubr.f32.mxu0 %v8394_v25  ;;  %20911 = vmatprep.subr.mxu1 %v22890_v43 }
 0x76c   :  { %20932 = vmatprep.subr.mxu0 %v22913_v6  ;;  %20912 = vmatpush3.msra.mxu1 %v22890_v43 }
 0x76d   :  { %20913 = vmatprep.mubr.f32.mxu1 %v7874_v18  ;;  %20933 = vmatpush3.msra.mxu0 %v22913_v6 }
 0x76e   :  { %20914 = vmatmul.mubr.f32.vlgmr.msra.gmra.mxu1 %v7884_v58  ;;  %20923 = vmatprep.subr.mxu1 %v22886_v41 }
 0x76f   :  { %20935 = vmatmul.mubr.f32.vlgmr.msra.gmra.mxu0 %v8404_v10  ;;  %20944 = vmatprep.subr.mxu0 %v8440_v7 }
 0x770   :  { %20924 = vmatpush3.msra.mxu1 %v22886_v41  ;;  %20945 = vmatpush3.msra.mxu0 %v8440_v7 }
 0x771   :  { %20948 = vmatprep.mubr.f32.mxu0 %v22899_v50  ;;  %20925 = vmatprep.subr.mxu1 %v22890_v43 }
 0x772   :  { %20946 = vmatprep.subr.mxu0 %v8447_v17  ;;  %20926 = vmatpush3.msra.mxu1 %v22890_v43 }
 0x773   :  { %20927 = vmatprep.mubr.f32.mxu1 %v22832_v56  ;;  %20947 = vmatpush3.msra.mxu0 %v8447_v17  ;;  %v19374_v56 = vld [vmem:[%s24306_s1 + $0x30] sm:$0xff] }
 0x774   :  { %20928 = vmatmul.mubr.f32.vlgmr.msra.gmra.mxu1 %v22859_v62  ;;  %20937 = vmatprep.subr.mxu1 %v8443_v26  ;;  %v8830_v18 = vsel %vm31_vm1, %v19374_v56, 0 }
 0x775   :  { %20949 = vmatmul.mubr.f32.vlgmr.msra.gmra.mxu0 %v22908_v27  ;;  %20958 = vmatprep.subr.mxu0 %v8441_v19  ;;  %v22966_v62 = vand.u32 4294901760, %v8830_v18 }
 0x776   :  { %20938 = vmatpush3.msra.mxu1 %v8443_v26  ;;  %20941 = vmatprep.mubr.f32.mxu1 %v22884_v0 }
 0x777   :  { %20959 = vmatpush3.msra.mxu0 %v8441_v19  ;;  %20962 = vmatprep.mubr.f32.mxu0 %v22884_v0  ;;  %v22969_v13 = vsub.f32 %v8830_v18, %v22966_v62 }
 0x778   :  { %20939 = vmatprep.subr.mxu1 %v8450_v1  ;;  %20960 = vmatprep.subr.mxu0 %v8448_v22 }
 0x779   :  { %20940 = vmatpush3.msra.mxu1 %v8450_v1  ;;  %20961 = vmatpush3.msra.mxu0 %v8448_v22  ;;  %v8907_v58 = vand.u32 4294901760, %v22969_v13 }
 0x77a   :  { %20942 = vmatmul.mubr.f32.vlgmr.msra.gmra.mxu1 %v22896_v49  ;;  %20951 = vmatprep.subr.mxu1 %v22904_v55 }
 0x77b   :  { %20963 = vmatmul.mubr.f32.vlgmr.msra.gmra.mxu0 %v22896_v49  ;;  %20952 = vmatpush3.msra.mxu1 %v22904_v55  ;;  %v8908_v34 = vsub.f32 %v22969_v13, %v8907_v58 }
 0x77c   :  { %20955 = vmatprep.mubr.f32.mxu1 %v8392_v46  ;;  %20953 = vmatprep.subr.mxu1 %v22913_v6 }
 0x77d   :  { %20954 = vmatpush3.msra.mxu1 %v22913_v6  ;;  %v8909_v35 = vand.u32 4294901760, %v8908_v34 }
 0x77e   :  { %20956 = vmatmul.mubr.f32.vlgmr.msra.gmra.mxu1 %v8402_v11  ;;  %20965 = vmatprep.subr.mxu1 %v22904_v55 }
 0x77f   :  { %20966 = vmatpush3.msra.mxu1 %v22904_v55  ;;  %20969 = vmatprep.mubr.f32.mxu1 %v22884_v0 }
 0x780   :  { %20967 = vmatprep.subr.mxu1 %v22913_v6  ;;  %20976 = vmatprep.mubr.f32.mxu0 %v8909_v35 }
 0x781   :  { %20968 = vmatpush3.msra.mxu1 %v22913_v6 }
 0x782   :  { %20970 = vmatmul.mubr.f32.vlgmr.msra.gmra.mxu1 %v22896_v49  ;;  %v19375_v49 = vld [vmem:[%s24306_s1 + $0x38] sm:$0x1f] }
 0x783   :  { %20983 = vmatprep.mubr.f32.mxu1 %v22966_v62  ;;  %v8833_v53 = vsel %vm31_vm1, %v19375_v49, 0 }
 0x784   :  { %v22980_v29 = vand.u32 4294901760, %v8833_v53 }
 0x786   :  { %v22983_v17 = vsub.f32 %v8833_v53, %v22980_v29 }
 0x788   :  { %v8917_v56 = vand.u32 4294901760, %v22983_v17 }
 0x81f   :  { %v20894_v36 = vpop.f32.mrf.mxu0 }
 0x821   :  { %v7878_v37 = vpop.f32.mrf.mxu0 }
 0x823   :  { %v20908_v20 = vpop.f32.mrf.mxu0 }
 0x825   :  { %v8051_v38 = vpop.f32.mrf.mxu0 }
 0x828   :  { %v20901_v9 = vpop.f32.mrf.mxu1 }
 0x829   :  { %v20922_v24 = vpop.f32.mrf.mxu0  ;;  %v7976_v33 = vadd.f32 %v20901_v9, %v20894_v36 }
 0x82a   :  { %v7969_v39 = vpop.f32.mrf.mxu1 }
 0x82b   :  { %v7970_v40 = vadd.f32 %v7969_v39, %v7878_v37  ;;  %v8218_v0 = vpop.f32.mrf.mxu0  ;;  %v8059_v50 = vadd.f32 %v20908_v20, %v7976_v33 }
 0x82d   :  { %v8052_v44 = vadd.f32 %v8051_v38, %v7970_v40 }
 0x82e   :  { %v20915_v41 = vpop.f32.mrf.mxu1 }
 0x82f   :  { %v20936_v43 = vpop.f32.mrf.mxu0  ;;  %v8142_v61 = vadd.f32 %v20915_v41, %v8059_v50 }
 0x830   :  { %v8133_v45 = vpop.f32.mrf.mxu1 }
 0x831   :  { %v8396_v48 = vpop.f32.mrf.mxu0  ;;  %v8134_v51 = vadd.f32 %v8133_v45, %v8052_v44  ;;  %v8225_v6 = vadd.f32 %v20922_v24, %v8142_v61 }
 0x833   :  { %v8219_v27 = vadd.f32 %v8218_v0, %v8134_v51 }
 0x834   :  { %v20929_v52 = vpop.f32.mrf.mxu1 }
 0x835   :  { %v20950_v54 = vpop.f32.mrf.mxu0  ;;  %v8304_v22 = vadd.f32 %v20929_v52, %v8225_v6  ;;  %v19378_v6 = vld [vmem:[%s24305_s0 + $0xc0] sm:$0xff] }
 0x836   :  { %v8297_v55 = vpop.f32.mrf.mxu1 }
 0x837   :  { %v8569_v46 = vpop.f32.mrf.mxu0  ;;  %v8298_v7 = vadd.f32 %v8297_v55, %v8219_v27  ;;  %v22990_v37 = vadd.f32 %v22855_v59, %v8304_v22 }
 0x839   :  { %v22986_v10 = vadd.f32 %v22864_v28, %v8298_v7  ;;  %v8918_v28 = vsub.f32 %v22983_v17, %v8917_v56  ;;  %v9349_v59 = vsel %vm31_vm1, %v22990_v37, 0 }
 0x83a   :  { %v20943_v3 = vpop.f32.mrf.mxu1  ;;  %v23013_v49 = vand.u32 4294901760, %v9349_v59 }
 0x83b   :  { %v8494_v8 = vadd.f32 %v20943_v3, %v20936_v43  ;;  %v20964_v16 = vpop.f32.mrf.mxu0  ;;  %v9346_v20 = vsel %vm31_vm1, %v22986_v10, 0  ;;  %v19379_v43 = vld [vmem:[%s24305_s0 + $0xc8] sm:$0x1]  ;;  %v8919_v45 = vand.u32 4294901760, %v8918_v28 }
 0x83c   :  { %v8487_v11 = vpop.f32.mrf.mxu1  ;;  %v22998_v0 = vand.u32 4294901760, %v9346_v20  ;;  %v9352_v51 = vsel %vm35_vm0, %v19379_v43, 0  ;;  %v23025_v27 = vsub.f32 %v9349_v59, %v23013_v49 }
 0x83d   :  { %v8488_v19 = vadd.f32 %v8487_v11, %v8396_v48  ;;  %v8577_v25 = vadd.f32 %v20950_v54, %v8494_v8  ;;  %v8736_v35 = vpop.f32.mrf.mxu0  ;;  %v23022_v61 = vand.u32 4294901760, %v9352_v51  ;;  %v23032_v8 = vand.u32 4294901760, %v19378_v6 }
 0x83e   :  { %v20957_v5 = vpop.f32.mrf.mxu1  ;;  %v23018_v52 = vsub.f32 %v9346_v20, %v22998_v0 }
 0x83f   :  { %v8660_v26 = vadd.f32 %v20957_v5, %v8577_v25  ;;  %v8570_v32 = vadd.f32 %v8569_v46, %v8488_v19  ;;  %v9471_v11 = vsub.f32 %v9352_v51, %v23022_v61  ;;  %v9433_v25 = vand.u32 4294901760, %v23025_v27 }
 0x840   :  { %v8651_v1 = vpop.f32.mrf.mxu1  ;;  %v9423_v3 = vand.u32 4294901760, %v23018_v52 }
 0x841   :  { %v8652_v18 = vadd.f32 %v8651_v1, %v8570_v32  ;;  %v8743_v34 = vadd.f32 %v20964_v16, %v8660_v26  ;;  %v9478_v16 = vsub.f32 %v19378_v6, %v23032_v8  ;;  %v9472_v5 = vand.u32 4294901760, %v9471_v11 }
 0x842   :  { %v20971_v36 = vpop.f32.mrf.mxu1  ;;  %v9424_v19 = vsub.f32 %v23018_v52, %v9423_v3  ;;  %v9434_v26 = vsub.f32 %v23025_v27, %v9433_v25 }
 0x843   :  { %v8822_v38 = vadd.f32 %v20971_v36, %v8743_v34  ;;  %v8737_v9 = vadd.f32 %v8736_v35, %v8652_v18  ;;  %v9473_v32 = vsub.f32 %v9471_v11, %v9472_v5  ;;  %v9479_v1 = vand.u32 4294901760, %v9478_v16 }
 0x844   :  { %v8815_v24 = vpop.f32.mrf.mxu1  ;;  %v9425_v22 = vand.u32 4294901760, %v9424_v19  ;;  %v9435_v18 = vand.u32 4294901760, %v9434_v26 }
 0x845   :  { %v8836_v39 = vsel %vm35_vm0, %v8822_v38, 0  ;;  %v8816_v40 = vadd.f32 %v8815_v24, %v8737_v9  ;;  %v9474_v34 = vand.u32 4294901760, %v9473_v32  ;;  %v9480_v35 = vsub.f32 %v9478_v16, %v9479_v1  ;;  %v21868_v32 = vld [vmem:[%s24305_s0 + $0x120] sm:$0xff] }
 0x846   :  { %v23000_v41 = vand.u32 4294901760, %v8836_v39 }
 0x847   :  { %v23004_v33 = vand.u32 4294901760, %v8816_v40 }
 0x848   :  { %v8955_v44 = vsub.f32 %v8836_v39, %v23000_v41  ;;  %20972 = vmatprep.subr.mxu0 %v23000_v41 }
 0x849   :  { %v8962_v48 = vsub.f32 %v8816_v40, %v23004_v33  ;;  %20973 = vmatpush3.msra.mxu0 %v23000_v41 }
 0x84a   :  { %20974 = vmatprep.subr.mxu0 %v23004_v33  ;;  %v8956_v50 = vand.u32 4294901760, %v8955_v44 }
 0x84b   :  { %20975 = vmatpush3.msra.mxu0 %v23004_v33  ;;  %v8963_v53 = vand.u32 4294901760, %v8962_v48 }
 0x84c   :  { %20977 = vmatmul.mubr.f32.vlgmr.msra.gmra.mxu0 %v8919_v45  ;;  %20986 = vmatprep.subr.mxu0 %v8955_v44  ;;  %v8957_v54 = vsub.f32 %v8955_v44, %v8956_v50 }
 0x84d   :  { %20987 = vmatpush3.msra.mxu0 %v8955_v44  ;;  %20990 = vmatprep.mubr.f32.mxu0 %v22969_v13  ;;  %v8964_v55 = vsub.f32 %v8962_v48, %v8963_v53  ;;  %v9481_v13 = vand.u32 4294901760, %v9480_v35 }
 0x84e   :  { %20988 = vmatprep.subr.mxu0 %v8962_v48  ;;  %v8958_v46 = vand.u32 4294901760, %v8957_v54 }
 0x84f   :  { %20989 = vmatpush3.msra.mxu0 %v8962_v48  ;;  %v8965_v7 = vand.u32 4294901760, %v8964_v55  ;;  %v19377_v55 = vld [vmem:[%s24306_s1 + $0xb8] sm:$0x1f] }
 0x850   :  { %20979 = vmatprep.subr.mxu1 %v8958_v46  ;;  %20991 = vmatmul.mubr.f32.vlgmr.msra.gmra.mxu0 %v22983_v17 }
 0x851   :  { %21000 = vmatprep.subr.mxu0 %v8956_v50  ;;  %20980 = vmatpush3.msra.mxu1 %v8958_v46  ;;  %v21867_v46 = vld [vmem:[%s24305_s0 + $0x48] sm:$0x1] }
 0x852   :  { %21001 = vmatpush3.msra.mxu0 %v8956_v50  ;;  %20981 = vmatprep.subr.mxu1 %v8965_v7 }
 0x853   :  { %21002 = vmatprep.subr.mxu0 %v8963_v53  ;;  %20982 = vmatpush3.msra.mxu1 %v8965_v7  ;;  %v19376_v7 = vld [vmem:[%s24306_s1 + $0xb0] sm:$0xff] }
 0x854   :  { %21003 = vmatpush3.msra.mxu0 %v8963_v53  ;;  %21004 = vmatprep.mubr.f32.mxu0 %v22966_v62 }
 0x855   :  { %20984 = vmatmul.mubr.f32.vlgmr.msra.gmra.mxu1 %v22980_v29  ;;  %20993 = vmatprep.subr.mxu1 %v23000_v41 }
 0x856   :  { %21005 = vmatmul.mubr.f32.vlgmr.msra.gmra.mxu0 %v22980_v29  ;;  %21014 = vmatprep.subr.mxu0 %v23022_v61 }
 0x857   :  { %20994 = vmatpush3.msra.mxu1 %v23000_v41  ;;  %21015 = vmatpush3.msra.mxu0 %v23022_v61 }
 0x858   :  { %21018 = vmatprep.mubr.f32.mxu0 %v9425_v22  ;;  %20995 = vmatprep.subr.mxu1 %v23004_v33 }
 0x859   :  { %21016 = vmatprep.subr.mxu0 %v23032_v8  ;;  %20996 = vmatpush3.msra.mxu1 %v23004_v33 }
 0x85a   :  { %20997 = vmatprep.mubr.f32.mxu1 %v8907_v58  ;;  %21017 = vmatpush3.msra.mxu0 %v23032_v8 }
 0x85b   :  { %20998 = vmatmul.mubr.f32.vlgmr.msra.gmra.mxu1 %v8917_v56  ;;  %21007 = vmatprep.subr.mxu1 %v23000_v41 }
 0x85c   :  { %21019 = vmatmul.mubr.f32.vlgmr.msra.gmra.mxu0 %v9435_v18  ;;  %21028 = vmatprep.subr.mxu0 %v9471_v11 }
 0x85d   :  { %21008 = vmatpush3.msra.mxu1 %v23000_v41  ;;  %21029 = vmatpush3.msra.mxu0 %v9471_v11 }
 0x85e   :  { %21032 = vmatprep.mubr.f32.mxu0 %v23018_v52  ;;  %21009 = vmatprep.subr.mxu1 %v23004_v33 }
 0x85f   :  { %21030 = vmatprep.subr.mxu0 %v9478_v16  ;;  %21010 = vmatpush3.msra.mxu1 %v23004_v33 }
 0x860   :  { %21011 = vmatprep.mubr.f32.mxu1 %v22966_v62  ;;  %21031 = vmatpush3.msra.mxu0 %v9478_v16  ;;  %v21866_v62 = vld [vmem:[%s24305_s0 + $0x40] sm:$0xff] }
 0x861   :  { %21012 = vmatmul.mubr.f32.vlgmr.msra.gmra.mxu1 %v22980_v29  ;;  %21021 = vmatprep.subr.mxu1 %v9474_v34  ;;  %v9857_v58 = vsel %vm31_vm1, %v21866_v62, 0 }
 0x862   :  { %21033 = vmatmul.mubr.f32.vlgmr.msra.gmra.mxu0 %v23025_v27  ;;  %21042 = vmatprep.subr.mxu0 %v9472_v5  ;;  %v23084_v29 = vand.u32 4294901760, %v9857_v58 }
 0x863   :  { %21022 = vmatpush3.msra.mxu1 %v9474_v34  ;;  %21025 = vmatprep.mubr.f32.mxu1 %v22998_v0 }
 0x864   :  { %21043 = vmatpush3.msra.mxu0 %v9472_v5  ;;  %21046 = vmatprep.mubr.f32.mxu0 %v22998_v0  ;;  %v23087_v17 = vsub.f32 %v9857_v58, %v23084_v29 }
 0x865   :  { %21023 = vmatprep.subr.mxu1 %v9481_v13  ;;  %21044 = vmatprep.subr.mxu0 %v9479_v1 }
 0x866   :  { %21024 = vmatpush3.msra.mxu1 %v9481_v13  ;;  %21045 = vmatpush3.msra.mxu0 %v9479_v1  ;;  %v9933_v56 = vand.u32 4294901760, %v23087_v17 }
 0x867   :  { %21026 = vmatmul.mubr.f32.vlgmr.msra.gmra.mxu1 %v23013_v49  ;;  %21035 = vmatprep.subr.mxu1 %v23022_v61 }
 0x868   :  { %21047 = vmatmul.mubr.f32.vlgmr.msra.gmra.mxu0 %v23013_v49  ;;  %21036 = vmatpush3.msra.mxu1 %v23022_v61  ;;  %v9934_v36 = vsub.f32 %v23087_v17, %v9933_v56 }
 0x869   :  { %21039 = vmatprep.mubr.f32.mxu1 %v9423_v3  ;;  %21037 = vmatprep.subr.mxu1 %v23032_v8  ;;  %v9859_v3 = vsel %vm31_vm1, %v21867_v46, 0 }
 0x86a   :  { %21038 = vmatpush3.msra.mxu1 %v23032_v8  ;;  %v9935_v20 = vand.u32 4294901760, %v9934_v36 }
 0x86b   :  { %21040 = vmatmul.mubr.f32.vlgmr.msra.gmra.mxu1 %v9433_v25  ;;  %21049 = vmatprep.subr.mxu1 %v23022_v61  ;;  %v23106_v25 = vand.u32 4294901760, %v9859_v3 }
 0x86c   :  { %21050 = vmatpush3.msra.mxu1 %v23022_v61  ;;  %21053 = vmatprep.mubr.f32.mxu1 %v22998_v0 }
 0x86d   :  { %21051 = vmatprep.subr.mxu1 %v23032_v8  ;;  %21060 = vmatprep.mubr.f32.mxu0 %v9935_v20  ;;  %v23114_v35 = vsub.f32 %v9859_v3, %v23106_v25 }
 0x86e   :  { %21052 = vmatpush3.msra.mxu1 %v23032_v8 }
 0x86f   :  { %21054 = vmatmul.mubr.f32.vlgmr.msra.gmra.mxu1 %v23013_v49 }
 0x870   :  { %21067 = vmatprep.mubr.f32.mxu1 %v23084_v29 }
 0x90c   :  { %v20978_v38 = vpop.f32.mrf.mxu0 }
 0x90e   :  { %v8911_v9 = vpop.f32.mrf.mxu0 }
 0x910   :  { %v20992_v24 = vpop.f32.mrf.mxu0 }
 0x912   :  { %v9084_v28 = vpop.f32.mrf.mxu0 }
 0x915   :  { %v20985_v39 = vpop.f32.mrf.mxu1 }
 0x916   :  { %v9009_v40 = vadd.f32 %v20985_v39, %v20978_v38  ;;  %v21006_v0 = vpop.f32.mrf.mxu0 }
 0x917   :  { %v9002_v41 = vpop.f32.mrf.mxu1 }
 0x918   :  { %v9003_v59 = vadd.f32 %v9002_v41, %v8911_v9  ;;  %v9251_v33 = vpop.f32.mrf.mxu0  ;;  %v9092_v43 = vadd.f32 %v20992_v24, %v9009_v40 }
 0x91a   :  { %v9085_v44 = vadd.f32 %v9084_v28, %v9003_v59  ;;  %v9943_v28 = vand.u32 4294901760, %v23114_v35 }
 0x91b   :  { %v20999_v45 = vpop.f32.mrf.mxu1 }
 0x91c   :  { %v9175_v48 = vadd.f32 %v20999_v45, %v9092_v43  ;;  %v21020_v49 = vpop.f32.mrf.mxu0 }
 0x91d   :  { %v9166_v50 = vpop.f32.mrf.mxu1 }
 0x91e   :  { %v9167_v51 = vadd.f32 %v9166_v50, %v9085_v44  ;;  %v9258_v52 = vadd.f32 %v21006_v0, %v9175_v48  ;;  %v9427_v53 = vpop.f32.mrf.mxu0 }
 0x920   :  { %v9252_v54 = vadd.f32 %v9251_v33, %v9167_v51 }
 0x921   :  { %v21013_v61 = vpop.f32.mrf.mxu1 }
 0x922   :  { %v9337_v27 = vadd.f32 %v21013_v61, %v9258_v52  ;;  %v21034_v6 = vpop.f32.mrf.mxu0 }
 0x923   :  { %v9330_v8 = vpop.f32.mrf.mxu1 }
 0x924   :  { %v23104_v11 = vadd.f32 %v19377_v55, %v9337_v27  ;;  %v9331_v19 = vadd.f32 %v9330_v8, %v9252_v54  ;;  %v9600_v22 = vpop.f32.mrf.mxu0  ;;  %v21869_v55 = vld [vmem:[%s24305_s0 + $0x28] sm:$0x1] }
 0x925   :  { %v10380_v61 = vsel %vm35_vm0, %v21869_v55, 0 }
 0x926   :  { %v10885_v16 = vmul.f32 %v22731_v15, %v23104_v11  ;;  %v9340_v5 = vadd.f32 %v19376_v7, %v9331_v19  ;;  %v10378_v50 = vsel %vm31_vm1, %v23104_v11, 0  ;;  %v23151_v8 = vand.u32 4294901760, %v10380_v61 }
 0x927   :  { %v21027_v26 = vpop.f32.mrf.mxu1  ;;  %v23144_v27 = vand.u32 4294901760, %v10378_v50 }
 0x928   :  { %v10884_v1 = vmul.f32 %v21868_v32, %v9340_v5  ;;  %v9525_v18 = vadd.f32 %v21027_v26, %v21020_v49  ;;  %v23117_v13 = vadd.f32 %v10885_v16, %v22873_v14  ;;  %v21048_v36 = vpop.f32.mrf.mxu0  ;;  %v10375_v59 = vsel %vm31_vm1, %v9340_v5, 0  ;;  %v21870_v32 = vld [vmem:[%s24305_s0 + $0x20] sm:$0xff] }
 0x929   :  { %v9518_v34 = vpop.f32.mrf.mxu1  ;;  %v23128_v48 = vand.u32 4294901760, %v10375_v59  ;;  %v23155_v16 = vsub.f32 %v10378_v50, %v23144_v27 }
 0x92a   :  { %v9519_v62 = vadd.f32 %v9518_v34, %v9427_v53  ;;  %v9608_v58 = vadd.f32 %v21034_v6, %v9525_v18  ;;  %v23120_v15 = vadd.f32 %v10884_v1, %v22876_v42  ;;  %v9767_v0 = vpop.f32.mrf.mxu0  ;;  %v9944_v42 = vsub.f32 %v23114_v35, %v9943_v28 }
 0x92b   :  { %v21041_v20 = vpop.f32.mrf.mxu1  ;;  %v23147_v46 = vsub.f32 %v10375_v59, %v23128_v48  ;;  %v23162_v1 = vand.u32 4294901760, %v21870_v32  ;;  %v10499_v18 = vsub.f32 %v10380_v61, %v23151_v8  ;;  %v10461_v34 = vand.u32 4294901760, %v23155_v16 }
 0x92c   :  { %v9691_v38 = vadd.f32 %v21041_v20, %v9608_v58  ;;  %v9601_v9 = vadd.f32 %v9600_v22, %v9519_v62  ;;  %v9945_v53 = vand.u32 4294901760, %v9944_v42 }
 0x92d   :  { %v9682_v24 = vpop.f32.mrf.mxu1  ;;  %v10451_v22 = vand.u32 4294901760, %v23147_v46  ;;  %v10506_v58 = vsub.f32 %v21870_v32, %v23162_v1 }
 0x92e   :  { %v9683_v39 = vadd.f32 %v9682_v24, %v9601_v9  ;;  %v9774_v40 = vadd.f32 %v21048_v36, %v9691_v38  ;;  %v10500_v36 = vand.u32 4294901760, %v10499_v18  ;;  %v10462_v38 = vsub.f32 %v23155_v16, %v10461_v34 }
 0x92f   :  { %v21055_v41 = vpop.f32.mrf.mxu1  ;;  %v10452_v62 = vsub.f32 %v23147_v46, %v10451_v22  ;;  %v10507_v24 = vand.u32 4294901760, %v10506_v58 }
 0x930   :  { %v9853_v14 = vadd.f32 %v21055_v41, %v9774_v40  ;;  %v9768_v33 = vadd.f32 %v9767_v0, %v9683_v39  ;;  %v10501_v9 = vsub.f32 %v10499_v18, %v10500_v36  ;;  %v10463_v39 = vand.u32 4294901760, %v10462_v38 }
 0x931   :  { %v9846_v43 = vpop.f32.mrf.mxu1  ;;  %v10453_v20 = vand.u32 4294901760, %v10452_v62  ;;  %v10508_v0 = vsub.f32 %v10506_v58, %v10507_v24 }
 0x932   :  { %v9862_v44 = vsel %vm35_vm0, %v9853_v14, 0  ;;  %v9847_v45 = vadd.f32 %v9846_v43, %v9768_v33  ;;  %v10502_v40 = vand.u32 4294901760, %v10501_v9 }
 0x933   :  { %v23130_v49 = vand.u32 4294901760, %v9862_v44 }
 0x934   :  { %v23134_v51 = vand.u32 4294901760, %v9847_v45 }
 0x935   :  { %v9981_v52 = vsub.f32 %v9862_v44, %v23130_v49  ;;  %21056 = vmatprep.subr.mxu0 %v23130_v49 }
 0x936   :  { %v9988_v54 = vsub.f32 %v9847_v45, %v23134_v51  ;;  %21057 = vmatpush3.msra.mxu0 %v23130_v49 }
 0x937   :  { %21058 = vmatprep.subr.mxu0 %v23134_v51  ;;  %v9982_v3 = vand.u32 4294901760, %v9981_v52 }
 0x938   :  { %21059 = vmatpush3.msra.mxu0 %v23134_v51  ;;  %v9989_v6 = vand.u32 4294901760, %v9988_v54 }
 0x939   :  { %21061 = vmatmul.mubr.f32.vlgmr.msra.gmra.mxu0 %v9945_v53  ;;  %21070 = vmatprep.subr.mxu0 %v9981_v52  ;;  %v9983_v7 = vsub.f32 %v9981_v52, %v9982_v3 }
 0x93a   :  { %21071 = vmatpush3.msra.mxu0 %v9981_v52  ;;  %21074 = vmatprep.mubr.f32.mxu0 %v23087_v17  ;;  %v9990_v19 = vsub.f32 %v9988_v54, %v9989_v6  ;;  %v10509_v17 = vand.u32 4294901760, %v10508_v0 }
 0x93b   :  { %21072 = vmatprep.subr.mxu0 %v9988_v54  ;;  %v9984_v5 = vand.u32 4294901760, %v9983_v7 }
 0x93c   :  { %21073 = vmatpush3.msra.mxu0 %v9988_v54  ;;  %v9991_v26 = vand.u32 4294901760, %v9990_v19 }
 0x93d   :  { %21063 = vmatprep.subr.mxu1 %v9984_v5  ;;  %21075 = vmatmul.mubr.f32.vlgmr.msra.gmra.mxu0 %v23114_v35 }
 0x93e   :  { %21084 = vmatprep.subr.mxu0 %v9982_v3  ;;  %21064 = vmatpush3.msra.mxu1 %v9984_v5 }
 0x93f   :  { %21085 = vmatpush3.msra.mxu0 %v9982_v3  ;;  %21065 = vmatprep.subr.mxu1 %v9991_v26 }
 0x940   :  { %21086 = vmatprep.subr.mxu0 %v9989_v6  ;;  %21066 = vmatpush3.msra.mxu1 %v9991_v26 }
 0x941   :  { %21087 = vmatpush3.msra.mxu0 %v9989_v6  ;;  %21088 = vmatprep.mubr.f32.mxu0 %v23084_v29 }
 0x942   :  { %21068 = vmatmul.mubr.f32.vlgmr.msra.gmra.mxu1 %v23106_v25  ;;  %21077 = vmatprep.subr.mxu1 %v23130_v49 }
 0x943   :  { %21089 = vmatmul.mubr.f32.vlgmr.msra.gmra.mxu0 %v23106_v25  ;;  %21098 = vmatprep.subr.mxu0 %v23151_v8 }
 0x944   :  { %21078 = vmatpush3.msra.mxu1 %v23130_v49  ;;  %21099 = vmatpush3.msra.mxu0 %v23151_v8 }
 0x945   :  { %21102 = vmatprep.mubr.f32.mxu0 %v10453_v20  ;;  %21079 = vmatprep.subr.mxu1 %v23134_v51 }
 0x946   :  { %21100 = vmatprep.subr.mxu0 %v23162_v1  ;;  %21080 = vmatpush3.msra.mxu1 %v23134_v51 }
 0x947   :  { %21081 = vmatprep.mubr.f32.mxu1 %v9933_v56  ;;  %21101 = vmatpush3.msra.mxu0 %v23162_v1 }
 0x948   :  { %21082 = vmatmul.mubr.f32.vlgmr.msra.gmra.mxu1 %v9943_v28  ;;  %21091 = vmatprep.subr.mxu1 %v23130_v49 }
 0x949   :  { %21103 = vmatmul.mubr.f32.vlgmr.msra.gmra.mxu0 %v10463_v39  ;;  %21112 = vmatprep.subr.mxu0 %v10499_v18  ;;  %v21871_v39 = vld [vmem:[%s24305_s0 + $0x140] sm:$0xff] }
 0x94a   :  { %21092 = vmatpush3.msra.mxu1 %v23130_v49  ;;  %21113 = vmatpush3.msra.mxu0 %v10499_v18 }
 0x94b   :  { %21116 = vmatprep.mubr.f32.mxu0 %v23147_v46  ;;  %21093 = vmatprep.subr.mxu1 %v23134_v51 }
 0x94c   :  { %21114 = vmatprep.subr.mxu0 %v10506_v58  ;;  %21094 = vmatpush3.msra.mxu1 %v23134_v51 }
 0x94d   :  { %21095 = vmatprep.mubr.f32.mxu1 %v23084_v29  ;;  %21115 = vmatpush3.msra.mxu0 %v10506_v58  ;;  %v19380_v29 = vld [vmem:[%s24306_s1 + $0x20] sm:$0xff] }
 0x94e   :  { %21096 = vmatmul.mubr.f32.vlgmr.msra.gmra.mxu1 %v23106_v25  ;;  %21105 = vmatprep.subr.mxu1 %v10502_v40  ;;  %v10889_v56 = vsel %vm31_vm1, %v19380_v29, 0 }
 0x94f   :  { %21117 = vmatmul.mubr.f32.vlgmr.msra.gmra.mxu0 %v23155_v16  ;;  %21126 = vmatprep.subr.mxu0 %v10500_v36  ;;  %v23214_v25 = vand.u32 4294901760, %v10889_v56 }
 0x950   :  { %21106 = vmatpush3.msra.mxu1 %v10502_v40  ;;  %21109 = vmatprep.mubr.f32.mxu1 %v23128_v48 }
 0x951   :  { %21127 = vmatpush3.msra.mxu0 %v10500_v36  ;;  %21130 = vmatprep.mubr.f32.mxu0 %v23128_v48  ;;  %v23217_v35 = vsub.f32 %v10889_v56, %v23214_v25 }
 0x952   :  { %21107 = vmatprep.subr.mxu1 %v10509_v17  ;;  %21128 = vmatprep.subr.mxu0 %v10507_v24 }
 0x953   :  { %21108 = vmatpush3.msra.mxu1 %v10509_v17  ;;  %21129 = vmatpush3.msra.mxu0 %v10507_v24  ;;  %v10966_v28 = vand.u32 4294901760, %v23217_v35 }
 0x954   :  { %21110 = vmatmul.mubr.f32.vlgmr.msra.gmra.mxu1 %v23144_v27  ;;  %21119 = vmatprep.subr.mxu1 %v23151_v8 }
 0x955   :  { %21131 = vmatmul.mubr.f32.vlgmr.msra.gmra.mxu0 %v23144_v27  ;;  %21120 = vmatpush3.msra.mxu1 %v23151_v8  ;;  %v10967_v41 = vsub.f32 %v23217_v35, %v10966_v28 }
 0x956   :  { %21123 = vmatprep.mubr.f32.mxu1 %v10451_v22  ;;  %21121 = vmatprep.subr.mxu1 %v23162_v1 }
 0x957   :  { %21122 = vmatpush3.msra.mxu1 %v23162_v1  ;;  %v10968_v59 = vand.u32 4294901760, %v10967_v41 }
 0x958   :  { %21124 = vmatmul.mubr.f32.vlgmr.msra.gmra.mxu1 %v10461_v34  ;;  %21133 = vmatprep.subr.mxu1 %v23151_v8 }
 0x959   :  { %21134 = vmatpush3.msra.mxu1 %v23151_v8  ;;  %21137 = vmatprep.mubr.f32.mxu1 %v23128_v48 }
 0x95a   :  { %21135 = vmatprep.subr.mxu1 %v23162_v1  ;;  %21144 = vmatprep.mubr.f32.mxu0 %v10968_v59 }
 0x95b   :  { %21136 = vmatpush3.msra.mxu1 %v23162_v1 }
 0x95c   :  { %21138 = vmatmul.mubr.f32.vlgmr.msra.gmra.mxu1 %v23144_v27  ;;  %v19381_v27 = vld [vmem:[%s24306_s1 + $0x28] sm:$0x1f] }
 0x95d   :  { %21151 = vmatprep.mubr.f32.mxu1 %v23214_v25  ;;  %v10892_v7 = vsel %vm31_vm1, %v19381_v27, 0  ;;  %v19385_v27 = vld [vmem:[%s24305_s0 + $0xd8] sm:$0x1] }
 0x95e   :  { %v23228_v22 = vand.u32 4294901760, %v10892_v7 }
 0x960   :  { %v23231_v58 = vsub.f32 %v10892_v7, %v23228_v22 }
 0x962   :  { %v10976_v56 = vand.u32 4294901760, %v23231_v58 }
 0x9f9   :  { %v21062_v14 = vpop.f32.mrf.mxu0 }
 0x9fb   :  { %v9937_v33 = vpop.f32.mrf.mxu0 }
 0x9fd   :  { %v21076_v43 = vpop.f32.mrf.mxu0 }
 0x9ff   :  { %v10110_v42 = vpop.f32.mrf.mxu0 }
 0xa02   :  { %v21069_v44 = vpop.f32.mrf.mxu1 }
 0xa03   :  { %v21090_v45 = vpop.f32.mrf.mxu0  ;;  %v10035_v52 = vadd.f32 %v21069_v44, %v21062_v14 }
 0xa04   :  { %v10028_v48 = vpop.f32.mrf.mxu1 }
 0xa05   :  { %v10029_v49 = vadd.f32 %v10028_v48, %v9937_v33  ;;  %v10277_v50 = vpop.f32.mrf.mxu0  ;;  %v10118_v46 = vadd.f32 %v21076_v43, %v10035_v52  ;;  %v21872_v43 = vld [vmem:[%s24305_s0 + $0x148] sm:$0x1] }
 0xa07   :  { %v10111_v54 = vadd.f32 %v10110_v42, %v10029_v49 }
 0xa08   :  { %v21083_v51 = vpop.f32.mrf.mxu1 }
 0xa09   :  { %v21104_v53 = vpop.f32.mrf.mxu0  ;;  %v10201_v16 = vadd.f32 %v21083_v51, %v10118_v46 }
 0xa0a   :  { %v10192_v55 = vpop.f32.mrf.mxu1 }
 0xa0b   :  { %v10455_v61 = vpop.f32.mrf.mxu0  ;;  %v10193_v3 = vadd.f32 %v10192_v55, %v10111_v54  ;;  %v10284_v1 = vadd.f32 %v21090_v45, %v10201_v16  ;;  %v11411_v16 = vsel %vm35_vm0, %v19385_v27, 0 }
 0xa0d   :  { %v10278_v5 = vadd.f32 %v10277_v50, %v10193_v3  ;;  %v10977_v50 = vsub.f32 %v23231_v58, %v10976_v56 }
 0xa0e   :  { %v21097_v6 = vpop.f32.mrf.mxu1 }
 0xa0f   :  { %v21118_v8 = vpop.f32.mrf.mxu0  ;;  %v10363_v24 = vadd.f32 %v21097_v6, %v10284_v1  ;;  %v10978_v3 = vand.u32 4294901760, %v10977_v50  ;;  %v23274_v1 = vand.u32 4294901760, %v11411_v16 }
 0xa10   :  { %v10356_v19 = vpop.f32.mrf.mxu1 }
 0xa11   :  { %v10628_v26 = vpop.f32.mrf.mxu0  ;;  %v10357_v18 = vadd.f32 %v10356_v19, %v10278_v5  ;;  %v23242_v42 = vadd.f32 %v21872_v43, %v10363_v24 }
 0xa13   :  { %v23236_v40 = vadd.f32 %v21871_v39, %v10357_v18  ;;  %v11408_v55 = vsel %vm31_vm1, %v23242_v42, 0 }
 0xa14   :  { %v21111_v32 = vpop.f32.mrf.mxu1  ;;  %v23265_v7 = vand.u32 4294901760, %v11408_v55 }
 0xa15   :  { %v10553_v34 = vadd.f32 %v21111_v32, %v21104_v53  ;;  %v21132_v38 = vpop.f32.mrf.mxu0  ;;  %v11405_v44 = vsel %vm31_vm1, %v23236_v40, 0 }
 0xa16   :  { %v10546_v62 = vpop.f32.mrf.mxu1  ;;  %v23250_v53 = vand.u32 4294901760, %v11405_v44  ;;  %v23277_v18 = vsub.f32 %v11408_v55, %v23265_v7 }
 0xa17   :  { %v10547_v36 = vadd.f32 %v10546_v62, %v10455_v61  ;;  %v10636_v20 = vadd.f32 %v21118_v8, %v10553_v34  ;;  %v10795_v14 = vpop.f32.mrf.mxu0 }
 0xa18   :  { %v21125_v9 = vpop.f32.mrf.mxu1  ;;  %v23268_v8 = vsub.f32 %v11405_v44, %v23250_v53  ;;  %v11492_v24 = vand.u32 4294901760, %v23277_v18 }
 0xa19   :  { %v10719_v0 = vadd.f32 %v21125_v9, %v10636_v20  ;;  %v10629_v17 = vadd.f32 %v10628_v26, %v10547_v36  ;;  %v19384_v36 = vld [vmem:[%s24305_s0 + $0xd0] sm:$0xff]  ;;  %v11530_v9 = vsub.f32 %v11411_v16, %v23274_v1 }
 0xa1a   :  { %v10710_v29 = vpop.f32.mrf.mxu1  ;;  %v11482_v62 = vand.u32 4294901760, %v23268_v8 }
 0xa1b   :  { %v10711_v41 = vadd.f32 %v10710_v29, %v10629_v17  ;;  %v10802_v59 = vadd.f32 %v21132_v38, %v10719_v0  ;;  %v23284_v38 = vand.u32 4294901760, %v19384_v36  ;;  %v11531_v17 = vand.u32 4294901760, %v11530_v9 }
 0xa1c   :  { %v21139_v33 = vpop.f32.mrf.mxu1  ;;  %v11483_v39 = vsub.f32 %v23268_v8, %v11482_v62  ;;  %v11493_v29 = vsub.f32 %v23277_v18, %v11492_v24 }
 0xa1d   :  { %v10881_v45 = vadd.f32 %v21139_v33, %v10802_v59  ;;  %v10796_v48 = vadd.f32 %v10795_v14, %v10711_v41  ;;  %v11537_v0 = vsub.f32 %v19384_v36, %v23284_v38  ;;  %v11532_v59 = vsub.f32 %v11530_v9, %v11531_v17  ;;  %v21874_v36 = vld [vmem:[%s24305_s0 + $0x58] sm:$0x1] }
 0xa1e   :  { %v10874_v49 = vpop.f32.mrf.mxu1  ;;  %v11484_v41 = vand.u32 4294901760, %v11483_v39  ;;  %v11494_v33 = vand.u32 4294901760, %v11493_v29  ;;  %v21875_v29 = vld [vmem:[%s24305_s0 + $0x118] sm:$0x1] }
 0xa1f   :  { %v10895_v51 = vsel %vm35_vm0, %v10881_v45, 0  ;;  %v10875_v52 = vadd.f32 %v10874_v49, %v10796_v48  ;;  %v11538_v14 = vand.u32 4294901760, %v11537_v0  ;;  %v11533_v43 = vand.u32 4294901760, %v11532_v59 }
 0xa20   :  { %v23252_v54 = vand.u32 4294901760, %v10895_v51 }
 0xa21   :  { %v23256_v61 = vand.u32 4294901760, %v10875_v52  ;;  %v11539_v44 = vsub.f32 %v11537_v0, %v11538_v14 }
 0xa22   :  { %v11014_v46 = vsub.f32 %v10895_v51, %v23252_v54  ;;  %21140 = vmatprep.subr.mxu0 %v23252_v54 }
 0xa23   :  { %v11021_v6 = vsub.f32 %v10875_v52, %v23256_v61  ;;  %21141 = vmatpush3.msra.mxu0 %v23252_v54 }
 0xa24   :  { %21142 = vmatprep.subr.mxu0 %v23256_v61  ;;  %v11015_v19 = vand.u32 4294901760, %v11014_v46 }
 0xa25   :  { %21143 = vmatpush3.msra.mxu0 %v23256_v61  ;;  %v11022_v5 = vand.u32 4294901760, %v11021_v6 }
 0xa26   :  { %21145 = vmatmul.mubr.f32.vlgmr.msra.gmra.mxu0 %v10978_v3  ;;  %21154 = vmatprep.subr.mxu0 %v11014_v46  ;;  %v11016_v26 = vsub.f32 %v11014_v46, %v11015_v19 }
 0xa27   :  { %21155 = vmatpush3.msra.mxu0 %v11014_v46  ;;  %21158 = vmatprep.mubr.f32.mxu0 %v23217_v35  ;;  %v11023_v32 = vsub.f32 %v11021_v6, %v11022_v5  ;;  %v11540_v35 = vand.u32 4294901760, %v11539_v44 }
 0xa28   :  { %21156 = vmatprep.subr.mxu0 %v11021_v6  ;;  %v11017_v34 = vand.u32 4294901760, %v11016_v26 }
 0xa29   :  { %21157 = vmatpush3.msra.mxu0 %v11021_v6  ;;  %v11024_v20 = vand.u32 4294901760, %v11023_v32 }
 0xa2a   :  { %21147 = vmatprep.subr.mxu1 %v11017_v34  ;;  %21159 = vmatmul.mubr.f32.vlgmr.msra.gmra.mxu0 %v23231_v58 }
 0xa2b   :  { %21168 = vmatprep.subr.mxu0 %v11015_v19  ;;  %21148 = vmatpush3.msra.mxu1 %v11017_v34 }
 0xa2c   :  { %21169 = vmatpush3.msra.mxu0 %v11015_v19  ;;  %21149 = vmatprep.subr.mxu1 %v11024_v20 }
 0xa2d   :  { %21170 = vmatprep.subr.mxu0 %v11022_v5  ;;  %21150 = vmatpush3.msra.mxu1 %v11024_v20  ;;  %v11918_v20 = vsel %vm31_vm1, %v21874_v36, 0 }
 0xa2e   :  { %21171 = vmatpush3.msra.mxu0 %v11022_v5  ;;  %21172 = vmatprep.mubr.f32.mxu0 %v23214_v25 }
 0xa2f   :  { %21152 = vmatmul.mubr.f32.vlgmr.msra.gmra.mxu1 %v23228_v22  ;;  %21161 = vmatprep.subr.mxu1 %v23252_v54 }
 0xa30   :  { %21173 = vmatmul.mubr.f32.vlgmr.msra.gmra.mxu0 %v23228_v22  ;;  %21182 = vmatprep.subr.mxu0 %v23274_v1 }
 0xa31   :  { %21162 = vmatpush3.msra.mxu1 %v23252_v54  ;;  %21183 = vmatpush3.msra.mxu0 %v23274_v1 }
 0xa32   :  { %21186 = vmatprep.mubr.f32.mxu0 %v11484_v41  ;;  %21163 = vmatprep.subr.mxu1 %v23256_v61 }
 0xa33   :  { %21184 = vmatprep.subr.mxu0 %v23284_v38  ;;  %21164 = vmatpush3.msra.mxu1 %v23256_v61 }
 0xa34   :  { %21165 = vmatprep.mubr.f32.mxu1 %v10966_v28  ;;  %21185 = vmatpush3.msra.mxu0 %v23284_v38 }
 0xa35   :  { %21166 = vmatmul.mubr.f32.vlgmr.msra.gmra.mxu1 %v10976_v56  ;;  %21175 = vmatprep.subr.mxu1 %v23252_v54 }
 0xa36   :  { %21187 = vmatmul.mubr.f32.vlgmr.msra.gmra.mxu0 %v11494_v33  ;;  %21196 = vmatprep.subr.mxu0 %v11530_v9 }
 0xa37   :  { %21176 = vmatpush3.msra.mxu1 %v23252_v54  ;;  %21197 = vmatpush3.msra.mxu0 %v11530_v9  ;;  %v19382_v9 = vld [vmem:[%s24306_s1 + $0xa0] sm:$0xff] }
 0xa38   :  { %21200 = vmatprep.mubr.f32.mxu0 %v23268_v8  ;;  %21177 = vmatprep.subr.mxu1 %v23256_v61 }
 0xa39   :  { %21198 = vmatprep.subr.mxu0 %v11537_v0  ;;  %21178 = vmatpush3.msra.mxu1 %v23256_v61 }
 0xa3a   :  { %21179 = vmatprep.mubr.f32.mxu1 %v23214_v25  ;;  %21199 = vmatpush3.msra.mxu0 %v11537_v0  ;;  %v21873_v25 = vld [vmem:[%s24305_s0 + $0x50] sm:$0xff] }
 0xa3b   :  { %21180 = vmatmul.mubr.f32.vlgmr.msra.gmra.mxu1 %v23228_v22  ;;  %21189 = vmatprep.subr.mxu1 %v11533_v43  ;;  %v11916_v28 = vsel %vm31_vm1, %v21873_v25, 0 }
 0xa3c   :  { %21201 = vmatmul.mubr.f32.vlgmr.msra.gmra.mxu0 %v23277_v18  ;;  %21210 = vmatprep.subr.mxu0 %v11531_v17  ;;  %v23336_v22 = vand.u32 4294901760, %v11916_v28  ;;  %v19383_v18 = vld [vmem:[%s24306_s1 + $0xa8] sm:$0x1f] }
 0xa3d   :  { %21190 = vmatpush3.msra.mxu1 %v11533_v43  ;;  %21193 = vmatprep.mubr.f32.mxu1 %v23250_v53  ;;  %v21876_v43 = vld [vmem:[%s24305_s0 + $0x110] sm:$0xff] }
 0xa3e   :  { %21211 = vmatpush3.msra.mxu0 %v11531_v17  ;;  %21214 = vmatprep.mubr.f32.mxu0 %v23250_v53  ;;  %v23339_v58 = vsub.f32 %v11916_v28, %v23336_v22  ;;  %v23358_v17 = vand.u32 4294901760, %v11918_v20 }
 0xa3f   :  { %21191 = vmatprep.subr.mxu1 %v11540_v35  ;;  %21212 = vmatprep.subr.mxu0 %v11538_v14 }
 0xa40   :  { %21192 = vmatpush3.msra.mxu1 %v11540_v35  ;;  %21213 = vmatpush3.msra.mxu0 %v11538_v14  ;;  %v11992_v56 = vand.u32 4294901760, %v23339_v58  ;;  %v23368_v28 = vsub.f32 %v11918_v20, %v23358_v17  ;;  %v21877_v20 = vld [vmem:[%s24305_s0 + $0x18] sm:$0x1] }
 0xa41   :  { %21194 = vmatmul.mubr.f32.vlgmr.msra.gmra.mxu1 %v23265_v7  ;;  %21203 = vmatprep.subr.mxu1 %v23274_v1 }
 0xa42   :  { %21215 = vmatmul.mubr.f32.vlgmr.msra.gmra.mxu0 %v23265_v7  ;;  %21204 = vmatpush3.msra.mxu1 %v23274_v1  ;;  %v11993_v45 = vsub.f32 %v23339_v58, %v11992_v56 }
 0xa43   :  { %21207 = vmatprep.mubr.f32.mxu1 %v11482_v62  ;;  %21205 = vmatprep.subr.mxu1 %v23284_v38 }
 0xa44   :  { %21206 = vmatpush3.msra.mxu1 %v23284_v38  ;;  %v11994_v48 = vand.u32 4294901760, %v11993_v45 }
 0xa45   :  { %21208 = vmatmul.mubr.f32.vlgmr.msra.gmra.mxu1 %v11492_v24  ;;  %21217 = vmatprep.subr.mxu1 %v23274_v1 }
 0xa46   :  { %21218 = vmatpush3.msra.mxu1 %v23274_v1  ;;  %21221 = vmatprep.mubr.f32.mxu1 %v23250_v53 }
 0xa47   :  { %21219 = vmatprep.subr.mxu1 %v23284_v38  ;;  %21228 = vmatprep.mubr.f32.mxu0 %v11994_v48 }
 0xa48   :  { %21220 = vmatpush3.msra.mxu1 %v23284_v38 }
 0xa49   :  { %21222 = vmatmul.mubr.f32.vlgmr.msra.gmra.mxu1 %v23265_v7 }
 0xa4a   :  { %21235 = vmatprep.mubr.f32.mxu1 %v23336_v22 }
 0xae6   :  { %v21146_v49 = vpop.f32.mrf.mxu0 }
 0xae8   :  { %v10970_v50 = vpop.f32.mrf.mxu0 }
 0xaea   :  { %v21160_v51 = vpop.f32.mrf.mxu0 }
 0xaec   :  { %v11143_v52 = vpop.f32.mrf.mxu0 }
 0xaef   :  { %v21153_v53 = vpop.f32.mrf.mxu1 }
 0xaf0   :  { %v11068_v54 = vadd.f32 %v21153_v53, %v21146_v49  ;;  %v21174_v55 = vpop.f32.mrf.mxu0 }
 0xaf1   :  { %v11061_v61 = vpop.f32.mrf.mxu1 }
 0xaf2   :  { %v11062_v27 = vadd.f32 %v11061_v61, %v10970_v50  ;;  %v11310_v46 = vpop.f32.mrf.mxu0  ;;  %v11151_v3 = vadd.f32 %v21160_v51, %v11068_v54  ;;  %v12002_v61 = vand.u32 4294901760, %v23368_v28 }
 0xaf4   :  { %v11144_v6 = vadd.f32 %v11143_v52, %v11062_v27 }
 0xaf5   :  { %v21167_v7 = vpop.f32.mrf.mxu1 }
 0xaf6   :  { %v11234_v8 = vadd.f32 %v21167_v7, %v11151_v3  ;;  %v21188_v19 = vpop.f32.mrf.mxu0 }
 0xaf7   :  { %v11225_v16 = vpop.f32.mrf.mxu1 }
 0xaf8   :  { %v11226_v5 = vadd.f32 %v11225_v16, %v11144_v6  ;;  %v11317_v26 = vadd.f32 %v21174_v55, %v11234_v8  ;;  %v11486_v32 = vpop.f32.mrf.mxu0 }
 0xafa   :  { %v11311_v1 = vadd.f32 %v11310_v46, %v11226_v5 }
 0xafb   :  { %v21181_v34 = vpop.f32.mrf.mxu1 }
 0xafc   :  { %v11396_v62 = vadd.f32 %v21181_v34, %v11317_v26  ;;  %v21202_v38 = vpop.f32.mrf.mxu0 }
 0xafd   :  { %v11389_v24 = vpop.f32.mrf.mxu1 }
 0xafe   :  { %v23356_v39 = vadd.f32 %v19383_v18, %v11396_v62  ;;  %v11390_v0 = vadd.f32 %v11389_v24, %v11311_v1  ;;  %v11659_v14 = vpop.f32.mrf.mxu0 }
 0xb00   :  { %v12944_v41 = vmul.f32 %v21875_v29, %v23356_v39  ;;  %v11399_v59 = vadd.f32 %v19382_v9, %v11390_v0  ;;  %v12437_v1 = vsel %vm31_vm1, %v23356_v39, 0 }
 0xb01   :  { %v21195_v33 = vpop.f32.mrf.mxu1  ;;  %v23398_v9 = vand.u32 4294901760, %v12437_v1 }
 0xb02   :  { %v12943_v44 = vmul.f32 %v21876_v43, %v11399_v59  ;;  %v11584_v35 = vadd.f32 %v21195_v33, %v21188_v19  ;;  %v23371_v45 = vadd.f32 %v12944_v41, %v23117_v13  ;;  %v21216_v51 = vpop.f32.mrf.mxu0  ;;  %v12434_v7 = vsel %vm31_vm1, %v11399_v59, 0 }
 0xb03   :  { %v11577_v25 = vpop.f32.mrf.mxu1  ;;  %v23382_v26 = vand.u32 4294901760, %v12434_v7  ;;  %v23409_v33 = vsub.f32 %v12437_v1, %v23398_v9 }
 0xb04   :  { %v11578_v48 = vadd.f32 %v11577_v25, %v11486_v32  ;;  %v11667_v49 = vadd.f32 %v21202_v38, %v11584_v35  ;;  %v23374_v50 = vadd.f32 %v12943_v44, %v23120_v15  ;;  %v11826_v3 = vpop.f32.mrf.mxu0  ;;  %v12003_v15 = vsub.f32 %v23368_v28, %v12002_v61  ;;  %v21878_v25 = vld [vmem:[%s24305_s0 + $0x10] sm:$0xff] }
 0xb05   :  { %v21209_v52 = vpop.f32.mrf.mxu1  ;;  %v12439_v38 = vsel %vm35_vm0, %v21877_v20, 0  ;;  %v23401_v24 = vsub.f32 %v12434_v7, %v23382_v26 }
 0xb06   :  { %v11750_v53 = vadd.f32 %v21209_v52, %v11667_v49  ;;  %v11660_v54 = vadd.f32 %v11659_v14, %v11578_v48  ;;  %v12004_v62 = vand.u32 4294901760, %v12003_v15  ;;  %v23405_v59 = vand.u32 4294901760, %v12439_v38 }
 0xb07   :  { %v11741_v55 = vpop.f32.mrf.mxu1  ;;  %v12510_v44 = vand.u32 4294901760, %v23401_v24  ;;  %v23416_v48 = vand.u32 4294901760, %v21878_v25 }
 0xb08   :  { %v11742_v27 = vadd.f32 %v11741_v55, %v11660_v54  ;;  %v11833_v46 = vadd.f32 %v21216_v51, %v11750_v53  ;;  %v12558_v49 = vsub.f32 %v12439_v38, %v23405_v59  ;;  %v12520_v51 = vand.u32 4294901760, %v23409_v33 }
 0xb09   :  { %v21223_v6 = vpop.f32.mrf.mxu1  ;;  %v12511_v52 = vsub.f32 %v23401_v24, %v12510_v44  ;;  %v12565_v53 = vsub.f32 %v21878_v25, %v23416_v48 }
 0xb0a   :  { %v11912_v13 = vadd.f32 %v21223_v6, %v11833_v46  ;;  %v11827_v8 = vadd.f32 %v11826_v3, %v11742_v27  ;;  %v12559_v54 = vand.u32 4294901760, %v12558_v49  ;;  %v12521_v27 = vsub.f32 %v23409_v33, %v12520_v51 }
 0xb0b   :  { %v11905_v19 = vpop.f32.mrf.mxu1  ;;  %v12512_v55 = vand.u32 4294901760, %v12511_v52  ;;  %v12566_v3 = vand.u32 4294901760, %v12565_v53 }
 0xb0c   :  { %v11921_v16 = vsel %vm35_vm0, %v11912_v13, 0  ;;  %v11906_v5 = vadd.f32 %v11905_v19, %v11827_v8  ;;  %v12560_v46 = vsub.f32 %v12558_v49, %v12559_v54  ;;  %v12522_v6 = vand.u32 4294901760, %v12521_v27 }
 0xb0d   :  { %v23384_v32 = vand.u32 4294901760, %v11921_v16  ;;  %v12567_v13 = vsub.f32 %v12565_v53, %v12566_v3 }
 0xb0e   :  { %v23388_v18 = vand.u32 4294901760, %v11906_v5  ;;  %v12561_v7 = vand.u32 4294901760, %v12560_v46 }
 0xb0f   :  { %v12040_v34 = vsub.f32 %v11921_v16, %v23384_v32  ;;  %21224 = vmatprep.subr.mxu0 %v23384_v32 }
 0xb10   :  { %v12047_v36 = vsub.f32 %v11906_v5, %v23388_v18  ;;  %21225 = vmatpush3.msra.mxu0 %v23384_v32 }
 0xb11   :  { %21226 = vmatprep.subr.mxu0 %v23388_v18  ;;  %v12041_v0 = vand.u32 4294901760, %v12040_v34 }
 0xb12   :  { %21227 = vmatpush3.msra.mxu0 %v23388_v18  ;;  %v12048_v29 = vand.u32 4294901760, %v12047_v36 }
 0xb13   :  { %21229 = vmatmul.mubr.f32.vlgmr.msra.gmra.mxu0 %v12004_v62  ;;  %21238 = vmatprep.subr.mxu0 %v12040_v34  ;;  %v12042_v41 = vsub.f32 %v12040_v34, %v12041_v0 }
 0xb14   :  { %21239 = vmatpush3.msra.mxu0 %v12040_v34  ;;  %21242 = vmatprep.mubr.f32.mxu0 %v23339_v58  ;;  %v12049_v14 = vsub.f32 %v12047_v36, %v12048_v29  ;;  %v12568_v58 = vand.u32 4294901760, %v12567_v13 }
 0xb15   :  { %21240 = vmatprep.subr.mxu0 %v12047_v36  ;;  %v12043_v43 = vand.u32 4294901760, %v12042_v41 }
 0xb16   :  { %21241 = vmatpush3.msra.mxu0 %v12047_v36  ;;  %v12050_v35 = vand.u32 4294901760, %v12049_v14 }
 0xb17   :  { %21231 = vmatprep.subr.mxu1 %v12043_v43  ;;  %21243 = vmatmul.mubr.f32.vlgmr.msra.gmra.mxu0 %v23368_v28 }
 0xb18   :  { %21252 = vmatprep.subr.mxu0 %v12041_v0  ;;  %21232 = vmatpush3.msra.mxu1 %v12043_v43 }
 0xb19   :  { %21253 = vmatpush3.msra.mxu0 %v12041_v0  ;;  %21233 = vmatprep.subr.mxu1 %v12050_v35 }
 0xb1a   :  { %21254 = vmatprep.subr.mxu0 %v12048_v29  ;;  %21234 = vmatpush3.msra.mxu1 %v12050_v35 }
 0xb1b   :  { %21255 = vmatpush3.msra.mxu0 %v12048_v29  ;;  %21256 = vmatprep.mubr.f32.mxu0 %v23336_v22  ;;  %v19387_v29 = vld [vmem:[%s24306_s1 + $0x18] sm:$0x1f] }
 0xb1c   :  { %21236 = vmatmul.mubr.f32.vlgmr.msra.gmra.mxu1 %v23358_v17  ;;  %21245 = vmatprep.subr.mxu1 %v23384_v32 }
 0xb1d   :  { %21257 = vmatmul.mubr.f32.vlgmr.msra.gmra.mxu0 %v23358_v17  ;;  %21266 = vmatprep.subr.mxu0 %v23405_v59 }
 0xb1e   :  { %21246 = vmatpush3.msra.mxu1 %v23384_v32  ;;  %21267 = vmatpush3.msra.mxu0 %v23405_v59 }
 0xb1f   :  { %21270 = vmatprep.mubr.f32.mxu0 %v12512_v55  ;;  %21247 = vmatprep.subr.mxu1 %v23388_v18 }
 0xb20   :  { %21268 = vmatprep.subr.mxu0 %v23416_v48  ;;  %21248 = vmatpush3.msra.mxu1 %v23388_v18 }
 0xb21   :  { %21249 = vmatprep.mubr.f32.mxu1 %v11992_v56  ;;  %21269 = vmatpush3.msra.mxu0 %v23416_v48 }
 0xb22   :  { %21250 = vmatmul.mubr.f32.vlgmr.msra.gmra.mxu1 %v12002_v61  ;;  %21259 = vmatprep.subr.mxu1 %v23384_v32 }
 0xb23   :  { %21271 = vmatmul.mubr.f32.vlgmr.msra.gmra.mxu0 %v12522_v6  ;;  %21280 = vmatprep.subr.mxu0 %v12558_v49 }
 0xb24   :  { %21260 = vmatpush3.msra.mxu1 %v23384_v32  ;;  %21281 = vmatpush3.msra.mxu0 %v12558_v49 }
 0xb25   :  { %21284 = vmatprep.mubr.f32.mxu0 %v23401_v24  ;;  %21261 = vmatprep.subr.mxu1 %v23388_v18 }
 0xb26   :  { %21282 = vmatprep.subr.mxu0 %v12565_v53  ;;  %21262 = vmatpush3.msra.mxu1 %v23388_v18 }
 0xb27   :  { %21263 = vmatprep.mubr.f32.mxu1 %v23336_v22  ;;  %21283 = vmatpush3.msra.mxu0 %v12565_v53  ;;  %v19386_v22 = vld [vmem:[%s24306_s1 + $0x10] sm:$0xff] }
 0xb28   :  { %21264 = vmatmul.mubr.f32.vlgmr.msra.gmra.mxu1 %v23358_v17  ;;  %21273 = vmatprep.subr.mxu1 %v12561_v7  ;;  %v12948_v56 = vsel %vm31_vm1, %v19386_v22, 0 }
 0xb29   :  { %21285 = vmatmul.mubr.f32.vlgmr.msra.gmra.mxu0 %v23409_v33  ;;  %21294 = vmatprep.subr.mxu0 %v12559_v54  ;;  %v23468_v17 = vand.u32 4294901760, %v12948_v56  ;;  %v12951_v33 = vsel %vm31_vm1, %v19387_v29, 0 }
 0xb2a   :  { %21274 = vmatpush3.msra.mxu1 %v12561_v7  ;;  %21277 = vmatprep.mubr.f32.mxu1 %v23382_v26 }
 0xb2b   :  { %21295 = vmatpush3.msra.mxu0 %v12559_v54  ;;  %21298 = vmatprep.mubr.f32.mxu0 %v23382_v26  ;;  %v23471_v28 = vsub.f32 %v12948_v56, %v23468_v17 }
 0xb2c   :  { %21275 = vmatprep.subr.mxu1 %v12568_v58  ;;  %21296 = vmatprep.subr.mxu0 %v12566_v3 }
 0xb2d   :  { %21276 = vmatpush3.msra.mxu1 %v12568_v58  ;;  %21297 = vmatpush3.msra.mxu0 %v12566_v3  ;;  %v13025_v61 = vand.u32 4294901760, %v23471_v28  ;;  %v21879_v58 = vld [vmem:[%s24305_s0 + $0x150] sm:$0xff] }
 0xb2e   :  { %21278 = vmatmul.mubr.f32.vlgmr.msra.gmra.mxu1 %v23398_v9  ;;  %21287 = vmatprep.subr.mxu1 %v23405_v59 }
 0xb2f   :  { %21299 = vmatmul.mubr.f32.vlgmr.msra.gmra.mxu0 %v23398_v9  ;;  %21288 = vmatpush3.msra.mxu1 %v23405_v59  ;;  %v13026_v8 = vsub.f32 %v23471_v28, %v13025_v61 }
 0xb30   :  { %21291 = vmatprep.mubr.f32.mxu1 %v12510_v44  ;;  %21289 = vmatprep.subr.mxu1 %v23416_v48 }
 0xb31   :  { %21290 = vmatpush3.msra.mxu1 %v23416_v48  ;;  %v13027_v19 = vand.u32 4294901760, %v13026_v8 }
 0xb32   :  { %21292 = vmatmul.mubr.f32.vlgmr.msra.gmra.mxu1 %v12520_v51  ;;  %21301 = vmatprep.subr.mxu1 %v23405_v59 }
 0xb33   :  { %21302 = vmatpush3.msra.mxu1 %v23405_v59  ;;  %21305 = vmatprep.mubr.f32.mxu1 %v23382_v26 }
 0xb34   :  { %21303 = vmatprep.subr.mxu1 %v23416_v48  ;;  %21312 = vmatprep.mubr.f32.mxu0 %v13027_v19 }
 0xb35   :  { %21304 = vmatpush3.msra.mxu1 %v23416_v48  ;;  %v23482_v48 = vand.u32 4294901760, %v12951_v33 }
 0xb36   :  { %21306 = vmatmul.mubr.f32.vlgmr.msra.gmra.mxu1 %v23398_v9 }
 0xb37   :  { %21319 = vmatprep.mubr.f32.mxu1 %v23468_v17  ;;  %v23485_v27 = vsub.f32 %v12951_v33, %v23482_v48 }
 0xbd3   :  { %v21230_v15 = vpop.f32.mrf.mxu0 }
 0xbd5   :  { %v11996_v16 = vpop.f32.mrf.mxu0 }
 0xbd7   :  { %v21244_v5 = vpop.f32.mrf.mxu0 }
 0xbd9   :  { %v12169_v26 = vpop.f32.mrf.mxu0 }
 0xbdc   :  { %v21237_v32 = vpop.f32.mrf.mxu1 }
 0xbdd   :  { %v21258_v1 = vpop.f32.mrf.mxu0  ;;  %v12094_v20 = vadd.f32 %v21237_v32, %v21230_v15  ;;  %v13035_v15 = vand.u32 4294901760, %v23485_v27 }
 0xbde   :  { %v12087_v18 = vpop.f32.mrf.mxu1 }
 0xbdf   :  { %v12088_v34 = vadd.f32 %v12087_v18, %v11996_v16  ;;  %v12336_v62 = vpop.f32.mrf.mxu0  ;;  %v12177_v41 = vadd.f32 %v21244_v5, %v12094_v20 }
 0xbe1   :  { %v12170_v9 = vadd.f32 %v12169_v26, %v12088_v34 }
 0xbe2   :  { %v21251_v36 = vpop.f32.mrf.mxu1 }
 0xbe3   :  { %v21272_v38 = vpop.f32.mrf.mxu0  ;;  %v12260_v35 = vadd.f32 %v21251_v36, %v12177_v41 }
 0xbe4   :  { %v12251_v24 = vpop.f32.mrf.mxu1 }
 0xbe5   :  { %v12514_v0 = vpop.f32.mrf.mxu0  ;;  %v12252_v59 = vadd.f32 %v12251_v24, %v12170_v9  ;;  %v12343_v52 = vadd.f32 %v21258_v1, %v12260_v35  ;;  %v21880_v1 = vld [vmem:[%s24305_s0 + $0x158] sm:$0x1] }
 0xbe7   :  { %v12337_v25 = vadd.f32 %v12336_v62, %v12252_v59 }
 0xbe8   :  { %v21265_v14 = vpop.f32.mrf.mxu1 }
 0xbe9   :  { %v21286_v43 = vpop.f32.mrf.mxu0  ;;  %v12422_v13 = vadd.f32 %v21265_v14, %v12343_v52  ;;  %v19391_v14 = vld [vmem:[%s24305_s0 + $0xe8] sm:$0x1] }
 0xbea   :  { %v12415_v44 = vpop.f32.mrf.mxu1 }
 0xbeb   :  { %v12687_v49 = vpop.f32.mrf.mxu0  ;;  %v12416_v53 = vadd.f32 %v12415_v44, %v12337_v25  ;;  %v23496_v18 = vadd.f32 %v21880_v1, %v12422_v13 }
 0xbed   :  { %v23490_v22 = vadd.f32 %v21879_v58, %v12416_v53  ;;  %v13467_v41 = vsel %vm31_vm1, %v23496_v18, 0 }
 0xbee   :  { %v21279_v51 = vpop.f32.mrf.mxu1  ;;  %v23519_v35 = vand.u32 4294901760, %v13467_v41 }
 0xbef   :  { %v12612_v54 = vadd.f32 %v21279_v51, %v21272_v38  ;;  %v21300_v6 = vpop.f32.mrf.mxu0  ;;  %v13464_v34 = vsel %vm31_vm1, %v23490_v22, 0  ;;  %v13036_v38 = vsub.f32 %v23485_v27, %v13035_v15  ;;  %v13470_v51 = vsel %vm35_vm0, %v19391_v14, 0 }
 0xbf0   :  { %v12605_v55 = vpop.f32.mrf.mxu1 }
 0xbf1   :  { %v12606_v46 = vadd.f32 %v12605_v55, %v12514_v0  ;;  %v12695_v3 = vadd.f32 %v21286_v43, %v12612_v54  ;;  %v12854_v26 = vpop.f32.mrf.mxu0  ;;  %v23504_v0 = vand.u32 4294901760, %v13464_v34  ;;  %v13037_v43 = vand.u32 4294901760, %v13036_v38 }
 0xbf2   :  { %v21293_v7 = vpop.f32.mrf.mxu1  ;;  %v23528_v55 = vand.u32 4294901760, %v13470_v51 }
 0xbf3   :  { %v12778_v56 = vadd.f32 %v21293_v7, %v12695_v3  ;;  %v12688_v8 = vadd.f32 %v12687_v49, %v12606_v46  ;;  %v23522_v25 = vsub.f32 %v13464_v34, %v23504_v0  ;;  %v23531_v46 = vsub.f32 %v13467_v41, %v23519_v35  ;;  %v19390_v7 = vld [vmem:[%s24305_s0 + $0xe0] sm:$0xff] }
 0xbf4   :  { %v12769_v19 = vpop.f32.mrf.mxu1  ;;  %v23538_v58 = vand.u32 4294901760, %v19390_v7 }
 0xbf5   :  { %v12770_v16 = vadd.f32 %v12769_v19, %v12688_v8  ;;  %v12861_v5 = vadd.f32 %v21300_v6, %v12778_v56  ;;  %v13541_v6 = vand.u32 4294901760, %v23522_v25  ;;  %v13589_v56 = vsub.f32 %v13470_v51, %v23528_v55 }
 0xbf6   :  { %v21307_v32 = vpop.f32.mrf.mxu1  ;;  %v13551_v8 = vand.u32 4294901760, %v23531_v46 }
 0xbf7   :  { %v12940_v62 = vadd.f32 %v21307_v32, %v12861_v5  ;;  %v12855_v36 = vadd.f32 %v12854_v26, %v12770_v16  ;;  %v13542_v19 = vsub.f32 %v23522_v25, %v13541_v6  ;;  %v13596_v16 = vsub.f32 %v19390_v7, %v23538_v58  ;;  %v19389_v7 = vld [vmem:[%s24306_s1 + $0x98] sm:$0x1f] }
 0xbf8   :  { %v12933_v20 = vpop.f32.mrf.mxu1  ;;  %v13590_v5 = vand.u32 4294901760, %v13589_v56  ;;  %v13552_v26 = vsub.f32 %v23531_v46, %v13551_v8 }
 0xbf9   :  { %v12954_v9 = vsel %vm35_vm0, %v12940_v62, 0  ;;  %v12934_v24 = vadd.f32 %v12933_v20, %v12855_v36  ;;  %v13543_v32 = vand.u32 4294901760, %v13542_v19  ;;  %v13597_v34 = vand.u32 4294901760, %v13596_v16 }
 0xbfa   :  { %v23506_v29 = vand.u32 4294901760, %v12954_v9  ;;  %v13591_v1 = vsub.f32 %v13589_v56, %v13590_v5  ;;  %v13553_v62 = vand.u32 4294901760, %v13552_v26 }
 0xbfb   :  { %v23510_v59 = vand.u32 4294901760, %v12934_v24  ;;  %v13598_v20 = vsub.f32 %v13596_v16, %v13597_v34 }
 0xbfc   :  { %v13073_v33 = vsub.f32 %v12954_v9, %v23506_v29  ;;  %21308 = vmatprep.subr.mxu0 %v23506_v29  ;;  %v13592_v36 = vand.u32 4294901760, %v13591_v1 }
 0xbfd   :  { %v13080_v44 = vsub.f32 %v12934_v24, %v23510_v59  ;;  %21309 = vmatpush3.msra.mxu0 %v23506_v29 }
 0xbfe   :  { %21310 = vmatprep.subr.mxu0 %v23510_v59  ;;  %v13074_v49 = vand.u32 4294901760, %v13073_v33 }
 0xbff   :  { %21311 = vmatpush3.msra.mxu0 %v23510_v59  ;;  %v13081_v52 = vand.u32 4294901760, %v13080_v44 }
 0xc00   :  { %21313 = vmatmul.mubr.f32.vlgmr.msra.gmra.mxu0 %v13037_v43  ;;  %21322 = vmatprep.subr.mxu0 %v13073_v33  ;;  %v13075_v53 = vsub.f32 %v13073_v33, %v13074_v49 }
 0xc01   :  { %21323 = vmatpush3.msra.mxu0 %v13073_v33  ;;  %21326 = vmatprep.mubr.f32.mxu0 %v23471_v28  ;;  %v13082_v54 = vsub.f32 %v13080_v44, %v13081_v52  ;;  %v13599_v28 = vand.u32 4294901760, %v13598_v20 }
 0xc02   :  { %21324 = vmatprep.subr.mxu0 %v13080_v44  ;;  %v13076_v3 = vand.u32 4294901760, %v13075_v53 }
 0xc03   :  { %21325 = vmatpush3.msra.mxu0 %v13080_v44  ;;  %v13083_v13 = vand.u32 4294901760, %v13082_v54 }
 0xc04   :  { %21315 = vmatprep.subr.mxu1 %v13076_v3  ;;  %21327 = vmatmul.mubr.f32.vlgmr.msra.gmra.mxu0 %v23485_v27 }
 0xc05   :  { %21336 = vmatprep.subr.mxu0 %v13074_v49  ;;  %21316 = vmatpush3.msra.mxu1 %v13076_v3 }
 0xc06   :  { %21337 = vmatpush3.msra.mxu0 %v13074_v49  ;;  %21317 = vmatprep.subr.mxu1 %v13083_v13 }
 0xc07   :  { %21338 = vmatprep.subr.mxu0 %v13081_v52  ;;  %21318 = vmatpush3.msra.mxu1 %v13083_v13 }
 0xc08   :  { %21339 = vmatpush3.msra.mxu0 %v13081_v52  ;;  %21340 = vmatprep.mubr.f32.mxu0 %v23468_v17 }
 0xc09   :  { %21320 = vmatmul.mubr.f32.vlgmr.msra.gmra.mxu1 %v23482_v48  ;;  %21329 = vmatprep.subr.mxu1 %v23506_v29 }
 0xc0a   :  { %21341 = vmatmul.mubr.f32.vlgmr.msra.gmra.mxu0 %v23482_v48  ;;  %21350 = vmatprep.subr.mxu0 %v23528_v55 }
 0xc0b   :  { %21330 = vmatpush3.msra.mxu1 %v23506_v29  ;;  %21351 = vmatpush3.msra.mxu0 %v23528_v55 }
 0xc0c   :  { %21354 = vmatprep.mubr.f32.mxu0 %v13543_v32  ;;  %21331 = vmatprep.subr.mxu1 %v23510_v59 }
 0xc0d   :  { %21352 = vmatprep.subr.mxu0 %v23538_v58  ;;  %21332 = vmatpush3.msra.mxu1 %v23510_v59 }
 0xc0e   :  { %21333 = vmatprep.mubr.f32.mxu1 %v13025_v61  ;;  %21353 = vmatpush3.msra.mxu0 %v23538_v58 }
 0xc0f   :  { %21334 = vmatmul.mubr.f32.vlgmr.msra.gmra.mxu1 %v13035_v15  ;;  %21343 = vmatprep.subr.mxu1 %v23506_v29 }
 0xc10   :  { %21355 = vmatmul.mubr.f32.vlgmr.msra.gmra.mxu0 %v13553_v62  ;;  %21364 = vmatprep.subr.mxu0 %v13589_v56  ;;  %v21883_v62 = vld [vmem:[%s24305_s0 + $0x108] sm:$0x1] }
 0xc11   :  { %21344 = vmatpush3.msra.mxu1 %v23506_v29  ;;  %21365 = vmatpush3.msra.mxu0 %v13589_v56  ;;  %v21882_v56 = vld [vmem:[%s24305_s0 + $0x68] sm:$0x1] }
 0xc12   :  { %21368 = vmatprep.mubr.f32.mxu0 %v23522_v25  ;;  %21345 = vmatprep.subr.mxu1 %v23510_v59 }
 0xc13   :  { %21366 = vmatprep.subr.mxu0 %v13596_v16  ;;  %21346 = vmatpush3.msra.mxu1 %v23510_v59 }
 0xc14   :  { %21347 = vmatprep.mubr.f32.mxu1 %v23468_v17  ;;  %21367 = vmatpush3.msra.mxu0 %v13596_v16  ;;  %v21881_v17 = vld [vmem:[%s24305_s0 + $0x60] sm:$0xff]  ;;  %v19388_v16 = vld [vmem:[%s24306_s1 + $0x90] sm:$0xff] }
 0xc15   :  { %21348 = vmatmul.mubr.f32.vlgmr.msra.gmra.mxu1 %v23482_v48  ;;  %21357 = vmatprep.subr.mxu1 %v13592_v36  ;;  %v13975_v61 = vsel %vm31_vm1, %v21881_v17, 0  ;;  %v21884_v17 = vld [vmem:[%s24305_s0 + $0x100] sm:$0xff] }
 0xc16   :  { %21369 = vmatmul.mubr.f32.vlgmr.msra.gmra.mxu0 %v23531_v46  ;;  %21378 = vmatprep.subr.mxu0 %v13590_v5  ;;  %v23590_v48 = vand.u32 4294901760, %v13975_v61 }
 0xc17   :  { %21358 = vmatpush3.msra.mxu1 %v13592_v36  ;;  %21361 = vmatprep.mubr.f32.mxu1 %v23504_v0 }
 0xc18   :  { %21379 = vmatpush3.msra.mxu0 %v13590_v5  ;;  %21382 = vmatprep.mubr.f32.mxu0 %v23504_v0  ;;  %v23593_v27 = vsub.f32 %v13975_v61, %v23590_v48 }
 0xc19   :  { %21359 = vmatprep.subr.mxu1 %v13599_v28  ;;  %21380 = vmatprep.subr.mxu0 %v13597_v34 }
 0xc1a   :  { %21360 = vmatpush3.msra.mxu1 %v13599_v28  ;;  %21381 = vmatpush3.msra.mxu0 %v13597_v34  ;;  %v14051_v15 = vand.u32 4294901760, %v23593_v27 }
 0xc1b   :  { %21362 = vmatmul.mubr.f32.vlgmr.msra.gmra.mxu1 %v23519_v35  ;;  %21371 = vmatprep.subr.mxu1 %v23528_v55 }
 0xc1c   :  { %21383 = vmatmul.mubr.f32.vlgmr.msra.gmra.mxu0 %v23519_v35  ;;  %21372 = vmatpush3.msra.mxu1 %v23528_v55  ;;  %v14052_v38 = vsub.f32 %v23593_v27, %v14051_v15 }
 0xc1d   :  { %21375 = vmatprep.mubr.f32.mxu1 %v13541_v6  ;;  %21373 = vmatprep.subr.mxu1 %v23538_v58 }
 0xc1e   :  { %21374 = vmatpush3.msra.mxu1 %v23538_v58  ;;  %v14053_v9 = vand.u32 4294901760, %v14052_v38 }
 0xc1f   :  { %21376 = vmatmul.mubr.f32.vlgmr.msra.gmra.mxu1 %v13551_v8  ;;  %21385 = vmatprep.subr.mxu1 %v23528_v55  ;;  %v13977_v8 = vsel %vm31_vm1, %v21882_v56, 0 }
 0xc20   :  { %21386 = vmatpush3.msra.mxu1 %v23528_v55  ;;  %21389 = vmatprep.mubr.f32.mxu1 %v23504_v0  ;;  %v23612_v1 = vand.u32 4294901760, %v13977_v8 }
 0xc21   :  { %21387 = vmatprep.subr.mxu1 %v23538_v58  ;;  %21396 = vmatprep.mubr.f32.mxu0 %v14053_v9 }
 0xc22   :  { %21388 = vmatpush3.msra.mxu1 %v23538_v58 }
 0xc23   :  { %21390 = vmatmul.mubr.f32.vlgmr.msra.gmra.mxu1 %v23519_v35 }
 0xc24   :  { %21403 = vmatprep.mubr.f32.mxu1 %v23590_v48 }
 0xcc0   :  { %v21314_v24 = vpop.f32.mrf.mxu0 }
 0xcc2   :  { %v13029_v0 = vpop.f32.mrf.mxu0 }
 0xcc4   :  { %v21328_v29 = vpop.f32.mrf.mxu0 }
 0xcc6   :  { %v13202_v41 = vpop.f32.mrf.mxu0 }
 0xcc9   :  { %v21321_v59 = vpop.f32.mrf.mxu1 }
 0xcca   :  { %v13127_v14 = vadd.f32 %v21321_v59, %v21314_v24  ;;  %v21342_v33 = vpop.f32.mrf.mxu0  ;;  %v23622_v24 = vsub.f32 %v13977_v8, %v23612_v1 }
 0xccb   :  { %v13120_v43 = vpop.f32.mrf.mxu1 }
 0xccc   :  { %v13121_v44 = vadd.f32 %v13120_v43, %v13029_v0  ;;  %v13369_v35 = vpop.f32.mrf.mxu0  ;;  %v13210_v25 = vadd.f32 %v21328_v29, %v13127_v14 }
 0xcce   :  { %v13203_v49 = vadd.f32 %v13202_v41, %v13121_v44 }
 0xccf   :  { %v21335_v51 = vpop.f32.mrf.mxu1 }
 0xcd0   :  { %v13293_v52 = vadd.f32 %v21335_v51, %v13210_v25  ;;  %v21356_v53 = vpop.f32.mrf.mxu0  ;;  %v14061_v25 = vand.u32 4294901760, %v23622_v24 }
 0xcd1   :  { %v13284_v54 = vpop.f32.mrf.mxu1 }
 0xcd2   :  { %v13285_v55 = vadd.f32 %v13284_v54, %v13203_v49  ;;  %v13376_v46 = vadd.f32 %v21342_v33, %v13293_v52  ;;  %v13545_v3 = vpop.f32.mrf.mxu0 }
 0xcd4   :  { %v13370_v6 = vadd.f32 %v13369_v35, %v13285_v55 }
 0xcd5   :  { %v21349_v13 = vpop.f32.mrf.mxu1 }
 0xcd6   :  { %v13455_v58 = vadd.f32 %v21349_v13, %v13376_v46  ;;  %v21370_v19 = vpop.f32.mrf.mxu0 }
 0xcd7   :  { %v13448_v5 = vpop.f32.mrf.mxu1 }
 0xcd8   :  { %v23610_v26 = vadd.f32 %v19389_v7, %v13455_v58  ;;  %v13449_v32 = vadd.f32 %v13448_v5, %v13370_v6  ;;  %v13718_v20 = vpop.f32.mrf.mxu0  ;;  %v21885_v5 = vld [vmem:[%s24305_s0 + $0x8] sm:$0x1] }
 0xcda   :  { %v13458_v34 = vadd.f32 %v19388_v16, %v13449_v32  ;;  %v15002_v36 = vmul.f32 %v21883_v62, %v23610_v26  ;;  %v14495_v58 = vsel %vm31_vm1, %v23610_v26, 0  ;;  %v14497_v32 = vsel %vm35_vm0, %v21885_v5, 0 }
 0xcdb   :  { %v21363_v28 = vpop.f32.mrf.mxu1 }
 0xcdc   :  { %v15001_v61 = vmul.f32 %v21884_v17, %v13458_v34  ;;  %v13643_v38 = vadd.f32 %v21363_v28, %v21356_v53  ;;  %v23625_v0 = vadd.f32 %v15002_v36, %v23371_v45  ;;  %v21384_v14 = vpop.f32.mrf.mxu0  ;;  %v14492_v54 = vsel %vm31_vm1, %v13458_v34, 0 }
 0xcdd   :  { %v13636_v9 = vpop.f32.mrf.mxu1  ;;  %v23636_v7 = vand.u32 4294901760, %v14492_v54  ;;  %v23652_v34 = vand.u32 4294901760, %v14495_v58  ;;  %v23659_v17 = vand.u32 4294901760, %v14497_v32 }
 0xcde   :  { %v13637_v29 = vadd.f32 %v13636_v9, %v13545_v3  ;;  %v13726_v41 = vadd.f32 %v21370_v19, %v13643_v38  ;;  %v23628_v59 = vadd.f32 %v15001_v61, %v23374_v50  ;;  %v13885_v52 = vpop.f32.mrf.mxu0  ;;  %v14062_v50 = vsub.f32 %v23622_v24, %v14061_v25 }
 0xcdf   :  { %v21377_v33 = vpop.f32.mrf.mxu1  ;;  %v23655_v62 = vsub.f32 %v14492_v54, %v23636_v7  ;;  %v23663_v38 = vsub.f32 %v14495_v58, %v23652_v34 }
 0xce0   :  { %v13809_v43 = vadd.f32 %v21377_v33, %v13726_v41  ;;  %v13719_v44 = vadd.f32 %v13718_v20, %v13637_v29  ;;  %v14063_v19 = vand.u32 4294901760, %v14062_v50 }
 0xce1   :  { %v13800_v35 = vpop.f32.mrf.mxu1  ;;  %v14568_v29 = vand.u32 4294901760, %v23655_v62 }
 0xce2   :  { %v13801_v49 = vadd.f32 %v13800_v35, %v13719_v44  ;;  %v13892_v51 = vadd.f32 %v21384_v14, %v13809_v43  ;;  %v21886_v14 = vld [vmem:[%s24305_s0] sm:$0xff]  ;;  %v14616_v43 = vsub.f32 %v14497_v32, %v23659_v17  ;;  %v14578_v44 = vand.u32 4294901760, %v23663_v38 }
 0xce3   :  { %v21391_v53 = vpop.f32.mrf.mxu1  ;;  %v23670_v33 = vand.u32 4294901760, %v21886_v14  ;;  %v14569_v35 = vsub.f32 %v23655_v62, %v14568_v29 }
 0xce4   :  { %v13971_v45 = vadd.f32 %v21391_v53, %v13892_v51  ;;  %v13886_v55 = vadd.f32 %v13885_v52, %v13801_v49  ;;  %v14617_v51 = vand.u32 4294901760, %v14616_v43  ;;  %v14579_v53 = vsub.f32 %v23663_v38, %v14578_v44 }
 0xce5   :  { %v13964_v46 = vpop.f32.mrf.mxu1  ;;  %v14623_v49 = vsub.f32 %v21886_v14, %v23670_v33  ;;  %v14570_v52 = vand.u32 4294901760, %v14569_v35 }
 0xce6   :  { %v13980_v3 = vsel %vm35_vm0, %v13971_v45, 0  ;;  %v13965_v6 = vadd.f32 %v13964_v46, %v13886_v55  ;;  %v14618_v54 = vsub.f32 %v14616_v43, %v14617_v51  ;;  %v14580_v55 = vand.u32 4294901760, %v14579_v53 }
 0xce7   :  { %v23638_v13 = vand.u32 4294901760, %v13980_v3  ;;  %v14624_v45 = vand.u32 4294901760, %v14623_v49 }
 0xce8   :  { %v23642_v56 = vand.u32 4294901760, %v13965_v6  ;;  %v14619_v46 = vand.u32 4294901760, %v14618_v54 }
 0xce9   :  { %v14099_v8 = vsub.f32 %v13980_v3, %v23638_v13  ;;  %21392 = vmatprep.subr.mxu0 %v23638_v13  ;;  %v14625_v50 = vsub.f32 %v14623_v49, %v14624_v45 }
 0xcea   :  { %v14106_v16 = vsub.f32 %v13965_v6, %v23642_v56  ;;  %21393 = vmatpush3.msra.mxu0 %v23638_v13 }
 0xceb   :  { %21394 = vmatprep.subr.mxu0 %v23642_v56  ;;  %v14100_v36 = vand.u32 4294901760, %v14099_v8 }
 0xcec   :  { %21395 = vmatpush3.msra.mxu0 %v23642_v56  ;;  %v14107_v20 = vand.u32 4294901760, %v14106_v16 }
 0xced   :  { %21397 = vmatmul.mubr.f32.vlgmr.msra.gmra.mxu0 %v14063_v19  ;;  %21406 = vmatprep.subr.mxu0 %v14099_v8  ;;  %v14101_v28 = vsub.f32 %v14099_v8, %v14100_v36 }
 0xcee   :  { %21407 = vmatpush3.msra.mxu0 %v14099_v8  ;;  %21410 = vmatprep.mubr.f32.mxu0 %v23593_v27  ;;  %v14108_v61 = vsub.f32 %v14106_v16, %v14107_v20  ;;  %v14626_v27 = vand.u32 4294901760, %v14625_v50 }
 0xcef   :  { %21408 = vmatprep.subr.mxu0 %v14106_v16  ;;  %v14102_v9 = vand.u32 4294901760, %v14101_v28 }
 0xcf0   :  { %21409 = vmatpush3.msra.mxu0 %v14106_v16  ;;  %v14109_v41 = vand.u32 4294901760, %v14108_v61 }
 0xcf1   :  { %21399 = vmatprep.subr.mxu1 %v14102_v9  ;;  %21411 = vmatmul.mubr.f32.vlgmr.msra.gmra.mxu0 %v23622_v24 }
 0xcf2   :  { %21420 = vmatprep.subr.mxu0 %v14100_v36  ;;  %21400 = vmatpush3.msra.mxu1 %v14102_v9 }
 0xcf3   :  { %21421 = vmatpush3.msra.mxu0 %v14100_v36  ;;  %21401 = vmatprep.subr.mxu1 %v14109_v41 }
 0xcf4   :  { %21422 = vmatprep.subr.mxu0 %v14107_v20  ;;  %21402 = vmatpush3.msra.mxu1 %v14109_v41  ;;  %v14487_v41 = vld [vmem:[%s24306_s1 + $0x8] sm:$0x1f] }
 0xcf5   :  { %21423 = vmatpush3.msra.mxu0 %v14107_v20  ;;  %21424 = vmatprep.mubr.f32.mxu0 %v23590_v48 }
 0xcf6   :  { %21404 = vmatmul.mubr.f32.vlgmr.msra.gmra.mxu1 %v23612_v1  ;;  %21413 = vmatprep.subr.mxu1 %v23638_v13 }
 0xcf7   :  { %21425 = vmatmul.mubr.f32.vlgmr.msra.gmra.mxu0 %v23612_v1  ;;  %21434 = vmatprep.subr.mxu0 %v23659_v17 }
 0xcf8   :  { %21414 = vmatpush3.msra.mxu1 %v23638_v13  ;;  %21435 = vmatpush3.msra.mxu0 %v23659_v17 }
 0xcf9   :  { %21438 = vmatprep.mubr.f32.mxu0 %v14570_v52  ;;  %21415 = vmatprep.subr.mxu1 %v23642_v56 }
 0xcfa   :  { %21436 = vmatprep.subr.mxu0 %v23670_v33  ;;  %21416 = vmatpush3.msra.mxu1 %v23642_v56 }
 0xcfb   :  { %21417 = vmatprep.mubr.f32.mxu1 %v14051_v15  ;;  %21437 = vmatpush3.msra.mxu0 %v23670_v33 }
 0xcfc   :  { %21418 = vmatmul.mubr.f32.vlgmr.msra.gmra.mxu1 %v14061_v25  ;;  %21427 = vmatprep.subr.mxu1 %v23638_v13 }
 0xcfd   :  { %21439 = vmatmul.mubr.f32.vlgmr.msra.gmra.mxu0 %v14580_v55  ;;  %21448 = vmatprep.subr.mxu0 %v14616_v43 }
 0xcfe   :  { %21428 = vmatpush3.msra.mxu1 %v23638_v13  ;;  %21449 = vmatpush3.msra.mxu0 %v14616_v43 }
 0xcff   :  { %21452 = vmatprep.mubr.f32.mxu0 %v23655_v62  ;;  %21429 = vmatprep.subr.mxu1 %v23642_v56 }
 0xd00   :  { %21450 = vmatprep.subr.mxu0 %v14623_v49  ;;  %21430 = vmatpush3.msra.mxu1 %v23642_v56 }
 0xd01   :  { %21431 = vmatprep.mubr.f32.mxu1 %v23590_v48  ;;  %21451 = vmatpush3.msra.mxu0 %v14623_v49  ;;  %v14486_v48 = vld [vmem:[%s24306_s1] sm:$0xff] }
 0xd02   :  { %21432 = vmatmul.mubr.f32.vlgmr.msra.gmra.mxu1 %v23612_v1  ;;  %21441 = vmatprep.subr.mxu1 %v14619_v46  ;;  %v15006_v15 = vsel %vm31_vm1, %v14486_v48, 0 }
 0xd03   :  { %21453 = vmatmul.mubr.f32.vlgmr.msra.gmra.mxu0 %v23663_v38  ;;  %21462 = vmatprep.subr.mxu0 %v14617_v51  ;;  %v23722_v1 = vand.u32 4294901760, %v15006_v15 }
 0xd04   :  { %21442 = vmatpush3.msra.mxu1 %v14619_v46  ;;  %21445 = vmatprep.mubr.f32.mxu1 %v23636_v7 }
 0xd05   :  { %21463 = vmatpush3.msra.mxu0 %v14617_v51  ;;  %21466 = vmatprep.mubr.f32.mxu0 %v23636_v7  ;;  %v23725_v24 = vsub.f32 %v15006_v15, %v23722_v1 }
 0xd06   :  { %21443 = vmatprep.subr.mxu1 %v14626_v27  ;;  %21464 = vmatprep.subr.mxu0 %v14624_v45 }
 0xd07   :  { %21444 = vmatpush3.msra.mxu1 %v14626_v27  ;;  %21465 = vmatpush3.msra.mxu0 %v14624_v45  ;;  %v15083_v25 = vand.u32 4294901760, %v23725_v24 }
 0xd08   :  { %21446 = vmatmul.mubr.f32.vlgmr.msra.gmra.mxu1 %v23652_v34  ;;  %21455 = vmatprep.subr.mxu1 %v23659_v17 }
 0xd09   :  { %21467 = vmatmul.mubr.f32.vlgmr.msra.gmra.mxu0 %v23652_v34  ;;  %21456 = vmatpush3.msra.mxu1 %v23659_v17  ;;  %v15084_v3 = vsub.f32 %v23725_v24, %v15083_v25 }
 0xd0a   :  { %21459 = vmatprep.mubr.f32.mxu1 %v14568_v29  ;;  %21457 = vmatprep.subr.mxu1 %v23670_v33 }
 0xd0b   :  { %21458 = vmatpush3.msra.mxu1 %v23670_v33  ;;  %v15085_v6 = vand.u32 4294901760, %v15084_v3 }
 0xd0c   :  { %21460 = vmatmul.mubr.f32.vlgmr.msra.gmra.mxu1 %v14578_v44  ;;  %21469 = vmatprep.subr.mxu1 %v23659_v17  ;;  %v15009_v44 = vsel %vm31_vm1, %v14487_v41, 0 }
 0xd0d   :  { %21470 = vmatpush3.msra.mxu1 %v23659_v17  ;;  %21473 = vmatprep.mubr.f32.mxu1 %v23636_v7  ;;  %v23740_v52 = vand.u32 4294901760, %v15009_v44 }
 0xd0e   :  { %21471 = vmatprep.subr.mxu1 %v23670_v33  ;;  %21480 = vmatprep.mubr.f32.mxu0 %v15085_v6 }
 0xd0f   :  { %21472 = vmatpush3.msra.mxu1 %v23670_v33  ;;  %v15092_v46 = vsub.f32 %v15009_v44, %v23740_v52 }
 0xd10   :  { %21474 = vmatmul.mubr.f32.vlgmr.msra.gmra.mxu1 %v23652_v34 }
 0xd11   :  { %21487 = vmatprep.mubr.f32.mxu1 %v23722_v1 }
 0xdad   :  { %v21398_v7 = vpop.f32.mrf.mxu0 }
 0xdaf   :  { %v14055_v13 = vpop.f32.mrf.mxu0 }
 0xdb1   :  { %v21412_v58 = vpop.f32.mrf.mxu0 }
 0xdb3   :  { %v14228_v56 = vpop.f32.mrf.mxu0 }
 0xdb6   :  { %v21405_v8 = vpop.f32.mrf.mxu1 }
 0xdb7   :  { %v14153_v19 = vadd.f32 %v21405_v8, %v21398_v7  ;;  %v21426_v16 = vpop.f32.mrf.mxu0 }
 0xdb8   :  { %v14146_v5 = vpop.f32.mrf.mxu1 }
 0xdb9   :  { %v14147_v32 = vadd.f32 %v14146_v5, %v14055_v13  ;;  %v14395_v34 = vpop.f32.mrf.mxu0  ;;  %v14236_v62 = vadd.f32 %v21412_v58, %v14153_v19  ;;  %v15093_v13 = vand.u32 4294901760, %v15092_v46 }
 0xdbb   :  { %v14229_v36 = vadd.f32 %v14228_v56, %v14147_v32 }
 0xdbc   :  { %v21419_v20 = vpop.f32.mrf.mxu1 }
 0xdbd   :  { %v14319_v28 = vadd.f32 %v21419_v20, %v14236_v62  ;;  %v21440_v17 = vpop.f32.mrf.mxu0 }
 0xdbe   :  { %v14310_v61 = vpop.f32.mrf.mxu1 }
 0xdbf   :  { %v14311_v38 = vadd.f32 %v14310_v61, %v14229_v36  ;;  %v14402_v9 = vadd.f32 %v21426_v16, %v14319_v28  ;;  %v14572_v29 = vpop.f32.mrf.mxu0 }
 0xdc1   :  { %v14396_v14 = vadd.f32 %v14395_v34, %v14311_v38  ;;  %v15094_v34 = vsub.f32 %v15092_v46, %v15093_v13 }
 0xdc2   :  { %v21433_v33 = vpop.f32.mrf.mxu1 }
 0xdc3   :  { %v23735_v43 = vadd.f32 %v21433_v33, %v14402_v9  ;;  %v21454_v35 = vpop.f32.mrf.mxu0  ;;  %v15095_v61 = vand.u32 4294901760, %v15094_v34 }
 0xdc4   :  { %v14474_v49 = vpop.f32.mrf.mxu1 }
 0xdc5   :  { %v23738_v51 = vadd.f32 %v14474_v49, %v14396_v14  ;;  %v14745_v53 = vpop.f32.mrf.mxu0 }
 0xdc8   :  { %v21447_v54 = vpop.f32.mrf.mxu1 }
 0xdc9   :  { %v14670_v45 = vadd.f32 %v21447_v54, %v21440_v17  ;;  %v21468_v48 = vpop.f32.mrf.mxu0 }
 0xdca   :  { %v14663_v55 = vpop.f32.mrf.mxu1 }
 0xdcb   :  { %v14664_v50 = vadd.f32 %v14663_v55, %v14572_v29  ;;  %v14753_v27 = vadd.f32 %v21454_v35, %v14670_v45  ;;  %v14912_v8 = vpop.f32.mrf.mxu0  ;;  %v21888_v35 = vld [vmem:[%s24307_s2] sm:$0xff] }
 0xdcc   :  { %v21461_v15 = vpop.f32.mrf.mxu1  ;;  %v23761_v49 = vand.u32 4294901760, %v21888_v35 }
 0xdcd   :  { %v14836_v3 = vadd.f32 %v21461_v15, %v14753_v27  ;;  %v14746_v6 = vadd.f32 %v14745_v53, %v14664_v50 }
 0xdce   :  { %v14827_v7 = vpop.f32.mrf.mxu1  ;;  %v23772_v54 = vsub.f32 %v21888_v35, %v23761_v49 }
 0xdcf   :  { %v14828_v58 = vadd.f32 %v14827_v7, %v14746_v6  ;;  %v14919_v56 = vadd.f32 %v21468_v48, %v14836_v3 }
 0xdd0   :  { %v21475_v19 = vpop.f32.mrf.mxu1  ;;  %v15659_v55 = vand.u32 4294901760, %v23772_v54 }
 0xdd1   :  { %v14998_v16 = vadd.f32 %v21475_v19, %v14919_v56  ;;  %v14913_v5 = vadd.f32 %v14912_v8, %v14828_v58 }
 0xdd2   :  { %v14991_v32 = vpop.f32.mrf.mxu1  ;;  %v15660_v50 = vsub.f32 %v23772_v54, %v15659_v55 }
 0xdd3   :  { %v15012_v62 = vsel %vm35_vm0, %v14998_v16, 0  ;;  %v14992_v36 = vadd.f32 %v14991_v32, %v14913_v5 }
 0xdd4   :  { %v15043_v20 = vand.u32 4294901760, %v15012_v62  ;;  %v15661_v27 = vand.u32 4294901760, %v15660_v50 }
 0xdd5   :  { %v15046_v28 = vand.u32 4294901760, %v14992_v36 }
 0xdd6   :  { %v15131_v17 = vsub.f32 %v15012_v62, %v15043_v20  ;;  %21476 = vmatprep.subr.mxu0 %v15043_v20  ;;  %v16007_v62 = vsel %vm35_vm0, %v22212_v57, 0  ;;  %v23800_v57 = vand.u32 4294901760, %v22206_v47 }
 0xdd7   :  { %v15138_v38 = vsub.f32 %v14992_v36, %v15046_v28  ;;  %21477 = vmatpush3.msra.mxu0 %v15043_v20 }
 0xdd8   :  { %21478 = vmatprep.subr.mxu0 %v15046_v28  ;;  %v15132_v9 = vand.u32 4294901760, %v15131_v17 }
 0xdd9   :  { %21479 = vmatpush3.msra.mxu0 %v15046_v28  ;;  %v15139_v29 = vand.u32 4294901760, %v15138_v38 }
 0xdda   :  { %21490 = vmatprep.subr.mxu0 %v15131_v17  ;;  %21481 = vmatmul.mubr.f32.vlgmr.msra.gmra.mxu0 %v15095_v61  ;;  %v15133_v41 = vsub.f32 %v15131_v17, %v15132_v9 }
 0xddb   :  { %21491 = vmatpush3.msra.mxu0 %v15131_v17  ;;  %21494 = vmatprep.mubr.f32.mxu0 %v23725_v24  ;;  %v15140_v14 = vsub.f32 %v15138_v38, %v15139_v29  ;;  %v21887_v24 = vld [vmem:[%s24307_s2 + $0x8] sm:$0x1] }
 0xddc   :  { %21492 = vmatprep.subr.mxu0 %v15138_v38  ;;  %v15134_v33 = vand.u32 4294901760, %v15133_v41  ;;  %v19393_v17 = vld [vmem:[%s24306_s1 + $0x88] sm:$0x1f]  ;;  %v19392_v41 = vld [vmem:[%s24306_s1 + $0x80] sm:$0xff] }
 0xddd   :  { %21493 = vmatpush3.msra.mxu0 %v15138_v38  ;;  %v15141_v44 = vand.u32 4294901760, %v15140_v14 }
 0xdde   :  { %21483 = vmatprep.subr.mxu1 %v15134_v33  ;;  %21504 = vmatprep.subr.mxu0 %v15132_v9 }
 0xddf   :  { %21484 = vmatpush3.msra.mxu1 %v15134_v33  ;;  %21495 = vmatmul.mubr.f32.vlgmr.msra.gmra.mxu0 %v15092_v46 }
 0xde0   :  { %21505 = vmatpush3.msra.mxu0 %v15132_v9  ;;  %21485 = vmatprep.subr.mxu1 %v15141_v44 }
 0xde1   :  { %21506 = vmatprep.subr.mxu0 %v15139_v29  ;;  %21486 = vmatpush3.msra.mxu1 %v15141_v44 }
 0xde2   :  { %21507 = vmatpush3.msra.mxu0 %v15139_v29  ;;  %21488 = vmatmul.mubr.f32.vlgmr.msra.gmra.mxu1 %v23740_v52  ;;  %v23794_v29 = vand.u32 4294901760, %v16007_v62 }
 0xde3   :  { %21497 = vmatprep.subr.mxu1 %v15043_v20  ;;  %21501 = vmatprep.mubr.f32.mxu1 %v15083_v25  ;;  %v15542_v25 = vsel %vm35_vm0, %v21887_v24, 0 }
 0xde4   :  { %21498 = vmatpush3.msra.mxu1 %v15043_v20  ;;  %21508 = vmatprep.mubr.f32.mxu0 %v23722_v1  ;;  %v23763_v53 = vand.u32 4294901760, %v15542_v25  ;;  %v23803_v50 = vsub.f32 %v16007_v62, %v23794_v29 }
 0xde5   :  { %21499 = vmatprep.subr.mxu1 %v15046_v28  ;;  %21509 = vmatmul.mubr.f32.vlgmr.msra.gmra.mxu0 %v23740_v52 }
 0xde6   :  { %21500 = vmatpush3.msra.mxu1 %v15046_v28  ;;  %21518 = vmatprep.subr.mxu0 %v21901_v4 }
 0xde7   :  { %21502 = vmatmul.mubr.f32.vlgmr.msra.gmra.mxu1 %v15093_v13  ;;  %21511 = vmatprep.subr.mxu1 %v15043_v20 }
 0xde8   :  { %21512 = vmatpush3.msra.mxu1 %v15043_v20  ;;  %21515 = vmatprep.mubr.f32.mxu1 %v23722_v1  ;;  %v23766_v1 = vsub.f32 %v15542_v25, %v23763_v53 }
 0xde9   :  { %21513 = vmatprep.subr.mxu1 %v15046_v28  ;;  %21519 = vmatpush3.msra.mxu0 %v23763_v53 }
 0xdea   :  { %21514 = vmatpush3.msra.mxu1 %v15046_v28  ;;  %21520 = vmatprep.subr.mxu0 %v21901_v4 }
 0xdeb   :  { %21516 = vmatmul.mubr.f32.vlgmr.msra.gmra.mxu1 %v23740_v52  ;;  %21525 = vmatprep.subr.mxu1 %v21901_v4  ;;  %v15652_v52 = vand.u32 4294901760, %v23766_v1 }
 0xdec   :  { %21521 = vmatpush3.msra.mxu0 %v23761_v49  ;;  %21529 = vmatprep.mubr.msk.f32.mxu1 %vm21902_vm2, %v21901_v4 }
 0xded   :  { %21532 = vmatprep.subr.mxu0 %v21901_v4  ;;  %v15653_v45 = vsub.f32 %v23766_v1, %v15652_v52  ;;  %21522 = vmatprep.mubr.msk.f32.mxu0 %vm21902_vm2, %v21901_v4 }
 0xdef   :  { %v15654_v46 = vand.u32 4294901760, %v15653_v45 }
 0xdf1   :  { %21526 = vmatpush3.msra.mxu1 %v15654_v46 }
 0xdf2   :  { %21527 = vmatprep.subr.mxu1 %v21901_v4 }
 0xdf3   :  { %21528 = vmatpush3.msra.mxu1 %v15661_v27 }
 0xdf4   :  { %21539 = vmatprep.subr.mxu1 %v21901_v4 }
 0xe9a   :  { %v21482_v48 = vpop.f32.mrf.mxu0 }
 0xe9c   :  { %v15087_v15 = vpop.f32.mrf.mxu0 }
 0xe9f   :  { %v21496_v3 = vpop.f32.mrf.mxu0 }
 0xea1   :  { %v15260_v13 = vpop.f32.mrf.mxu0 }
 0xea2   :  { %v21489_v6 = vpop.f32.mrf.mxu1 }
 0xea3   :  { %v15185_v7 = vadd.f32 %v21489_v6, %v21482_v48 }
 0xea4   :  { %v15178_v58 = vpop.f32.mrf.mxu1 }
 0xea5   :  { %v15268_v56 = vadd.f32 %v21496_v3, %v15185_v7  ;;  %v15179_v8 = vadd.f32 %v15178_v58, %v15087_v15  ;;  %v21510_v5 = vpop.f32.mrf.mxu0  ;;  %v23809_v3 = vsub.f32 %v22206_v47, %v23800_v57  ;;  %v16004_v58 = vrot.slane %v23610_v26, 1 }
 0xea7   :  { %v15261_v19 = vadd.f32 %v15260_v13, %v15179_v8  ;;  %v21503_v16 = vpop.f32.mrf.mxu1  ;;  %v15427_v28 = vpop.f32.mrf.mxu0  ;;  %v16117_v13 = vand.u32 4294901760, %v23803_v50 }
 0xea8   :  { %v15351_v32 = vadd.f32 %v21503_v16, %v15268_v56  ;;  %v16124_v56 = vand.u32 4294901760, %v23809_v3 }
 0xea9   :  { %v15342_v34 = vpop.f32.mrf.mxu1  ;;  %v16118_v26 = vsub.f32 %v23803_v50, %v16117_v13 }
 0xeaa   :  { %v15434_v36 = vadd.f32 %v21510_v5, %v15351_v32  ;;  %v15343_v20 = vadd.f32 %v15342_v34, %v15261_v19  ;;  %v16005_v19 = vsel %vm31_vm1, %v16004_v58, 0  ;;  %v16125_v5 = vsub.f32 %v23809_v3, %v16124_v56 }
 0xeab   :  { %v21517_v61 = vpop.f32.mrf.mxu1  ;;  %v16472_v32 = vsel %vm35_vm0, %v22478_v63, 0  ;;  %v23840_v34 = vand.u32 4294901760, %v16005_v19  ;;  %v23851_v63 = vand.u32 4294901760, %v22472_v30  ;;  %v23983_v58 = vand.u32 4294901760, %v22986_v10 }
 0xeac   :  { %v15428_v38 = vadd.f32 %v15427_v28, %v15343_v20  ;;  %v15513_v9 = vadd.f32 %v21517_v61, %v15434_v36  ;;  %v23845_v62 = vand.u32 4294901760, %v16472_v32  ;;  %v16126_v36 = vand.u32 4294901760, %v16125_v5 }
 0xead   :  { %v15506_v14 = vpop.f32.mrf.mxu1  ;;  %v23868_v28 = vsub.f32 %v22472_v30, %v23851_v63  ;;  %v16469_v30 = vrot.slane %v23356_v39, 1 }
 0xeae   :  { %v15517_v33 = vadd.f32 %v19393_v17, %v15513_v9  ;;  %v15507_v44 = vadd.f32 %v15506_v14, %v15428_v38  ;;  %v23860_v20 = vsub.f32 %v16472_v32, %v23845_v62  ;;  %v16937_v9 = vsel %vm35_vm0, %v22735_v31, 0 }
 0xeaf   :  { %v23911_v14 = vand.u32 4294901760, %v16937_v9  ;;  %v17867_v32 = vsel %vm35_vm0, %v23242_v42, 0 }
 0xeb0   :  { %v15519_v25 = vmul.f32 %v21887_v24, %v15517_v33  ;;  %v15539_v45 = vrot.slane %v15517_v33, 1  ;;  %v15516_v46 = vadd.f32 %v19392_v41, %v15507_v44  ;;  %v23917_v33 = vand.u32 4294901760, %v22726_v12 }
 0xeb2   :  { %v15540_v27 = vsel %vm31_vm1, %v15539_v45, 0  ;;  %v15518_v48 = vmul.f32 %v21888_v35, %v15516_v46  ;;  %v15521_v15 = vadd.f32 %v15519_v25, %v23625_v0  ;;  %v23934_v25 = vsub.f32 %v22726_v12, %v23917_v33 }
 0xeb3   :  { %v23811_v6 = vand.u32 4294901760, %v15540_v27  ;;  %v16934_v12 = vrot.slane %v23104_v11, 1 }
 0xeb4   :  { %v15520_v7 = vadd.f32 %v15518_v48, %v23628_v59  ;;  %v15524_v0 = vsel %vm15523_vm3, %v15521_v15, 0.0 }
 0xeb5   :  { %v15612_v24 = vsub.f32 %v15540_v27, %v23811_v6  ;;  %21530 = vmatmul.mubr.f32.vlgmr.msra.gmra.mxu1 %v23811_v6  ;;  %v17054_v27 = vand.u32 4294901760, %v23934_v25  ;;  %v16935_v48 = vsel %vm31_vm1, %v16934_v12, 0 }
 0xeb6   :  { %21540 = vmatpush3.msra.mxu1 %v23763_v53  ;;  %21543 = vmatprep.mubr.msk.f32.mxu1 %vm21902_vm2, %v21901_v4  ;;  %v15522_v47 = vsel %vm31_vm1, %v15520_v7, 0.0  ;;  %v23972_v7 = vand.u32 4294901760, %v16935_v48 }
 0xeb7   :  { %v15613_v35 = vand.u32 4294901760, %v15612_v24  ;;  %21541 = vmatprep.subr.mxu1 %v21901_v4  ;;  %v15525_v59 = vadd.f32 %v15524_v0, %v15522_v47 }
 0xeb8   :  { %21542 = vmatpush3.msra.mxu1 %v23761_v49  ;;  %v17007_v47 = vsub.f32 %v16935_v48, %v23972_v7  ;;  %v21890_v48 = vld [vmem:[%s24305_s0 + $0x160] sm:$0xff] }
 0xeb9   :  { %v15614_v8 = vsub.f32 %v15612_v24, %v15613_v35  ;;  %21553 = vmatprep.subr.mxu1 %v21901_v4  ;;  %21544 = vmatmul.mubr.f32.vlgmr.msra.gmra.mxu1 %v15613_v35  ;;  %v24000_v35 = vsub.f32 %v22986_v10, %v23983_v58  ;;  %v17399_v10 = vrot.slane %v22857_v60, 1 }
 0xeba   :  { %21554 = vmatpush3.msra.mxu1 %v23763_v53  ;;  %15526 = vadd.xlane.f32.xlu0 %v15525_v59  ;;  %v16119_v53 = vand.u32 4294901760, %v16118_v26  ;;  %v17008_v59 = vand.u32 4294901760, %v17007_v47 }
 0xebb   :  { %21555 = vmatprep.subr.mxu1 %v21901_v4  ;;  %21557 = vmatprep.mubr.msk.f32.mxu1 %vm21902_vm2, %v21901_v4  ;;  %v15615_v16 = vand.u32 4294901760, %v15614_v8  ;;  %v17519_v26 = vand.u32 4294901760, %v24000_v35 }
 0xebc   :  { %21556 = vmatpush3.msra.mxu1 %v23761_v49  ;;  %v16077_v49 = vsub.f32 %v16005_v19, %v23840_v34  ;;  %v17009_v8 = vsub.f32 %v17007_v47, %v17008_v59  ;;  %v17400_v19 = vsel %vm31_vm1, %v17399_v10, 0 }
 0xebd   :  { %21567 = vmatprep.subr.mxu1 %v21901_v4  ;;  %21523 = vmatmul.mubr.f32.vlgmr.msra.gmra.mxu0 %v15615_v16  ;;  %v17520_v5 = vsub.f32 %v24000_v35, %v17519_v26 }
 0xebe   :  { %21533 = vmatpush3.msra.mxu0 %v23766_v1  ;;  %21558 = vmatmul.mubr.f32.vlgmr.msra.gmra.mxu1 %v23811_v6  ;;  %v16078_v17 = vand.u32 4294901760, %v16077_v49  ;;  %v16582_v1 = vand.u32 4294901760, %v23860_v20  ;;  %v17010_v16 = vand.u32 4294901760, %v17009_v8 }
 0xebf   :  { %21568 = vmatpush3.msra.mxu1 %v16119_v53  ;;  %21534 = vmatprep.subr.mxu0 %v21901_v4  ;;  %v17521_v42 = vand.u32 4294901760, %v17520_v5 }
 0xec0   :  { %21569 = vmatprep.subr.mxu1 %v21901_v4  ;;  %21535 = vmatpush3.msra.mxu0 %v23772_v54  ;;  %v16589_v54 = vand.u32 4294901760, %v23868_v28  ;;  %v16583_v39 = vsub.f32 %v23860_v20, %v16582_v1 }
 0xec1   :  { %21570 = vmatpush3.msra.mxu1 %v16126_v36  ;;  %21536 = vmatprep.mubr.msk.f32.mxu0 %vm21902_vm2, %v21901_v4 }
 0xec2   :  { %21546 = vmatprep.subr.mxu0 %v21901_v4  ;;  %21571 = vmatprep.mubr.msk.f32.mxu1 %vm21902_vm2, %v21901_v4  ;;  %v16590_v38 = vsub.f32 %v23868_v28, %v16589_v54  ;;  %v16584_v41 = vand.u32 4294901760, %v16583_v39 }
 0xec3   :  { %21581 = vmatprep.subr.mxu1 %v21901_v4  ;;  %21537 = vmatmul.mubr.f32.vlgmr.msra.gmra.mxu0 %v15612_v24 }
 0xec4   :  { %21547 = vmatpush3.msra.mxu0 %v15652_v52  ;;  %21572 = vmatmul.mubr.f32.vlgmr.msra.gmra.mxu1 %v23840_v34  ;;  %v16079_v52 = vsub.f32 %v16077_v49, %v16078_v17  ;;  %v16591_v31 = vand.u32 4294901760, %v16590_v38 }
 0xec5   :  { %21582 = vmatpush3.msra.mxu1 %v23794_v29  ;;  %21548 = vmatprep.subr.mxu0 %v21901_v4 }
 0xec6   :  { %21583 = vmatprep.subr.mxu1 %v21901_v4  ;;  %21549 = vmatpush3.msra.mxu0 %v15659_v55  ;;  %v16470_v55 = vsel %vm31_vm1, %v16469_v30, 0  ;;  %v16080_v61 = vand.u32 4294901760, %v16079_v52 }
 0xec7   :  { %21584 = vmatpush3.msra.mxu1 %v23800_v57  ;;  %21550 = vmatprep.mubr.msk.f32.mxu0 %vm21902_vm2, %v21901_v4 }
 0xec8   :  { %21560 = vmatprep.subr.mxu0 %v21901_v4  ;;  %21585 = vmatprep.mubr.msk.f32.mxu1 %vm21902_vm2, %v21901_v4 }
 0xec9   :  { %21595 = vmatprep.subr.mxu1 %v21901_v4  ;;  %21551 = vmatmul.mubr.f32.vlgmr.msra.gmra.mxu0 %v23811_v6  ;;  %v17402_v6 = vsel %vm35_vm0, %v22990_v37, 0 }
 0xeca   :  { %21561 = vmatpush3.msra.mxu0 %v23794_v29  ;;  %21586 = vmatmul.mubr.f32.vlgmr.msra.gmra.mxu1 %v16078_v17 }
 0xecb   :  { %21596 = vmatpush3.msra.mxu1 %v23794_v29  ;;  %21562 = vmatprep.subr.mxu0 %v21901_v4  ;;  %v23906_v29 = vand.u32 4294901760, %v16470_v55 }
 0xecc   :  { %21597 = vmatprep.subr.mxu1 %v21901_v4  ;;  %21563 = vmatpush3.msra.mxu0 %v23800_v57 }
 0xecd   :  { %21598 = vmatpush3.msra.mxu1 %v23800_v57  ;;  %21564 = vmatprep.mubr.msk.f32.mxu0 %vm21902_vm2, %v21901_v4  ;;  %v16542_v44 = vsub.f32 %v16470_v55, %v23906_v29  ;;  %v23926_v57 = vsub.f32 %v16937_v9, %v23911_v14  ;;  %v18332_v55 = vsel %vm35_vm0, %v23496_v18, 0 }
 0xece   :  { %21574 = vmatprep.subr.mxu0 %v21901_v4  ;;  %21599 = vmatprep.mubr.msk.f32.mxu1 %vm21902_vm2, %v21901_v4  ;;  %v24109_v9 = vand.u32 4294901760, %v18332_v55 }
 0xecf   :  { %21609 = vmatprep.subr.mxu1 %v21901_v4  ;;  %21565 = vmatmul.mubr.f32.vlgmr.msra.gmra.mxu0 %v16080_v61  ;;  %v16543_v45 = vand.u32 4294901760, %v16542_v44  ;;  %v17047_v46 = vand.u32 4294901760, %v23926_v57 }
 0xed0   :  { %21575 = vmatpush3.msra.mxu0 %v23803_v50  ;;  %21600 = vmatmul.mubr.f32.vlgmr.msra.gmra.mxu1 %v23840_v34 }
 0xed1   :  { %21610 = vmatpush3.msra.mxu1 %v16584_v41  ;;  %21576 = vmatprep.subr.mxu0 %v21901_v4  ;;  %v16544_v50 = vsub.f32 %v16542_v44, %v16543_v45  ;;  %v17048_v11 = vsub.f32 %v23926_v57, %v17047_v46  ;;  %v24118_v41 = vand.u32 4294901760, %v23490_v22 }
 0xed2   :  { %21611 = vmatprep.subr.mxu1 %v21901_v4  ;;  %21577 = vmatpush3.msra.mxu0 %v23809_v3  ;;  %v17055_v3 = vsub.f32 %v23934_v25, %v17054_v27 }
 0xed3   :  { %21612 = vmatpush3.msra.mxu1 %v16591_v31  ;;  %21578 = vmatprep.mubr.msk.f32.mxu0 %vm21902_vm2, %v21901_v4  ;;  %v16545_v15 = vand.u32 4294901760, %v16544_v50  ;;  %v17049_v24 = vand.u32 4294901760, %v17048_v11  ;;  %v24134_v31 = vsub.f32 %v23490_v22, %v24118_v41  ;;  %v18329_v22 = vrot.slane %v22342_v23, 1 }
 0xed4   :  { %21588 = vmatprep.subr.mxu0 %v21901_v4  ;;  %21613 = vmatprep.mubr.msk.f32.mxu1 %vm21902_vm2, %v21901_v4  ;;  %v17056_v37 = vand.u32 4294901760, %v17055_v3 }
 0xed5   :  { %21623 = vmatprep.subr.mxu1 %v21901_v4  ;;  %21579 = vmatmul.mubr.f32.vlgmr.msra.gmra.mxu0 %v16077_v49  ;;  %v18330_v12 = vsel %vm31_vm1, %v18329_v22, 0 }
 0xed6   :  { %21589 = vmatpush3.msra.mxu0 %v16117_v13  ;;  %21614 = vmatmul.mubr.f32.vlgmr.msra.gmra.mxu1 %v23906_v29  ;;  %v23977_v13 = vand.u32 4294901760, %v17402_v6  ;;  %v24177_v11 = vand.u32 4294901760, %v18330_v12 }
 0xed7   :  { %21624 = vmatpush3.msra.mxu1 %v23845_v62  ;;  %21590 = vmatprep.subr.mxu0 %v21901_v4 }
 0xed8   :  { %21625 = vmatprep.subr.mxu1 %v21901_v4  ;;  %21591 = vmatpush3.msra.mxu0 %v16124_v56  ;;  %v23992_v0 = vsub.f32 %v17402_v6, %v23977_v13 }
 0xed9   :  { %21626 = vmatpush3.msra.mxu1 %v23851_v63  ;;  %21592 = vmatprep.mubr.msk.f32.mxu0 %vm21902_vm2, %v21901_v4 }
 0xeda   :  { %21602 = vmatprep.subr.mxu0 %v21901_v4  ;;  %21627 = vmatprep.mubr.msk.f32.mxu1 %vm21902_vm2, %v21901_v4  ;;  %v17512_v56 = vand.u32 4294901760, %v23992_v0 }
 0xedb   :  { %21637 = vmatprep.subr.mxu1 %v21901_v4  ;;  %21593 = vmatmul.mubr.f32.vlgmr.msra.gmra.mxu0 %v23840_v34  ;;  %v24038_v34 = vand.u32 4294901760, %v17400_v19 }
 0xedc   :  { %21603 = vmatpush3.msra.mxu0 %v23845_v62  ;;  %21628 = vmatmul.mubr.f32.vlgmr.msra.gmra.mxu1 %v16543_v45  ;;  %v17513_v60 = vsub.f32 %v23992_v0, %v17512_v56  ;;  %v21889_v45 = vld [vmem:[%s24305_s0 + $0x168] sm:$0x1] }
 0xedd   :  { %21638 = vmatpush3.msra.mxu1 %v23845_v62  ;;  %21604 = vmatprep.subr.mxu0 %v21901_v4  ;;  %v24043_v62 = vand.u32 4294901760, %v17867_v32  ;;  %v17472_v36 = vsub.f32 %v17400_v19, %v24038_v34 }
 0xede   :  { %21639 = vmatprep.subr.mxu1 %v21901_v4  ;;  %21605 = vmatpush3.msra.mxu0 %v23851_v63  ;;  %v17514_v53 = vand.u32 4294901760, %v17513_v60 }
 0xedf   :  { %21640 = vmatpush3.msra.mxu1 %v23851_v63  ;;  %21606 = vmatprep.mubr.msk.f32.mxu0 %vm21902_vm2, %v21901_v4  ;;  %v24050_v63 = vand.u32 4294901760, %v23236_v40  ;;  %v24058_v49 = vsub.f32 %v17867_v32, %v24043_v62 }
 0xee0   :  { %21616 = vmatprep.subr.mxu0 %v21901_v4  ;;  %21641 = vmatprep.mubr.msk.f32.mxu1 %vm21902_vm2, %v21901_v4 }
 0xee1   :  { %21651 = vmatprep.subr.mxu1 %v21901_v4  ;;  %21607 = vmatmul.mubr.f32.vlgmr.msra.gmra.mxu0 %v16545_v15  ;;  %v17977_v17 = vand.u32 4294901760, %v24058_v49  ;;  %v14484_v15 = vadd.f32 %v21890_v48, %v23738_v51  ;;  %v18402_v51 = vsub.f32 %v18330_v12, %v24177_v11 }
 0xee2   :  { %21617 = vmatpush3.msra.mxu0 %v23860_v20  ;;  %21642 = vmatmul.mubr.f32.vlgmr.msra.gmra.mxu1 %v23906_v29  ;;  %v24066_v20 = vsub.f32 %v23236_v40, %v24050_v63  ;;  %v17864_v40 = vrot.slane %v22595_v2, 1 }
 0xee3   :  { %21652 = vmatpush3.msra.mxu1 %v17049_v24  ;;  %21618 = vmatprep.subr.mxu0 %v21901_v4  ;;  %v17978_v2 = vsub.f32 %v24058_v49, %v17977_v17  ;;  %v24192_v24 = vand.u32 4294901760, %v14484_v15 }
 0xee4   :  { %21653 = vmatprep.subr.mxu1 %v21901_v4  ;;  %21619 = vmatpush3.msra.mxu0 %v23868_v28  ;;  %v17473_v28 = vand.u32 4294901760, %v17472_v36  ;;  %v17984_v30 = vand.u32 4294901760, %v24066_v20  ;;  %v17865_v52 = vsel %vm31_vm1, %v17864_v40, 0 }
 0xee5   :  { %21654 = vmatpush3.msra.mxu1 %v17056_v37  ;;  %21620 = vmatprep.mubr.msk.f32.mxu0 %vm21902_vm2, %v21901_v4  ;;  %v24104_v61 = vand.u32 4294901760, %v17865_v52  ;;  %v17979_v38 = vand.u32 4294901760, %v17978_v2  ;;  %v24208_v37 = vsub.f32 %v14484_v15, %v24192_v24 }
 0xee6   :  { %21630 = vmatprep.subr.mxu0 %v21901_v4  ;;  %21655 = vmatprep.mubr.msk.f32.mxu1 %vm21902_vm2, %v21901_v4  ;;  %v17985_v39 = vsub.f32 %v24066_v20, %v17984_v30 }
 0xee7   :  { %21665 = vmatprep.subr.mxu1 %v21901_v4  ;;  %21621 = vmatmul.mubr.f32.vlgmr.msra.gmra.mxu0 %v16542_v44 }
 0xee8   :  { %21631 = vmatpush3.msra.mxu0 %v16582_v1  ;;  %21656 = vmatmul.mubr.f32.vlgmr.msra.gmra.mxu1 %v23972_v7  ;;  %v17474_v1 = vsub.f32 %v17472_v36, %v17473_v28  ;;  %v17986_v18 = vand.u32 4294901760, %v17985_v39 }
 0xee9   :  { %21666 = vmatpush3.msra.mxu1 %v23911_v14  ;;  %21632 = vmatprep.subr.mxu0 %v21901_v4 }
 0xeea   :  { %21667 = vmatprep.subr.mxu1 %v21901_v4  ;;  %21633 = vmatpush3.msra.mxu0 %v16589_v54  ;;  %v17475_v54 = vand.u32 4294901760, %v17474_v1 }
 0xeeb   :  { %21668 = vmatpush3.msra.mxu1 %v23917_v33  ;;  %21634 = vmatprep.mubr.msk.f32.mxu0 %vm21902_vm2, %v21901_v4 }
 0xeec   :  { %21644 = vmatprep.subr.mxu0 %v21901_v4  ;;  %21669 = vmatprep.mubr.msk.f32.mxu1 %vm21902_vm2, %v21901_v4 }
 0xeed   :  { %21679 = vmatprep.subr.mxu1 %v21901_v4  ;;  %21635 = vmatmul.mubr.f32.vlgmr.msra.gmra.mxu0 %v23906_v29  ;;  %v24115_v29 = vsub.f32 %v17865_v52, %v24104_v61 }
 0xeee   :  { %21645 = vmatpush3.msra.mxu0 %v23911_v14  ;;  %21670 = vmatmul.mubr.f32.vlgmr.msra.gmra.mxu1 %v17008_v59 }
 0xeef   :  { %21680 = vmatpush3.msra.mxu1 %v23911_v14  ;;  %21646 = vmatprep.subr.mxu0 %v21901_v4  ;;  %v24126_v14 = vsub.f32 %v18332_v55, %v24109_v9 }
 0xef0   :  { %21681 = vmatprep.subr.mxu1 %v21901_v4  ;;  %21647 = vmatpush3.msra.mxu0 %v23917_v33 }
 0xef1   :  { %21682 = vmatpush3.msra.mxu1 %v23917_v33  ;;  %21648 = vmatprep.mubr.msk.f32.mxu0 %vm21902_vm2, %v21901_v4  ;;  %v17938_v33 = vand.u32 4294901760, %v24115_v29  ;;  %v18442_v44 = vand.u32 4294901760, %v24126_v14 }
 0xef2   :  { %21658 = vmatprep.subr.mxu0 %v21901_v4  ;;  %21683 = vmatprep.mubr.msk.f32.mxu1 %vm21902_vm2, %v21901_v4 }
 0xef3   :  { %21693 = vmatprep.subr.mxu1 %v21901_v4  ;;  %21649 = vmatmul.mubr.f32.vlgmr.msra.gmra.mxu0 %v17010_v16  ;;  %v18443_v23 = vsub.f32 %v24126_v14, %v18442_v44 }
 0xef4   :  { %21659 = vmatpush3.msra.mxu0 %v23926_v57  ;;  %21684 = vmatmul.mubr.f32.vlgmr.msra.gmra.mxu1 %v23972_v7  ;;  %v17939_v57 = vsub.f32 %v24115_v29, %v17938_v33 }
 0xef5   :  { %21694 = vmatpush3.msra.mxu1 %v17514_v53  ;;  %21660 = vmatprep.subr.mxu0 %v21901_v4  ;;  %v18444_v3 = vand.u32 4294901760, %v18443_v23 }
 0xef6   :  { %21695 = vmatprep.subr.mxu1 %v21901_v4  ;;  %21661 = vmatpush3.msra.mxu0 %v23934_v25  ;;  %v18449_v25 = vand.u32 4294901760, %v24134_v31 }
 0xef7   :  { %21696 = vmatpush3.msra.mxu1 %v17521_v42  ;;  %21662 = vmatprep.mubr.msk.f32.mxu0 %vm21902_vm2, %v21901_v4 }
 0xef8   :  { %21672 = vmatprep.subr.mxu0 %v21901_v4  ;;  %21697 = vmatprep.mubr.msk.f32.mxu1 %vm21902_vm2, %v21901_v4  ;;  %v18450_v50 = vsub.f32 %v24134_v31, %v18449_v25 }
 0xef9   :  { %21707 = vmatprep.subr.mxu1 %v21901_v4  ;;  %21663 = vmatmul.mubr.f32.vlgmr.msra.gmra.mxu0 %v17007_v47 }
 0xefa   :  { %21673 = vmatpush3.msra.mxu0 %v17047_v46  ;;  %21698 = vmatmul.mubr.f32.vlgmr.msra.gmra.mxu1 %v24038_v34  ;;  %v14485_v46 = vadd.f32 %v21889_v45, %v23735_v43  ;;  %v17940_v43 = vand.u32 4294901760, %v17939_v57 }
 0xefb   :  { %21708 = vmatpush3.msra.mxu1 %v23977_v13  ;;  %21674 = vmatprep.subr.mxu0 %v21901_v4 }
 0xefc   :  { %21709 = vmatprep.subr.mxu1 %v21901_v4  ;;  %21675 = vmatpush3.msra.mxu0 %v17054_v27  ;;  %v18798_v27 = vsel %vm35_vm0, %v14485_v46, 0 }
 0xefd   :  { %21710 = vmatpush3.msra.mxu1 %v23983_v58  ;;  %21676 = vmatprep.mubr.msk.f32.mxu0 %vm21902_vm2, %v21901_v4  ;;  %v24186_v6 = vand.u32 4294901760, %v18798_v27 }
 0xefe   :  { %21686 = vmatprep.subr.mxu0 %v21901_v4  ;;  %21711 = vmatprep.mubr.msk.f32.mxu1 %vm21902_vm2, %v21901_v4 }
 0xeff   :  { %21721 = vmatprep.subr.mxu1 %v21901_v4  ;;  %21677 = vmatmul.mubr.f32.vlgmr.msra.gmra.mxu0 %v23972_v7  ;;  %v18451_v7 = vand.u32 4294901760, %v18450_v50 }
 0xf00   :  { %21687 = vmatpush3.msra.mxu0 %v23977_v13  ;;  %21712 = vmatmul.mubr.f32.vlgmr.msra.gmra.mxu1 %v17473_v28 }
 0xf01   :  { %21722 = vmatpush3.msra.mxu1 %v23977_v13  ;;  %21688 = vmatprep.subr.mxu0 %v21901_v4  ;;  %v24200_v13 = vsub.f32 %v18798_v27, %v24186_v6 }
 0xf02   :  { %21723 = vmatprep.subr.mxu1 %v21901_v4  ;;  %21689 = vmatpush3.msra.mxu0 %v23983_v58 }
 0xf03   :  { %21724 = vmatpush3.msra.mxu1 %v23983_v58  ;;  %21690 = vmatprep.mubr.msk.f32.mxu0 %vm21902_vm2, %v21901_v4  ;;  %v18403_v58 = vand.u32 4294901760, %v18402_v51  ;;  %v18908_v47 = vand.u32 4294901760, %v24200_v13 }
 0xf04   :  { %21700 = vmatprep.subr.mxu0 %v21901_v4  ;;  %21725 = vmatprep.mubr.msk.f32.mxu1 %vm21902_vm2, %v21901_v4 }
 0xf05   :  { %21735 = vmatprep.subr.mxu1 %v21901_v4  ;;  %21691 = vmatmul.mubr.f32.vlgmr.msra.gmra.mxu0 %v17475_v54  ;;  %v18404_v59 = vsub.f32 %v18402_v51, %v18403_v58 }
 0xf06   :  { %21701 = vmatpush3.msra.mxu0 %v23992_v0  ;;  %21726 = vmatmul.mubr.f32.vlgmr.msra.gmra.mxu1 %v24038_v34  ;;  %v18794_v0 = vrot.slane %v22090_v21, 1  ;;  %v18909_v21 = vsub.f32 %v24200_v13, %v18908_v47 }
 0xf07   :  { %21736 = vmatpush3.msra.mxu1 %v17979_v38  ;;  %21702 = vmatprep.subr.mxu0 %v21901_v4  ;;  %v18405_v10 = vand.u32 4294901760, %v18404_v59 }
 0xf08   :  { %21737 = vmatprep.subr.mxu1 %v21901_v4  ;;  %21703 = vmatpush3.msra.mxu0 %v24000_v35  ;;  %v18915_v35 = vand.u32 4294901760, %v24208_v37  ;;  %v18910_v60 = vand.u32 4294901760, %v18909_v21 }
 0xf09   :  { %21738 = vmatpush3.msra.mxu1 %v17986_v18  ;;  %21704 = vmatprep.mubr.msk.f32.mxu0 %vm21902_vm2, %v21901_v4 }
 0xf0a   :  { %21714 = vmatprep.subr.mxu0 %v21901_v4  ;;  %21739 = vmatprep.mubr.msk.f32.mxu1 %vm21902_vm2, %v21901_v4  ;;  %v18916_v8 = vsub.f32 %v24208_v37, %v18915_v35 }
 0xf0b   :  { %21749 = vmatprep.subr.mxu1 %v21901_v4  ;;  %21705 = vmatmul.mubr.f32.vlgmr.msra.gmra.mxu0 %v17472_v36 }
 0xf0c   :  { %21715 = vmatpush3.msra.mxu0 %v17512_v56  ;;  %21740 = vmatmul.mubr.f32.vlgmr.msra.gmra.mxu1 %v24104_v61  ;;  %v18795_v56 = vsel %vm31_vm1, %v18794_v0, 0  ;;  %v18917_v19 = vand.u32 4294901760, %v18916_v8 }
 0xf0d   :  { %21750 = vmatpush3.msra.mxu1 %v24043_v62  ;;  %21716 = vmatprep.subr.mxu0 %v21901_v4 }
 0xf0e   :  { %21751 = vmatprep.subr.mxu1 %v21901_v4  ;;  %21717 = vmatpush3.msra.mxu0 %v17519_v26  ;;  %v18867_v26 = vand.u32 4294901760, %v18795_v56 }
 0xf0f   :  { %21752 = vmatpush3.msra.mxu1 %v24050_v63  ;;  %21718 = vmatprep.mubr.msk.f32.mxu0 %vm21902_vm2, %v21901_v4 }
 0xf10   :  { %21728 = vmatprep.subr.mxu0 %v21901_v4  ;;  %21753 = vmatprep.mubr.msk.f32.mxu1 %vm21902_vm2, %v21901_v4  ;;  %v18868_v16 = vsub.f32 %v18795_v56, %v18867_v26 }
 0xf11   :  { %21763 = vmatprep.subr.mxu1 %v21901_v4  ;;  %21719 = vmatmul.mubr.f32.vlgmr.msra.gmra.mxu0 %v24038_v34 }
 0xf12   :  { %21729 = vmatpush3.msra.mxu0 %v24043_v62  ;;  %21754 = vmatmul.mubr.f32.vlgmr.msra.gmra.mxu1 %v17938_v33  ;;  %v18869_v5 = vand.u32 4294901760, %v18868_v16 }
 0xf13   :  { %21764 = vmatpush3.msra.mxu1 %v24043_v62  ;;  %21730 = vmatprep.subr.mxu0 %v21901_v4 }
 0xf14   :  { %21765 = vmatprep.subr.mxu1 %v21901_v4  ;;  %21731 = vmatpush3.msra.mxu0 %v24050_v63  ;;  %v18870_v32 = vsub.f32 %v18868_v16, %v18869_v5 }
 0xf15   :  { %21766 = vmatpush3.msra.mxu1 %v24050_v63  ;;  %21732 = vmatprep.mubr.msk.f32.mxu0 %vm21902_vm2, %v21901_v4 }
 0xf16   :  { %21742 = vmatprep.subr.mxu0 %v21901_v4  ;;  %21767 = vmatprep.mubr.msk.f32.mxu1 %vm21902_vm2, %v21901_v4  ;;  %v18871_v34 = vand.u32 4294901760, %v18870_v32 }
 0xf17   :  { %21777 = vmatprep.subr.mxu1 %v21901_v4  ;;  %21733 = vmatmul.mubr.f32.vlgmr.msra.gmra.mxu0 %v17940_v43 }
 0xf18   :  { %21743 = vmatpush3.msra.mxu0 %v24058_v49  ;;  %21768 = vmatmul.mubr.f32.vlgmr.msra.gmra.mxu1 %v24104_v61 }
 0xf19   :  { %21778 = vmatpush3.msra.mxu1 %v18444_v3  ;;  %21744 = vmatprep.subr.mxu0 %v21901_v4 }
 0xf1a   :  { %21779 = vmatprep.subr.mxu1 %v21901_v4  ;;  %21745 = vmatpush3.msra.mxu0 %v24066_v20 }
 0xf1b   :  { %21780 = vmatpush3.msra.mxu1 %v18451_v7  ;;  %21746 = vmatprep.mubr.msk.f32.mxu0 %vm21902_vm2, %v21901_v4 }
 0xf1c   :  { %21756 = vmatprep.subr.mxu0 %v21901_v4  ;;  %21781 = vmatprep.mubr.msk.f32.mxu1 %vm21902_vm2, %v21901_v4 }
 0xf1d   :  { %21791 = vmatprep.subr.mxu1 %v21901_v4  ;;  %21747 = vmatmul.mubr.f32.vlgmr.msra.gmra.mxu0 %v24115_v29 }
 0xf1e   :  { %21757 = vmatpush3.msra.mxu0 %v17977_v17  ;;  %21782 = vmatmul.mubr.f32.vlgmr.msra.gmra.mxu1 %v24177_v11 }
 0xf1f   :  { %21792 = vmatpush3.msra.mxu1 %v24109_v9  ;;  %21758 = vmatprep.subr.mxu0 %v21901_v4 }
 0xf20   :  { %21793 = vmatprep.subr.mxu1 %v21901_v4  ;;  %21759 = vmatpush3.msra.mxu0 %v17984_v30 }
 0xf21   :  { %21794 = vmatpush3.msra.mxu1 %v24118_v41  ;;  %21760 = vmatprep.mubr.msk.f32.mxu0 %vm21902_vm2, %v21901_v4 }
 0xf22   :  { %21770 = vmatprep.subr.mxu0 %v21901_v4  ;;  %21795 = vmatprep.mubr.msk.f32.mxu1 %vm21902_vm2, %v21901_v4 }
 0xf23   :  { %21805 = vmatprep.subr.mxu1 %v21901_v4  ;;  %21761 = vmatmul.mubr.f32.vlgmr.msra.gmra.mxu0 %v24104_v61 }
 0xf24   :  { %21771 = vmatpush3.msra.mxu0 %v24109_v9  ;;  %21796 = vmatmul.mubr.f32.vlgmr.msra.gmra.mxu1 %v18403_v58 }
 0xf25   :  { %21806 = vmatpush3.msra.mxu1 %v24109_v9  ;;  %21772 = vmatprep.subr.mxu0 %v21901_v4 }
 0xf26   :  { %21807 = vmatprep.subr.mxu1 %v21901_v4  ;;  %21773 = vmatpush3.msra.mxu0 %v24118_v41 }
 0xf27   :  { %21808 = vmatpush3.msra.mxu1 %v24118_v41  ;;  %21774 = vmatprep.mubr.msk.f32.mxu0 %vm21902_vm2, %v21901_v4 }
 0xf28   :  { %21784 = vmatprep.subr.mxu0 %v21901_v4  ;;  %21809 = vmatprep.mubr.msk.f32.mxu1 %vm21902_vm2, %v21901_v4 }
 0xf29   :  { %21819 = vmatprep.subr.mxu1 %v21901_v4  ;;  %21775 = vmatmul.mubr.f32.vlgmr.msra.gmra.mxu0 %v18405_v10 }
 0xf2a   :  { %21785 = vmatpush3.msra.mxu0 %v24126_v14  ;;  %21810 = vmatmul.mubr.f32.vlgmr.msra.gmra.mxu1 %v24177_v11 }
 0xf2b   :  { %21820 = vmatpush3.msra.mxu1 %v18910_v60  ;;  %21786 = vmatprep.subr.mxu0 %v21901_v4 }
 0xf2c   :  { %21821 = vmatprep.subr.mxu1 %v21901_v4  ;;  %21787 = vmatpush3.msra.mxu0 %v24134_v31 }
 0xf2d   :  { %21822 = vmatpush3.msra.mxu1 %v18917_v19  ;;  %21788 = vmatprep.mubr.msk.f32.mxu0 %vm21902_vm2, %v21901_v4 }
 0xf2e   :  { %21798 = vmatprep.subr.mxu0 %v21901_v4  ;;  %21823 = vmatprep.mubr.msk.f32.mxu1 %vm21902_vm2, %v21901_v4 }
 0xf2f   :  { %21833 = vmatprep.subr.mxu1 %v21901_v4  ;;  %21789 = vmatmul.mubr.f32.vlgmr.msra.gmra.mxu0 %v18402_v51 }
 0xf30   :  { %21799 = vmatpush3.msra.mxu0 %v18442_v44  ;;  %21824 = vmatmul.mubr.f32.vlgmr.msra.gmra.mxu1 %v18867_v26 }
 0xf31   :  { %21834 = vmatpush3.msra.mxu1 %v24186_v6  ;;  %21800 = vmatprep.subr.mxu0 %v21901_v4 }
 0xf32   :  { %21835 = vmatprep.subr.mxu1 %v21901_v4  ;;  %21801 = vmatpush3.msra.mxu0 %v18449_v25 }
 0xf33   :  { %21836 = vmatpush3.msra.mxu1 %v24192_v24  ;;  %21802 = vmatprep.mubr.msk.f32.mxu0 %vm21902_vm2, %v21901_v4 }
 0xf34   :  { %21812 = vmatprep.subr.mxu0 %v21901_v4  ;;  %21837 = vmatprep.mubr.msk.f32.mxu1 %vm21902_vm2, %v21901_v4 }
 0xf35   :  { %21847 = vmatprep.subr.mxu1 %v21901_v4  ;;  %21803 = vmatmul.mubr.f32.vlgmr.msra.gmra.mxu0 %v24177_v11 }
 0xf36   :  { %21813 = vmatpush3.msra.mxu0 %v24186_v6  ;;  %21838 = vmatmul.mubr.f32.vlgmr.msra.gmra.mxu1 %v18869_v5 }
 0xf37   :  { %21848 = vmatpush3.msra.mxu1 %v24186_v6  ;;  %21814 = vmatprep.subr.mxu0 %v21901_v4 }
 0xf38   :  { %21849 = vmatprep.subr.mxu1 %v21901_v4  ;;  %21815 = vmatpush3.msra.mxu0 %v24192_v24 }
 0xf39   :  { %21850 = vmatpush3.msra.mxu1 %v24192_v24  ;;  %21816 = vmatprep.mubr.msk.f32.mxu0 %vm21902_vm2, %v21901_v4 }
 0xf3a   :  { %21826 = vmatprep.subr.mxu0 %v21901_v4  ;;  %21851 = vmatprep.mubr.msk.f32.mxu1 %vm21902_vm2, %v21901_v4 }
 0xf3b   :  { %21817 = vmatmul.mubr.f32.vlgmr.msra.gmra.mxu0 %v18871_v34  ;;  %21852 = vmatmul.mubr.f32.vlgmr.msra.gmra.mxu1 %v18867_v26 }
 0xf3c   :  { %21827 = vmatpush3.msra.mxu0 %v24200_v13  ;;  %21830 = vmatprep.mubr.msk.f32.mxu0 %vm21902_vm2, %v21901_v4 }
 0xf3d   :  { %21828 = vmatprep.subr.mxu0 %v21901_v4 }
 0xf3e   :  { %21829 = vmatpush3.msra.mxu0 %v24208_v37 }
 0xf3f   :  { %21840 = vmatprep.subr.mxu0 %v21901_v4  ;;  %21831 = vmatmul.mubr.f32.vlgmr.msra.gmra.mxu0 %v18868_v16 }
 0xf40   :  { %21841 = vmatpush3.msra.mxu0 %v18908_v47  ;;  %21844 = vmatprep.mubr.msk.f32.mxu0 %vm21902_vm2, %v21901_v4 }
 0xf41   :  { %21842 = vmatprep.subr.mxu0 %v21901_v4 }
 0xf42   :  { %21843 = vmatpush3.msra.mxu0 %v18915_v35 }
 0xf43   :  { %21845 = vmatmul.mubr.f32.vlgmr.msra.gmra.mxu0 %v18867_v26  ;;  %v15527_v53 = vpop.xlane.xlu0 %15526 }
 0xf44   :  { %v15528_v62 = vrot.slane %v15527_v53, 4 }
 0xf46   :  { %v15529_v42 = vadd.f32 %v15528_v62, %v15527_v53 }
 0xf48   :  { %v15530_v36 = vrot.slane %v15529_v42, 2 }
 0xf4a   :  { %v15531_v63 = vadd.f32 %v15530_v36, %v15529_v42 }
 0xf4c   :  { %v15532_v49 = vrot.slane %v15531_v63, 1 }
 0xf4e   :  { %v15533_v20 = vadd.f32 %v15532_v49, %v15531_v63 }
 0xf50   :  { %21854 = vpush %v15533_v20 }
 0xf75   :  { %v15698_v28 = vpop.f32.mrf.mxu1 }
 0xf77   :  { %v21531_v17 = vpop.f32.mrf.mxu1 }
 0xf79   :  { %v15849_v40 = vpop.f32.mrf.mxu1 }
 0xf7b   :  { %v21545_v1 = vpop.f32.mrf.mxu1 }
 0xf7d   :  { %v15617_v30 = vpop.f32.mrf.mxu0 }
 0xf7e   :  { %v15699_v2 = vadd.f32 %v15698_v28, %v15617_v30  ;;  %v15999_v52 = vpop.f32.mrf.mxu1 }
 0xf7f   :  { %v21524_v4 = vpop.f32.mrf.mxu0 }
 0xf80   :  { %v21559_v54 = vpop.f32.mrf.mxu1 }
 0xf81   :  { %s21855_s0 = spop %21854 }
 0xf82   :  { %s15535_s15 = smul.f32 -0.5, %s21855_s0 }
 0xf83   :  { %v15774_v39 = vpop.f32.mrf.mxu0 }
 0xf84   :  { %15537 = sst [smem:[#allocation2]] %s15535_s15  ;;  %v15775_v55 = vadd.f32 %v15774_v39, %v15699_v2  ;;  %v16163_v61 = vpop.f32.mrf.mxu1 }
 0xf85   :  { %v21538_v38 = vpop.f32.mrf.mxu0  ;;  %19310 = dma.smem_to_hbm %s21909_s22, 16, %s24308_s3, [#allocation3]  }
 0xf86   :  { %v21573_v9 = vpop.f32.mrf.mxu1  ;;  %v15850_v18 = vadd.f32 %v15849_v40, %v15775_v55 }
 0xf89   :  { %v15926_v29 = vpop.f32.mrf.mxu0 }
 0xf8a   :  { %v15927_v41 = vadd.f32 %v15926_v29, %v15850_v18  ;;  %v16314_v14 = vpop.f32.mrf.mxu1 }
 0xf8b   :  { %v21552_v31 = vpop.f32.mrf.mxu0 }
 0xf8c   :  { %v24295_v33 = vadd.f32 %v15999_v52, %v15927_v41  ;;  %v21587_v44 = vpop.f32.mrf.mxu1 }
 0xf8f   :  { %v16082_v22 = vpop.f32.mrf.mxu0 }
 0xf90   :  { %v16464_v57 = vpop.f32.mrf.mxu1  ;;  %v16164_v46 = vadd.f32 %v16163_v61, %v16082_v22 }
 0xf91   :  { %v21566_v25 = vpop.f32.mrf.mxu0 }
 0xf92   :  { %v21601_v45 = vpop.f32.mrf.mxu1 }
 0xf95   :  { %v16239_v23 = vpop.f32.mrf.mxu0 }
 0xf96   :  { %v16240_v12 = vadd.f32 %v16239_v23, %v16164_v46  ;;  %v16628_v43 = vpop.f32.mrf.mxu1 }
 0xf97   :  { %v21580_v50 = vpop.f32.mrf.mxu0 }
 0xf98   :  { %v21615_v27 = vpop.f32.mrf.mxu1  ;;  %v16315_v11 = vadd.f32 %v16314_v14, %v16240_v12 }
 0xf9b   :  { %v16391_v48 = vpop.f32.mrf.mxu0 }
 0xf9c   :  { %v16392_v15 = vadd.f32 %v16391_v48, %v16315_v11  ;;  %v16779_v3 = vpop.f32.mrf.mxu1 }
 0xf9d   :  { %v21594_v6 = vpop.f32.mrf.mxu0 }
 0xf9e   :  { %v16465_v7 = vadd.f32 %v16464_v57, %v16392_v15  ;;  %v21629_v51 = vpop.f32.mrf.mxu1 }
 0xfa0   :  { %v16468_v24 = vsub.f32 0.0, %v16465_v7 }
 0xfa1   :  { %v16547_v13 = vpop.f32.mrf.mxu0 }
 0xfa2   :  { %v16929_v37 = vpop.f32.mrf.mxu1  ;;  %19261 = vrot.lane.b32.xlu0 %v16468_v24, %s21903_s16  ;;  %v16629_v0 = vadd.f32 %v16628_v43, %v16547_v13 }
 0xfa3   :  { %v21608_v58 = vpop.f32.mrf.mxu0 }
 0xfa4   :  { %v21643_v47 = vpop.f32.mrf.mxu1 }
 0xfa7   :  { %v16704_v35 = vpop.f32.mrf.mxu0 }
 0xfa8   :  { %v16705_v59 = vadd.f32 %v16704_v35, %v16629_v0  ;;  %v17093_v21 = vpop.f32.mrf.mxu1 }
 0xfa9   :  { %v21622_v56 = vpop.f32.mrf.mxu0 }
 0xfaa   :  { %v21657_v10 = vpop.f32.mrf.mxu1  ;;  %v16780_v8 = vadd.f32 %v16779_v3, %v16705_v59 }
 0xfad   :  { %v16856_v26 = vpop.f32.mrf.mxu0 }
 0xfae   :  { %v16857_v60 = vadd.f32 %v16856_v26, %v16780_v8  ;;  %v17244_v19 = vpop.f32.mrf.mxu1 }
 0xfaf   :  { %v21636_v16 = vpop.f32.mrf.mxu0 }
 0xfb0   :  { %v21671_v5 = vpop.f32.mrf.mxu1  ;;  %v16930_v32 = vadd.f32 %v16929_v37, %v16857_v60 }
 0xfb2   :  { %v16933_v34 = vsub.f32 0.0, %v16930_v32 }
 0xfb3   :  { %v17012_v53 = vpop.f32.mrf.mxu0 }
 0xfb4   :  { %v17394_v62 = vpop.f32.mrf.mxu1  ;;  %19265 = vrot.lane.b32.xlu1 %v16933_v34, %s21904_s17  ;;  %v17094_v63 = vadd.f32 %v17093_v21, %v17012_v53 }
 0xfb5   :  { %v21650_v42 = vpop.f32.mrf.mxu0 }
 0xfb6   :  { %v21685_v36 = vpop.f32.mrf.mxu1 }
 0xfb9   :  { %v17169_v49 = vpop.f32.mrf.mxu0 }
 0xfba   :  { %v17170_v20 = vadd.f32 %v17169_v49, %v17094_v63  ;;  %v17558_v28 = vpop.f32.mrf.mxu1 }
 0xfbb   :  { %v21664_v17 = vpop.f32.mrf.mxu0 }
 0xfbc   :  { %v21699_v40 = vpop.f32.mrf.mxu1  ;;  %v17245_v1 = vadd.f32 %v17244_v19, %v17170_v20 }
 0xfbf   :  { %v17321_v30 = vpop.f32.mrf.mxu0 }
 0xfc0   :  { %v17322_v2 = vadd.f32 %v17321_v30, %v17245_v1  ;;  %v17709_v52 = vpop.f32.mrf.mxu1 }
 0xfc1   :  { %v21678_v4 = vpop.f32.mrf.mxu0 }
 0xfc2   :  { %v17395_v54 = vadd.f32 %v17394_v62, %v17322_v2  ;;  %v21713_v39 = vpop.f32.mrf.mxu1 }
 0xfc4   :  { %v17398_v55 = vsub.f32 0.0, %v17395_v54 }
 0xfc5   :  { %v17477_v61 = vpop.f32.mrf.mxu0 }
 0xfc6   :  { %v17859_v38 = vpop.f32.mrf.mxu1  ;;  %19269 = vrot.lane.b32.xlu1 %v17398_v55, %s21905_s18  ;;  %v17559_v29 = vadd.f32 %v17558_v28, %v17477_v61 }
 0xfc7   :  { %v21692_v9 = vpop.f32.mrf.mxu0 }
 0xfc8   :  { %v21727_v18 = vpop.f32.mrf.mxu1 }
 0xfcb   :  { %v17634_v41 = vpop.f32.mrf.mxu0 }
 0xfcc   :  { %v17635_v14 = vadd.f32 %v17634_v41, %v17559_v29  ;;  %v18023_v31 = vpop.f32.mrf.mxu1 }
 0xfcd   :  { %v21706_v44 = vpop.f32.mrf.mxu0 }
 0xfce   :  { %v21741_v22 = vpop.f32.mrf.mxu1  ;;  %v17710_v57 = vadd.f32 %v17709_v52, %v17635_v14 }
 0xfd1   :  { %v17786_v25 = vpop.f32.mrf.mxu0 }
 0xfd2   :  { %v17787_v45 = vadd.f32 %v17786_v25, %v17710_v57  ;;  %v18174_v46 = vpop.f32.mrf.mxu1  ;;  %v16003_v57 = vsub.f32 0.0, %v24295_v33 }
 0xfd3   :  { %v21720_v23 = vpop.f32.mrf.mxu0 }
 0xfd4   :  { %v17860_v12 = vadd.f32 %v17859_v38, %v17787_v45  ;;  %v21755_v43 = vpop.f32.mrf.mxu1 }
 0xfd6   :  { %v17863_v50 = vsub.f32 0.0, %v17860_v12 }
 0xfd7   :  { %v17942_v27 = vpop.f32.mrf.mxu0 }
 0xfd8   :  { %v18324_v11 = vpop.f32.mrf.mxu1  ;;  %19273 = vrot.lane.b32.xlu1 %v17863_v50, %s21906_s19  ;;  %v18024_v3 = vadd.f32 %v18023_v31, %v17942_v27 }
 0xfd9   :  { %v21734_v48 = vpop.f32.mrf.mxu0 }
 0xfda   :  { %v21769_v15 = vpop.f32.mrf.mxu1 }
 0xfdd   :  { %v18099_v6 = vpop.f32.mrf.mxu0 }
 0xfde   :  { %v18100_v7 = vadd.f32 %v18099_v6, %v18024_v3  ;;  %v18488_v51 = vpop.f32.mrf.mxu1 }
 0xfdf   :  { %v21748_v24 = vpop.f32.mrf.mxu0 }
 0xfe0   :  { %v21783_v13 = vpop.f32.mrf.mxu1  ;;  %v18175_v37 = vadd.f32 %v18174_v46, %v18100_v7 }
 0xfe3   :  { %v18251_v58 = vpop.f32.mrf.mxu0 }
 0xfe4   :  { %v18252_v47 = vadd.f32 %v18251_v58, %v18175_v37  ;;  %v18639_v0 = vpop.f32.mrf.mxu1 }
 0xfe5   :  { %v21762_v35 = vpop.f32.mrf.mxu0 }
 0xfe6   :  { %v18325_v59 = vadd.f32 %v18324_v11, %v18252_v47  ;;  %v21797_v21 = vpop.f32.mrf.mxu1 }
 0xfe8   :  { %v18328_v56 = vsub.f32 0.0, %v18325_v59 }
 0xfe9   :  { %v18407_v10 = vpop.f32.mrf.mxu0 }
 0xfea   :  { %v18789_v8 = vpop.f32.mrf.mxu1  ;;  %19277 = vrot.lane.b32.xlu1 %v18328_v56, %s21907_s20  ;;  %v18489_v19 = vadd.f32 %v18488_v51, %v18407_v10 }
 0xfeb   :  { %v21776_v26 = vpop.f32.mrf.mxu0 }
 0xfec   :  { %v21811_v60 = vpop.f32.mrf.mxu1 }
 0xfef   :  { %v18564_v16 = vpop.f32.mrf.mxu0 }
 0xff0   :  { %v18565_v5 = vadd.f32 %v18564_v16, %v18489_v19  ;;  %v18954_v32 = vpop.f32.mrf.mxu1 }
 0xff1   :  { %v21790_v34 = vpop.f32.mrf.mxu0 }
 0xff2   :  { %v21825_v53 = vpop.f32.mrf.mxu1  ;;  %v18640_v62 = vadd.f32 %v18639_v0, %v18565_v5 }
 0xff5   :  { %v18716_v42 = vpop.f32.mrf.mxu0 }
 0xff6   :  { %v18717_v36 = vadd.f32 %v18716_v42, %v18640_v62  ;;  %v19105_v63 = vpop.f32.mrf.mxu1 }
 0xff7   :  { %v21804_v49 = vpop.f32.mrf.mxu0 }
 0xff8   :  { %v18790_v20 = vadd.f32 %v18789_v8, %v18717_v36  ;;  %v21839_v28 = vpop.f32.mrf.mxu1 }
 0xffa   :  { %v18793_v17 = vsub.f32 0.0, %v18790_v20 }
 0xffb   :  { %v18873_v40 = vpop.f32.mrf.mxu0  ;;  %v19255_v1 = vpop.f32.mrf.mxu1 }
 0xffc   :  { %19281 = vrot.lane.b32.xlu1 %v18793_v17, %s21908_s21  ;;  %v18955_v52 = vadd.f32 %v18954_v32, %v18873_v40 }
 0xffd   :  { %v21818_v30 = vpop.f32.mrf.mxu0  ;;  %v21853_v2 = vpop.f32.mrf.mxu1 }
 0xfff   :  { %v19030_v4 = vpop.f32.mrf.mxu0 }
0x1000   :  { %v19031_v54 = vadd.f32 %v19030_v4, %v18955_v52 }
0x1001   :  { %v21832_v39 = vpop.f32.mrf.mxu0 }
0x1002   :  { %v19106_v55 = vadd.f32 %v19105_v63, %v19031_v54 }
0x1003   :  { %v19182_v61 = vpop.f32.mrf.mxu0 }
0x1004   :  { %v19183_v38 = vadd.f32 %v19182_v61, %v19106_v55 }
0x1005   :  { %v21846_v9 = vpop.f32.mrf.mxu0 }
0x1006   :  { %v19256_v18 = vadd.f32 %v19255_v1, %v19183_v38 }
0x1008   :  { %v19259_v29 = vsub.f32 0.0, %v19256_v18 }
0x100a   :  { %19285 = vrot.lane.b32.xlu1 %v19259_v29, %s21910_s25 }
0x1014   :  { %v19262_v44 = vpop.permute.xlu0 %19261 }
0x1015   :  { %v19288_v25 = vsel %vm31_vm1, %v16003_v57, %v19262_v44 }
0x1026   :  { %v19266_v41 = vpop.permute.xlu1 %19265 }
0x1027   :  { %v19290_v45 = vsel %vm19289_vm4, %v19288_v25, %v19266_v41 }
0x1038   :  { %v19270_v14 = vpop.permute.xlu1 %19269 }
0x1039   :  { %v19292_v23 = vsel %vm19291_vm5, %v19290_v45, %v19270_v14 }
0x104a   :  { %v19274_v31 = vpop.permute.xlu1 %19273 }
0x104b   :  { %v19294_v12 = vsel %vm19293_vm6, %v19292_v23, %v19274_v31 }
0x105c   :  { %v19278_v22 = vpop.permute.xlu1 %19277 }
0x105d   :  { %v19296_v43 = vsel %vm19295_vm7, %v19294_v12, %v19278_v22 }
0x106e   :  { %v19282_v46 = vpop.permute.xlu1 %19281 }
0x106f   :  { %v19298_v50 = vsel %vm19297_vm8, %v19296_v43, %v19282_v46 }
0x107c   :  { %v19286_v27 = vpop.permute.xlu1 %19285 }
0x107d   :  { %v19300_v11 = vsel %vm19299_vm9, %v19298_v50, %v19286_v27 }
0x107e   :  { %19302 = vst.msk [vmem:[%s24309_s4] sm:$0xf] %vm19301_vm10, %v19300_v11 }
0x107f   :  { %21899 = dma.done.wait [#allocation3], 16  }
0x1080   :  { %21900 = vsyncadd [#allocation3], 4294967280 }
0x1081   :  { %19318 = sfence }
0x1082   :  { %19319 = vsyncpa [#allocation3], 1 }

</bundles_post_ra>
